<compile_context>
chip_gen: v7x
topology: tpu7x:2x2x1
jax: 0.10.0
libtpu: 0.0.40
codegen_flags: <defaults>
</compile_context>

<pallas_src>
import functools
import numpy as np
import jax
import jax.numpy as jnp
from jax.experimental import pallas as pl
from jax.experimental.pallas import tpu as pltpu


# ----------------------------- shared math -----------------------------------

def _layernorm(x, gamma, beta, eps=1e-5):
    mean = jnp.mean(x, axis=-1, keepdims=True)
    var = jnp.mean((x - mean) ** 2, axis=-1, keepdims=True)
    return (x - mean) * jax.lax.rsqrt(var + eps) * gamma + beta


def _embed(src, pos, emb_w, emb_b, *, bt, seq, d_model):
    """Token embedding (nn.Linear) + positional encoding -> (bt*seq, D) f32."""
    m = bt * seq
    x = jnp.dot(src.reshape(m, -1).astype(emb_w.dtype), emb_w,
                preferred_element_type=jnp.float32) + emb_b
    x = (x.reshape(bt, seq, d_model) + pos[None]).reshape(m, d_model)
    return x


def _attention(x, mask, wq, bq, wk, bk, wv, bv, wo, bo, *, n_head, bt, seq):
    """Masked multi-head self attention on a (bt*seq, D) activation."""
    d_model = wq.shape[-1]
    dh = d_model // n_head
    m = bt * seq
    scale = 1.0 / np.sqrt(dh)
    cdt = wq.dtype
    xc = x.astype(cdt)

    # Three separate projections (weights pre-split in the wrapper): avoids
    # lane-unaligned slicing of a fused (m, 3D) activation result.
    q = (jnp.dot(xc, wq, preferred_element_type=jnp.float32) + bq) * scale
    k = jnp.dot(xc, wk, preferred_element_type=jnp.float32) + bk
    v = jnp.dot(xc, wv, preferred_element_type=jnp.float32) + bv
    q = q.reshape(bt, seq, d_model)
    k = k.reshape(bt, seq, d_model)
    v = v.reshape(bt, seq, d_model)

    # Scores/softmax per head with a single leading batch dim (well-supported
    # batched einsum).  Head outputs are concatenated once so the output
    # projection runs as a single (m, D) @ (D, D) MXU matmul with K = D rather
    # than n_head matmuls with K = dh and a live (m, D) accumulator.
    # TODO(synk): for lane-aligned head dims batch the score einsum over all
    #             heads at once ('bqhd,bkhd->bhqk') instead of the python loop.
    heads = []
    for h in range(n_head):
        hs = slice(h * dh, (h + 1) * dh)
        s = jnp.einsum('bqd,bkd->bqk', q[..., hs].astype(cdt),
                       k[..., hs].astype(cdt),
                       preferred_element_type=jnp.float32)
        s = s + mask[None]
        s = s - jnp.max(s, axis=-1, keepdims=True)
        p = jnp.exp(s)
        p = p * pl.reciprocal(jnp.sum(p, axis=-1, keepdims=True), approx=False)
        heads.append(jnp.einsum('bqk,bkd->bqd', p.astype(cdt),
                                v[..., hs].astype(cdt),
                                preferred_element_type=jnp.float32))
    o = jnp.concatenate(heads, axis=-1).reshape(m, d_model)
    return jnp.dot(o.astype(cdt), wo, preferred_element_type=jnp.float32) + bo


def _decoder_layer(x, mask, wq, bq, wk, bk, wv, bv, wo, bo,
                   ln1_g, ln1_b, w1, b1, w2, b2, ln2_g, ln2_b,
                   *, n_head, bt, seq):
    attn = _attention(x, mask, wq, bq, wk, bk, wv, bv, wo, bo,
                      n_head=n_head, bt=bt, seq=seq)
    x = _layernorm(x + attn, ln1_g, ln1_b)          # dropout p=0 -> identity
    cdt = w1.dtype
    h1 = jnp.maximum(jnp.dot(x.astype(cdt), w1,
                             preferred_element_type=jnp.float32) + b1, 0.0)
    ff = jnp.dot(h1.astype(cdt), w2, preferred_element_type=jnp.float32) + b2
    return _layernorm(x + ff, ln2_g, ln2_b)


def _project(x, fc_w, fc_b):
    return jnp.dot(x.astype(fc_w.dtype), fc_w,
                   preferred_element_type=jnp.float32) + fc_b


# ----------------------------- kernels ----------------------------------------

def _fused_kernel(src_ref, pos_ref, mask_ref, emb_w_ref, emb_b_ref,
                  wq_ref, bq_ref, wk_ref, bk_ref, wv_ref, bv_ref,
                  wo_ref, bo_ref, ln1_g_ref, ln1_b_ref,
                  w1_ref, b1_ref, w2_ref, b2_ref, ln2_g_ref, ln2_b_ref,
                  fc_w_ref, fc_b_ref, out_ref,
                  *, n_layers, n_head, d_model, bt, seq):
    """grid = (batch_tiles,): all layer weights VMEM-resident; layer loop
    unrolled in-kernel (no per-layer grid-step overhead)."""
    x = _embed(src_ref[...], pos_ref[...], emb_w_ref[...], emb_b_ref[...],
               bt=bt, seq=seq, d_model=d_model)
    mask = mask_ref[...]
    for l in range(n_layers):          # static slices of VMEM-resident weights
        x = _decoder_layer(x, mask,
                           wq_ref[l], bq_ref[l], wk_ref[l], bk_ref[l],
                           wv_ref[l], bv_ref[l], wo_ref[l], bo_ref[l],
                           ln1_g_ref[l], ln1_b_ref[l],
                           w1_ref[l], b1_ref[l], w2_ref[l], b2_ref[l],
                           ln2_g_ref[l], ln2_b_ref[l],
                           n_head=n_head, bt=bt, seq=seq)
    logits = _project(x, fc_w_ref[...], fc_b_ref[...])   # (m, Vp) lane-dense
    out_ref[...] = logits.reshape(bt, seq, -1).astype(out_ref.dtype)


def _stream_kernel(src_ref, pos_ref, mask_ref, emb_w_ref, emb_b_ref,
                   wq_ref, bq_ref, wk_ref, bk_ref, wv_ref, bv_ref,
                   wo_ref, bo_ref, ln1_g_ref, ln1_b_ref,
                   w1_ref, b1_ref, w2_ref, b2_ref, ln2_g_ref, ln2_b_ref,
                   fc_w_ref, fc_b_ref, out_ref, x_ref,
                   *, n_head, d_model, bt, seq):
    """grid = (batch_tiles, n_layers): per-layer weights streamed / double
    buffered along the second grid axis; residual carried in VMEM scratch."""
    l = pl.program_id(1)

    @pl.when(l == 0)
    def _():
        x_ref[...] = _embed(src_ref[...], pos_ref[...], emb_w_ref[...],
                            emb_b_ref[...], bt=bt, seq=seq, d_model=d_model)

    x = _decoder_layer(x_ref[...], mask_ref[...],
                       wq_ref[...], bq_ref[...], wk_ref[...], bk_ref[...],
                       wv_ref[...], bv_ref[...], wo_ref[...], bo_ref[...],
                       ln1_g_ref[...], ln1_b_ref[...],
                       w1_ref[...], b1_ref[...], w2_ref[...], b2_ref[...],
                       ln2_g_ref[...], ln2_b_ref[...],
                       n_head=n_head, bt=bt, seq=seq)
    x_ref[...] = x

    # Output block index is constant along the layer axis, so HBM writeback
    # happens once after the final layer step.
    @pl.when(l == pl.num_programs(1) - 1)
    def _():
        logits = _project(x, fc_w_ref[...], fc_b_ref[...])
        out_ref[...] = logits.reshape(bt, seq, -1).astype(out_ref.dtype)


# ----------------------------- wrapper ----------------------------------------

def _device_kind():
    try:
        return jax.devices()[0].device_kind.lower()
    except Exception:
        return ""


def _default_batch_tiles(batch):
    # v7x has 2 TensorCores/chip: shard the 'parallel' batch axis across them.
    # Single-TC generations (v5e/v6e) keep one big tile (max MXU M, no extra
    # grid-step overhead).
    kind = _device_kind()
    if "v7" in kind and batch % 2 == 0:
        return 2
    return 1


def _vmem_cap_bytes():
    kind = _device_kind()
    if "v5" in kind or "v6" in kind:
        return 100 << 20     # 128 MiB physical VMEM on v5e / v6e
    return 48 << 20          # conservative headroom on v7x (64 MiB / TC)


def transformer_forward(src, params, *, n_layers, n_head, batch_tiles=None,
                        compute_dtype=jnp.float32, layer_stream=None):
    B, S, V = src.shape
    D = params["wq"].shape[-1]
    F = params["w1"].shape[-1]
    assert D % n_head == 0
    if batch_tiles is None:
        batch_tiles = _default_batch_tiles(B)
    assert B % batch_tiles == 0
    Bt = B // batch_tiles

    pos = params["pos"][:S].astype(jnp.float32)                      # (S, D)
    idx = jnp.arange(S)
    mask = jnp.where(idx[None, :] <= idx[:, None], 0.0,
                     -jnp.inf).astype(jnp.float32)                   # (S, S)

    # Lane-dense final projection / output stores: pad the vocab dim to a
    # multiple of 128 in the wrapper (free), slice back after the call.
    # TODO(synk): for large vocab, tile the (D, V) projection over a lane-dense
    #             V grid axis instead of holding it as a single block.
    Vp = max(128, ((V + 127) // 128) * 128)
    fc_w = jnp.zeros((D, Vp), jnp.float32).at[:, :V].set(params["fc_w"])
    fc_b = jnp.zeros((1, Vp), jnp.float32).at[:, :V].set(params["fc_b"])

    # MXU-facing weights in compute_dtype (bf16 halves weight DMA/VMEM bytes;
    # default f32 keeps the reference check exact).  Accumulation is f32 always.
    cdt = jnp.dtype(compute_dtype)
    emb_w = params["emb_w"].astype(cdt)
    wq = params["wq"].astype(cdt)
    wk = params["wk"].astype(cdt)
    wv = params["wv"].astype(cdt)
    wo = params["wo"].astype(cdt)
    w1 = params["w1"].astype(cdt)
    w2 = params["w2"].astype(cdt)
    fc_w = fc_w.astype(cdt)

    args = (src, pos, mask, emb_w, params["emb_b"],
            wq, params["bq"], wk, params["bk"], wv, params["bv"],
            wo, params["bo"], params["ln1_g"], params["ln1_b"],
            w1, params["b1"], w2, params["b2"],
            params["ln2_g"], params["ln2_b"], fc_w, fc_b)

    if layer_stream is None:
        # Collapse the layer loop into the kernel when every layer's weights fit
        # comfortably in VMEM; stream per layer only when they do not.
        layer_weight_bytes = int(cdt.itemsize) * n_layers * (4 * D * D + 2 * D * F)
        layer_stream = layer_weight_bytes > (24 << 20)

    def bytes_of(a, drop_leading=False):
        shape = a.shape[1:] if drop_leading else a.shape
        return int(np.prod(shape)) * a.dtype.itemsize

    io_block = Bt * S * V * src.dtype.itemsize + Bt * S * Vp * 4
    const_bytes = sum(bytes_of(a) for a in (pos, mask, emb_w, params["emb_b"],
                                            fc_w, fc_b))

    if not layer_stream:
        grid = (batch_tiles,)
        dims = ("parallel",)

        def full_spec(a):
            nd = a.ndim
            return pl.BlockSpec(a.shape, lambda b: (0,) * nd)

        in_specs = ([pl.BlockSpec((Bt, S, V), lambda b: (b, 0, 0))]
                    + [full_spec(a) for a in args[1:]])
        out_specs = pl.BlockSpec((Bt, S, Vp), lambda b: (b, 0, 0))
        scratch = []
        kernel = functools.partial(_fused_kernel, n_layers=n_layers,
                                   n_head=n_head, d_model=D, bt=Bt, seq=S)
        weight_bytes = sum(bytes_of(a) for a in args[5:21])
        est = 2 * io_block + const_bytes + weight_bytes
    else:
        grid = (batch_tiles, n_layers)
        dims = ("parallel", "arbitrary")

        def const_spec(a):
            nd = a.ndim
            return pl.BlockSpec(a.shape, lambda b, l: (0,) * nd)

        def layer_spec(a):
            return pl.BlockSpec((None,) + a.shape[1:], lambda b, l: (l, 0, 0))

        in_specs = ([pl.BlockSpec((Bt, S, V), lambda b, l: (b, 0, 0)),
                     const_spec(pos), const_spec(mask),
                     const_spec(emb_w), const_spec(params["emb_b"])]
                    + [layer_spec(a) for a in args[5:21]]
                    + [const_spec(fc_w), const_spec(fc_b)])
        out_specs = pl.BlockSpec((Bt, S, Vp), lambda b, l: (b, 0, 0))
        scratch = [pltpu.VMEM((Bt * S, D), jnp.float32)]
        kernel = functools.partial(_stream_kernel, n_head=n_head,
                                   d_model=D, bt=Bt, seq=S)
        layer_block = sum(bytes_of(a, drop_leading=True) for a in args[5:21])
        # One 2x factor for pipeline double-buffering (layer / const / IO
        # blocks), plus the residual-carry scratch; no double counting.
        est = 2 * (io_block + const_bytes + layer_block) + Bt * S * D * 4

    vmem_limit = int(min(max(est + (4 << 20), 16 << 20), _vmem_cap_bytes()))

    out = pl.pallas_call(
        kernel,
        out_shape=jax.ShapeDtypeStruct((B, S, Vp), jnp.float32),
        grid_spec=pltpu.PrefetchScalarGridSpec(
            num_scalar_prefetch=0, grid=grid, in_specs=in_specs,
            out_specs=out_specs, scratch_shapes=scratch),
        compiler_params=pltpu.CompilerParams(
            dimension_semantics=dims, vmem_limit_bytes=vmem_limit),
    )(*args)
    return out[..., :V]


# ----------------------------- pure-JAX reference -----------------------------

def reference_forward(src, params, *, n_layers, n_head):
    B, S, V = src.shape
    D = params["wq"].shape[-1]
    dh = D // n_head
    idx = jnp.arange(S)
    mask = jnp.where(idx[None, :] <= idx[:, None], 0.0,
                     -jnp.inf).astype(jnp.float32)

    def ln(x, g, b, eps=1e-5):
        m = jnp.mean(x, axis=-1, keepdims=True)
        v = jnp.mean((x - m) ** 2, axis=-1, keepdims=True)
        return (x - m) / jnp.sqrt(v + eps) * g + b

    x = src @ params["emb_w"] + params["emb_b"][0]
    x = x + params["pos"][:S][None]
    for l in range(n_layers):
        q = (x @ params["wq"][l] + params["bq"][l, 0]) / np.sqrt(dh)
        k = x @ params["wk"][l] + params["bk"][l, 0]
        v = x @ params["wv"][l] + params["bv"][l, 0]
        qh = q.reshape(B, S, n_head, dh).transpose(0, 2, 1, 3)
        kh = k.reshape(B, S, n_head, dh).transpose(0, 2, 1, 3)
        vh = v.reshape(B, S, n_head, dh).transpose(0, 2, 1, 3)
        s = qh @ kh.transpose(0, 1, 3, 2) + mask
        p = jax.nn.softmax(s, axis=-1)
        o = (p @ vh).transpose(0, 2, 1, 3).reshape(B, S, D)
        o = o @ params["wo"][l] + params["bo"][l, 0]
        x = ln(x + o, params["ln1_g"][l, 0], params["ln1_b"][l, 0])
        h1 = jnp.maximum(x @ params["w1"][l] + params["b1"][l, 0], 0.0)
        ff = h1 @ params["w2"][l] + params["b2"][l, 0]
        x = ln(x + ff, params["ln2_g"][l, 0], params["ln2_b"][l, 0])
    return x @ params["fc_w"] + params["fc_b"][0]


# ----------------------------- setup -------------------------------------------

def make_params(key, *, vocab_size, d_model, n_head, dim_ff, n_layers,
                max_seq_length):
    V, D, F, L = vocab_size, d_model, dim_ff, n_layers
    ks = jax.random.split(key, 16)

    def rnd(k, shape, scale=0.02):
        return (scale * jax.random.normal(k, shape)).astype(jnp.float32)

    # sinusoidal positional encoding (same as the PyTorch buffer)
    position = np.arange(max_seq_length, dtype=np.float32)[:, None]
    div_term = np.exp(np.arange(0, D, 2, dtype=np.float32)
                      * (-np.log(10000.0) / D))
    pe = np.zeros((max_seq_length, D), dtype=np.float32)
    pe[:, 0::2] = np.sin(position * div_term)
    pe[:, 1::2] = np.cos(position * div_term)

    return dict(
        pos=jnp.asarray(pe),
        emb_w=rnd(ks[0], (V, D)), emb_b=rnd(ks[1], (1, D)),
        wq=rnd(ks[2], (L, D, D)), bq=rnd(ks[3], (L, 1, D)),
        wk=rnd(ks[4], (L, D, D)), bk=rnd(ks[5], (L, 1, D)),
        wv=rnd(ks[6], (L, D, D)), bv=rnd(ks[7], (L, 1, D)),
        wo=rnd(ks[8], (L, D, D)), bo=rnd(ks[9], (L, 1, D)),
        ln1_g=jnp.ones((L, 1, D), jnp.float32),
        ln1_b=jnp.zeros((L, 1, D), jnp.float32),
        w1=rnd(ks[10], (L, D, F)), b1=rnd(ks[11], (L, 1, F)),
        w2=rnd(ks[12], (L, F, D)), b2=rnd(ks[13], (L, 1, D)),
        ln2_g=jnp.ones((L, 1, D), jnp.float32),
        ln2_b=jnp.zeros((L, 1, D), jnp.float32),
        fc_w=rnd(ks[14], (D, V)), fc_b=rnd(ks[15], (1, V)),
    )


if __name__ == "__main__":
    # small shapes consistent with the module
    B, S = 2, 8
    VOCAB, D_MODEL, N_HEAD, DIM_FF, N_LAYERS, MAX_SEQ = 16, 32, 4, 64, 2, 16

    key = jax.random.PRNGKey(0)
    kp, kx = jax.random.split(key)
    params = make_params(kp, vocab_size=VOCAB, d_model=D_MODEL, n_head=N_HEAD,
                         dim_ff=DIM_FF, n_layers=N_LAYERS,
                         max_seq_length=MAX_SEQ)

    # one-hot style float input (nn.Linear token embedding expects floats)
    tokens = jax.random.randint(kx, (B, S), 0, VOCAB)
    src = jax.nn.one_hot(tokens, VOCAB, dtype=jnp.float32)          # (B, S, V)

    # f32 compute keeps the check exact; pass compute_dtype=jnp.bfloat16 for
    # 2-4x MXU throughput / half the weight bytes (relax tolerances then).
    out = transformer_forward(src, params, n_layers=N_LAYERS, n_head=N_HEAD)
    out = jax.block_until_ready(out)

    ref = reference_forward(src, params, n_layers=N_LAYERS, n_head=N_HEAD)
    np.testing.assert_allclose(np.asarray(out), np.asarray(ref),
                               rtol=1e-4, atol=1e-4)
    print("KERNEL_OK")
</pallas_src>

<mosaic_0001>
module attributes {stable_mosaic.version = 11 : i64} {
  func.func @_fused_kernel(%arg0: i32, %arg1: memref<2x8x16xf32, #tpu.memory_space<vmem>>, %arg2: memref<8x32xf32, #tpu.memory_space<vmem>>, %arg3: memref<8x8xf32, #tpu.memory_space<vmem>>, %arg4: memref<16x32xf32, #tpu.memory_space<vmem>>, %arg5: memref<1x32xf32, #tpu.memory_space<vmem>>, %arg6: memref<2x32x32xf32, #tpu.memory_space<vmem>>, %arg7: memref<2x1x32xf32, #tpu.memory_space<vmem>>, %arg8: memref<2x32x32xf32, #tpu.memory_space<vmem>>, %arg9: memref<2x1x32xf32, #tpu.memory_space<vmem>>, %arg10: memref<2x32x32xf32, #tpu.memory_space<vmem>>, %arg11: memref<2x1x32xf32, #tpu.memory_space<vmem>>, %arg12: memref<2x32x32xf32, #tpu.memory_space<vmem>>, %arg13: memref<2x1x32xf32, #tpu.memory_space<vmem>>, %arg14: memref<2x1x32xf32, #tpu.memory_space<vmem>>, %arg15: memref<2x1x32xf32, #tpu.memory_space<vmem>>, %arg16: memref<2x32x64xf32, #tpu.memory_space<vmem>>, %arg17: memref<2x1x64xf32, #tpu.memory_space<vmem>>, %arg18: memref<2x64x32xf32, #tpu.memory_space<vmem>>, %arg19: memref<2x1x32xf32, #tpu.memory_space<vmem>>, %arg20: memref<2x1x32xf32, #tpu.memory_space<vmem>>, %arg21: memref<2x1x32xf32, #tpu.memory_space<vmem>>, %arg22: memref<32x128xf32, #tpu.memory_space<vmem>>, %arg23: memref<1x128xf32, #tpu.memory_space<vmem>>, %arg24: memref<2x8x128xf32, #tpu.memory_space<vmem>>) attributes {dimension_semantics = [#tpu.dimension_semantics<parallel>], iteration_bounds = array<i64: 1>, scalar_prefetch = 0 : i64, scratch_operands = 0 : i64, tpu.core_type = #tpu.core_type<tc>, window_params = [{transform_indices = @transform_0, window_bounds = array<i64: 2, 8, 16>}, {pipeline_mode = #tpu.pipeline_mode<synchronous>, transform_indices = @transform_1, window_bounds = array<i64: 8, 32>}, {pipeline_mode = #tpu.pipeline_mode<synchronous>, transform_indices = @transform_2, window_bounds = array<i64: 8, 8>}, {pipeline_mode = #tpu.pipeline_mode<synchronous>, transform_indices = @transform_3, window_bounds = array<i64: 16, 32>}, {pipeline_mode = #tpu.pipeline_mode<synchronous>, transform_indices = @transform_4, window_bounds = array<i64: 1, 32>}, {pipeline_mode = #tpu.pipeline_mode<synchronous>, transform_indices = @transform_5, window_bounds = array<i64: 2, 32, 32>}, {pipeline_mode = #tpu.pipeline_mode<synchronous>, transform_indices = @transform_6, window_bounds = array<i64: 2, 1, 32>}, {pipeline_mode = #tpu.pipeline_mode<synchronous>, transform_indices = @transform_7, window_bounds = array<i64: 2, 32, 32>}, {pipeline_mode = #tpu.pipeline_mode<synchronous>, transform_indices = @transform_8, window_bounds = array<i64: 2, 1, 32>}, {pipeline_mode = #tpu.pipeline_mode<synchronous>, transform_indices = @transform_9, window_bounds = array<i64: 2, 32, 32>}, {pipeline_mode = #tpu.pipeline_mode<synchronous>, transform_indices = @transform_10, window_bounds = array<i64: 2, 1, 32>}, {pipeline_mode = #tpu.pipeline_mode<synchronous>, transform_indices = @transform_11, window_bounds = array<i64: 2, 32, 32>}, {pipeline_mode = #tpu.pipeline_mode<synchronous>, transform_indices = @transform_12, window_bounds = array<i64: 2, 1, 32>}, {pipeline_mode = #tpu.pipeline_mode<synchronous>, transform_indices = @transform_13, window_bounds = array<i64: 2, 1, 32>}, {pipeline_mode = #tpu.pipeline_mode<synchronous>, transform_indices = @transform_14, window_bounds = array<i64: 2, 1, 32>}, {pipeline_mode = #tpu.pipeline_mode<synchronous>, transform_indices = @transform_15, window_bounds = array<i64: 2, 32, 64>}, {pipeline_mode = #tpu.pipeline_mode<synchronous>, transform_indices = @transform_16, window_bounds = array<i64: 2, 1, 64>}, {pipeline_mode = #tpu.pipeline_mode<synchronous>, transform_indices = @transform_17, window_bounds = array<i64: 2, 64, 32>}, {pipeline_mode = #tpu.pipeline_mode<synchronous>, transform_indices = @transform_18, window_bounds = array<i64: 2, 1, 32>}, {pipeline_mode = #tpu.pipeline_mode<synchronous>, transform_indices = @transform_19, window_bounds = array<i64: 2, 1, 32>}, {pipeline_mode = #tpu.pipeline_mode<synchronous>, transform_indices = @transform_20, window_bounds = array<i64: 2, 1, 32>}, {pipeline_mode = #tpu.pipeline_mode<synchronous>, transform_indices = @transform_21, window_bounds = array<i64: 32, 128>}, {pipeline_mode = #tpu.pipeline_mode<synchronous>, transform_indices = @transform_22, window_bounds = array<i64: 1, 128>}, {transform_indices = @transform_23, window_bounds = array<i64: 2, 8, 128>}]} {
    %c0 = arith.constant 0 : index
    %c0_0 = arith.constant 0 : index
    %c0_1 = arith.constant 0 : index
    %0 = vector.load %arg1[%c0, %c0_0, %c0_1] : memref<2x8x16xf32, #tpu.memory_space<vmem>>, vector<2x8x16xf32>
    %c0_2 = arith.constant 0 : index
    %c0_3 = arith.constant 0 : index
    %1 = vector.load %arg2[%c0_2, %c0_3] : memref<8x32xf32, #tpu.memory_space<vmem>>, vector<8x32xf32>
    %c0_4 = arith.constant 0 : index
    %c0_5 = arith.constant 0 : index
    %2 = vector.load %arg4[%c0_4, %c0_5] : memref<16x32xf32, #tpu.memory_space<vmem>>, vector<16x32xf32>
    %c0_6 = arith.constant 0 : index
    %c0_7 = arith.constant 0 : index
    %3 = vector.load %arg5[%c0_6, %c0_7] : memref<1x32xf32, #tpu.memory_space<vmem>>, vector<1x32xf32>
    %4 = vector.shape_cast %0 : vector<2x8x16xf32> to vector<16x16xf32>
    %cst = arith.constant dense<0.000000e+00> : vector<16x32xf32>
    %5 = tpu.matmul %4, %2, %cst {dimension_numbers = #tpu.dot_dimension_numbers<[1], [0], [0], [1], [0, 0, 1, 1], [], []>} : vector<16x16xf32>, vector<16x32xf32>, vector<16x32xf32> -> vector<16x32xf32>
    %6 = vector.broadcast %3 : vector<1x32xf32> to vector<16x32xf32>
    %7 = arith.addf %5, %6 : vector<16x32xf32>
    %8 = vector.shape_cast %7 : vector<16x32xf32> to vector<2x8x32xf32>
    %9 = vector.shape_cast %1 : vector<8x32xf32> to vector<1x8x32xf32>
    %10 = vector.broadcast %9 : vector<1x8x32xf32> to vector<2x8x32xf32>
    %11 = arith.addf %8, %10 : vector<2x8x32xf32>
    %12 = vector.shape_cast %11 : vector<2x8x32xf32> to vector<16x32xf32>
    %c0_8 = arith.constant 0 : index
    %c0_9 = arith.constant 0 : index
    %13 = vector.load %arg3[%c0_8, %c0_9] : memref<8x8xf32, #tpu.memory_space<vmem>>, vector<8x8xf32>
    %c0_10 = arith.constant 0 : index
    %c0_11 = arith.constant 0 : index
    %c0_12 = arith.constant 0 : index
    %14 = vector.load %arg6[%c0_10, %c0_11, %c0_12] : memref<2x32x32xf32, #tpu.memory_space<vmem>>, vector<1x32x32xf32>
    %15 = vector.shape_cast %14 : vector<1x32x32xf32> to vector<32x32xf32>
    %c0_13 = arith.constant 0 : index
    %c0_14 = arith.constant 0 : index
    %c0_15 = arith.constant 0 : index
    %16 = vector.load %arg7[%c0_13, %c0_14, %c0_15] : memref<2x1x32xf32, #tpu.memory_space<vmem>>, vector<1x1x32xf32>
    %17 = vector.shape_cast %16 : vector<1x1x32xf32> to vector<1x32xf32>
    %c0_16 = arith.constant 0 : index
    %c0_17 = arith.constant 0 : index
    %c0_18 = arith.constant 0 : index
    %18 = vector.load %arg8[%c0_16, %c0_17, %c0_18] : memref<2x32x32xf32, #tpu.memory_space<vmem>>, vector<1x32x32xf32>
    %19 = vector.shape_cast %18 : vector<1x32x32xf32> to vector<32x32xf32>
    %c0_19 = arith.constant 0 : index
    %c0_20 = arith.constant 0 : index
    %c0_21 = arith.constant 0 : index
    %20 = vector.load %arg9[%c0_19, %c0_20, %c0_21] : memref<2x1x32xf32, #tpu.memory_space<vmem>>, vector<1x1x32xf32>
    %21 = vector.shape_cast %20 : vector<1x1x32xf32> to vector<1x32xf32>
    %c0_22 = arith.constant 0 : index
    %c0_23 = arith.constant 0 : index
    %c0_24 = arith.constant 0 : index
    %22 = vector.load %arg10[%c0_22, %c0_23, %c0_24] : memref<2x32x32xf32, #tpu.memory_space<vmem>>, vector<1x32x32xf32>
    %23 = vector.shape_cast %22 : vector<1x32x32xf32> to vector<32x32xf32>
    %c0_25 = arith.constant 0 : index
    %c0_26 = arith.constant 0 : index
    %c0_27 = arith.constant 0 : index
    %24 = vector.load %arg11[%c0_25, %c0_26, %c0_27] : memref<2x1x32xf32, #tpu.memory_space<vmem>>, vector<1x1x32xf32>
    %25 = vector.shape_cast %24 : vector<1x1x32xf32> to vector<1x32xf32>
    %c0_28 = arith.constant 0 : index
    %c0_29 = arith.constant 0 : index
    %c0_30 = arith.constant 0 : index
    %26 = vector.load %arg12[%c0_28, %c0_29, %c0_30] : memref<2x32x32xf32, #tpu.memory_space<vmem>>, vector<1x32x32xf32>
    %27 = vector.shape_cast %26 : vector<1x32x32xf32> to vector<32x32xf32>
    %c0_31 = arith.constant 0 : index
    %c0_32 = arith.constant 0 : index
    %c0_33 = arith.constant 0 : index
    %28 = vector.load %arg13[%c0_31, %c0_32, %c0_33] : memref<2x1x32xf32, #tpu.memory_space<vmem>>, vector<1x1x32xf32>
    %29 = vector.shape_cast %28 : vector<1x1x32xf32> to vector<1x32xf32>
    %c0_34 = arith.constant 0 : index
    %c0_35 = arith.constant 0 : index
    %c0_36 = arith.constant 0 : index
    %30 = vector.load %arg14[%c0_34, %c0_35, %c0_36] : memref<2x1x32xf32, #tpu.memory_space<vmem>>, vector<1x1x32xf32>
    %31 = vector.shape_cast %30 : vector<1x1x32xf32> to vector<1x32xf32>
    %c0_37 = arith.constant 0 : index
    %c0_38 = arith.constant 0 : index
    %c0_39 = arith.constant 0 : index
    %32 = vector.load %arg15[%c0_37, %c0_38, %c0_39] : memref<2x1x32xf32, #tpu.memory_space<vmem>>, vector<1x1x32xf32>
    %33 = vector.shape_cast %32 : vector<1x1x32xf32> to vector<1x32xf32>
    %c0_40 = arith.constant 0 : index
    %c0_41 = arith.constant 0 : index
    %c0_42 = arith.constant 0 : index
    %34 = vector.load %arg16[%c0_40, %c0_41, %c0_42] : memref<2x32x64xf32, #tpu.memory_space<vmem>>, vector<1x32x64xf32>
    %35 = vector.shape_cast %34 : vector<1x32x64xf32> to vector<32x64xf32>
    %c0_43 = arith.constant 0 : index
    %c0_44 = arith.constant 0 : index
    %c0_45 = arith.constant 0 : index
    %36 = vector.load %arg17[%c0_43, %c0_44, %c0_45] : memref<2x1x64xf32, #tpu.memory_space<vmem>>, vector<1x1x64xf32>
    %37 = vector.shape_cast %36 : vector<1x1x64xf32> to vector<1x64xf32>
    %c0_46 = arith.constant 0 : index
    %c0_47 = arith.constant 0 : index
    %c0_48 = arith.constant 0 : index
    %38 = vector.load %arg18[%c0_46, %c0_47, %c0_48] : memref<2x64x32xf32, #tpu.memory_space<vmem>>, vector<1x64x32xf32>
    %39 = vector.shape_cast %38 : vector<1x64x32xf32> to vector<64x32xf32>
    %c0_49 = arith.constant 0 : index
    %c0_50 = arith.constant 0 : index
    %c0_51 = arith.constant 0 : index
    %40 = vector.load %arg19[%c0_49, %c0_50, %c0_51] : memref<2x1x32xf32, #tpu.memory_space<vmem>>, vector<1x1x32xf32>
    %41 = vector.shape_cast %40 : vector<1x1x32xf32> to vector<1x32xf32>
    %c0_52 = arith.constant 0 : index
    %c0_53 = arith.constant 0 : index
    %c0_54 = arith.constant 0 : index
    %42 = vector.load %arg20[%c0_52, %c0_53, %c0_54] : memref<2x1x32xf32, #tpu.memory_space<vmem>>, vector<1x1x32xf32>
    %43 = vector.shape_cast %42 : vector<1x1x32xf32> to vector<1x32xf32>
    %c0_55 = arith.constant 0 : index
    %c0_56 = arith.constant 0 : index
    %c0_57 = arith.constant 0 : index
    %44 = vector.load %arg21[%c0_55, %c0_56, %c0_57] : memref<2x1x32xf32, #tpu.memory_space<vmem>>, vector<1x1x32xf32>
    %45 = vector.shape_cast %44 : vector<1x1x32xf32> to vector<1x32xf32>
    %cst_58 = arith.constant dense<0.000000e+00> : vector<16x32xf32>
    %46 = tpu.matmul %12, %15, %cst_58 {dimension_numbers = #tpu.dot_dimension_numbers<[1], [0], [0], [1], [0, 0, 1, 1], [], []>} : vector<16x32xf32>, vector<32x32xf32>, vector<16x32xf32> -> vector<16x32xf32>
    %47 = vector.broadcast %17 : vector<1x32xf32> to vector<16x32xf32>
    %48 = arith.addf %46, %47 : vector<16x32xf32>
    %cst_59 = arith.constant 0.353553385 : f32
    %49 = vector.broadcast %cst_59 : f32 to vector<16x32xf32>
    %50 = arith.mulf %48, %49 : vector<16x32xf32>
    %cst_60 = arith.constant dense<0.000000e+00> : vector<16x32xf32>
    %51 = tpu.matmul %12, %19, %cst_60 {dimension_numbers = #tpu.dot_dimension_numbers<[1], [0], [0], [1], [0, 0, 1, 1], [], []>} : vector<16x32xf32>, vector<32x32xf32>, vector<16x32xf32> -> vector<16x32xf32>
    %52 = vector.broadcast %21 : vector<1x32xf32> to vector<16x32xf32>
    %53 = arith.addf %51, %52 : vector<16x32xf32>
    %cst_61 = arith.constant dense<0.000000e+00> : vector<16x32xf32>
    %54 = tpu.matmul %12, %23, %cst_61 {dimension_numbers = #tpu.dot_dimension_numbers<[1], [0], [0], [1], [0, 0, 1, 1], [], []>} : vector<16x32xf32>, vector<32x32xf32>, vector<16x32xf32> -> vector<16x32xf32>
    %55 = vector.broadcast %25 : vector<1x32xf32> to vector<16x32xf32>
    %56 = arith.addf %54, %55 : vector<16x32xf32>
    %57 = vector.shape_cast %50 : vector<16x32xf32> to vector<2x8x32xf32>
    %58 = vector.shape_cast %53 : vector<16x32xf32> to vector<2x8x32xf32>
    %59 = vector.shape_cast %56 : vector<16x32xf32> to vector<2x8x32xf32>
    %60 = vector.extract_strided_slice %57 {offsets = [0, 0, 0], sizes = [2, 8, 8], strides = [1, 1, 1]} : vector<2x8x32xf32> to vector<2x8x8xf32>
    %61 = vector.extract_strided_slice %58 {offsets = [0, 0, 0], sizes = [2, 8, 8], strides = [1, 1, 1]} : vector<2x8x32xf32> to vector<2x8x8xf32>
    "tpu.trace_start"() <{level = 10 : i32, message = "bqd,bkd->bqk"}> : () -> ()
    %cst_62 = arith.constant dense<0.000000e+00> : vector<2x8x8xf32>
    %62 = tpu.matmul %60, %61, %cst_62 {dimension_numbers = #tpu.dot_dimension_numbers<[2], [2], [1], [1], [0, 0, 0, 1, 1, 1], [0], [0]>} : vector<2x8x8xf32>, vector<2x8x8xf32>, vector<2x8x8xf32> -> vector<2x8x8xf32>
    "tpu.trace_stop"() : () -> ()
    %63 = vector.shape_cast %13 : vector<8x8xf32> to vector<1x8x8xf32>
    %64 = vector.broadcast %63 : vector<1x8x8xf32> to vector<2x8x8xf32>
    %65 = arith.addf %62, %64 : vector<2x8x8xf32>
    %cst_63 = arith.constant dense<0xFF800000> : vector<2x8xf32>
    %66 = vector.multi_reduction <maximumf>, %65, %cst_63 [2] : vector<2x8x8xf32> to vector<2x8xf32>
    %67 = vector.shape_cast %66 : vector<2x8xf32> to vector<2x8x1xf32>
    %68 = vector.broadcast %67 : vector<2x8x1xf32> to vector<2x8x8xf32>
    %69 = arith.subf %65, %68 : vector<2x8x8xf32>
    %70 = math.exp %69 : vector<2x8x8xf32>
    %cst_64 = arith.constant dense<0.000000e+00> : vector<2x8xf32>
    %71 = vector.multi_reduction <add>, %70, %cst_64 [2] : vector<2x8x8xf32> to vector<2x8xf32>
    %72 = vector.shape_cast %71 : vector<2x8xf32> to vector<2x8x1xf32>
    %73 = tpu.reciprocal %72 : vector<2x8x1xf32> -> vector<2x8x1xf32>
    %74 = vector.broadcast %73 : vector<2x8x1xf32> to vector<2x8x8xf32>
    %75 = arith.mulf %70, %74 : vector<2x8x8xf32>
    %76 = vector.extract_strided_slice %59 {offsets = [0, 0, 0], sizes = [2, 8, 8], strides = [1, 1, 1]} : vector<2x8x32xf32> to vector<2x8x8xf32>
    "tpu.trace_start"() <{level = 10 : i32, message = "bqk,bkd->bqd"}> : () -> ()
    %cst_65 = arith.constant dense<0.000000e+00> : vector<2x8x8xf32>
    %77 = tpu.matmul %75, %76, %cst_65 {dimension_numbers = #tpu.dot_dimension_numbers<[2], [1], [1], [2], [0, 0, 0, 1, 1, 2], [0], [0]>} : vector<2x8x8xf32>, vector<2x8x8xf32>, vector<2x8x8xf32> -> vector<2x8x8xf32>
    "tpu.trace_stop"() : () -> ()
    %78 = vector.extract_strided_slice %57 {offsets = [0, 0, 8], sizes = [2, 8, 8], strides = [1, 1, 1]} : vector<2x8x32xf32> to vector<2x8x8xf32>
    %79 = vector.extract_strided_slice %58 {offsets = [0, 0, 8], sizes = [2, 8, 8], strides = [1, 1, 1]} : vector<2x8x32xf32> to vector<2x8x8xf32>
    "tpu.trace_start"() <{level = 10 : i32, message = "bqd,bkd->bqk"}> : () -> ()
    %cst_66 = arith.constant dense<0.000000e+00> : vector<2x8x8xf32>
    %80 = tpu.matmul %78, %79, %cst_66 {dimension_numbers = #tpu.dot_dimension_numbers<[2], [2], [1], [1], [0, 0, 0, 1, 1, 1], [0], [0]>} : vector<2x8x8xf32>, vector<2x8x8xf32>, vector<2x8x8xf32> -> vector<2x8x8xf32>
    "tpu.trace_stop"() : () -> ()
    %81 = vector.shape_cast %13 : vector<8x8xf32> to vector<1x8x8xf32>
    %82 = vector.broadcast %81 : vector<1x8x8xf32> to vector<2x8x8xf32>
    %83 = arith.addf %80, %82 : vector<2x8x8xf32>
    %cst_67 = arith.constant dense<0xFF800000> : vector<2x8xf32>
    %84 = vector.multi_reduction <maximumf>, %83, %cst_67 [2] : vector<2x8x8xf32> to vector<2x8xf32>
    %85 = vector.shape_cast %84 : vector<2x8xf32> to vector<2x8x1xf32>
    %86 = vector.broadcast %85 : vector<2x8x1xf32> to vector<2x8x8xf32>
    %87 = arith.subf %83, %86 : vector<2x8x8xf32>
    %88 = math.exp %87 : vector<2x8x8xf32>
    %cst_68 = arith.constant dense<0.000000e+00> : vector<2x8xf32>
    %89 = vector.multi_reduction <add>, %88, %cst_68 [2] : vector<2x8x8xf32> to vector<2x8xf32>
    %90 = vector.shape_cast %89 : vector<2x8xf32> to vector<2x8x1xf32>
    %91 = tpu.reciprocal %90 : vector<2x8x1xf32> -> vector<2x8x1xf32>
    %92 = vector.broadcast %91 : vector<2x8x1xf32> to vector<2x8x8xf32>
    %93 = arith.mulf %88, %92 : vector<2x8x8xf32>
    %94 = vector.extract_strided_slice %59 {offsets = [0, 0, 8], sizes = [2, 8, 8], strides = [1, 1, 1]} : vector<2x8x32xf32> to vector<2x8x8xf32>
    "tpu.trace_start"() <{level = 10 : i32, message = "bqk,bkd->bqd"}> : () -> ()
    %cst_69 = arith.constant dense<0.000000e+00> : vector<2x8x8xf32>
    %95 = tpu.matmul %93, %94, %cst_69 {dimension_numbers = #tpu.dot_dimension_numbers<[2], [1], [1], [2], [0, 0, 0, 1, 1, 2], [0], [0]>} : vector<2x8x8xf32>, vector<2x8x8xf32>, vector<2x8x8xf32> -> vector<2x8x8xf32>
    "tpu.trace_stop"() : () -> ()
    %96 = vector.extract_strided_slice %57 {offsets = [0, 0, 16], sizes = [2, 8, 8], strides = [1, 1, 1]} : vector<2x8x32xf32> to vector<2x8x8xf32>
    %97 = vector.extract_strided_slice %58 {offsets = [0, 0, 16], sizes = [2, 8, 8], strides = [1, 1, 1]} : vector<2x8x32xf32> to vector<2x8x8xf32>
    "tpu.trace_start"() <{level = 10 : i32, message = "bqd,bkd->bqk"}> : () -> ()
    %cst_70 = arith.constant dense<0.000000e+00> : vector<2x8x8xf32>
    %98 = tpu.matmul %96, %97, %cst_70 {dimension_numbers = #tpu.dot_dimension_numbers<[2], [2], [1], [1], [0, 0, 0, 1, 1, 1], [0], [0]>} : vector<2x8x8xf32>, vector<2x8x8xf32>, vector<2x8x8xf32> -> vector<2x8x8xf32>
    "tpu.trace_stop"() : () -> ()
    %99 = vector.shape_cast %13 : vector<8x8xf32> to vector<1x8x8xf32>
    %100 = vector.broadcast %99 : vector<1x8x8xf32> to vector<2x8x8xf32>
    %101 = arith.addf %98, %100 : vector<2x8x8xf32>
    %cst_71 = arith.constant dense<0xFF800000> : vector<2x8xf32>
    %102 = vector.multi_reduction <maximumf>, %101, %cst_71 [2] : vector<2x8x8xf32> to vector<2x8xf32>
    %103 = vector.shape_cast %102 : vector<2x8xf32> to vector<2x8x1xf32>
    %104 = vector.broadcast %103 : vector<2x8x1xf32> to vector<2x8x8xf32>
    %105 = arith.subf %101, %104 : vector<2x8x8xf32>
    %106 = math.exp %105 : vector<2x8x8xf32>
    %cst_72 = arith.constant dense<0.000000e+00> : vector<2x8xf32>
    %107 = vector.multi_reduction <add>, %106, %cst_72 [2] : vector<2x8x8xf32> to vector<2x8xf32>
    %108 = vector.shape_cast %107 : vector<2x8xf32> to vector<2x8x1xf32>
    %109 = tpu.reciprocal %108 : vector<2x8x1xf32> -> vector<2x8x1xf32>
    %110 = vector.broadcast %109 : vector<2x8x1xf32> to vector<2x8x8xf32>
    %111 = arith.mulf %106, %110 : vector<2x8x8xf32>
    %112 = vector.extract_strided_slice %59 {offsets = [0, 0, 16], sizes = [2, 8, 8], strides = [1, 1, 1]} : vector<2x8x32xf32> to vector<2x8x8xf32>
    "tpu.trace_start"() <{level = 10 : i32, message = "bqk,bkd->bqd"}> : () -> ()
    %cst_73 = arith.constant dense<0.000000e+00> : vector<2x8x8xf32>
    %113 = tpu.matmul %111, %112, %cst_73 {dimension_numbers = #tpu.dot_dimension_numbers<[2], [1], [1], [2], [0, 0, 0, 1, 1, 2], [0], [0]>} : vector<2x8x8xf32>, vector<2x8x8xf32>, vector<2x8x8xf32> -> vector<2x8x8xf32>
    "tpu.trace_stop"() : () -> ()
    %114 = vector.extract_strided_slice %57 {offsets = [0, 0, 24], sizes = [2, 8, 8], strides = [1, 1, 1]} : vector<2x8x32xf32> to vector<2x8x8xf32>
    %115 = vector.extract_strided_slice %58 {offsets = [0, 0, 24], sizes = [2, 8, 8], strides = [1, 1, 1]} : vector<2x8x32xf32> to vector<2x8x8xf32>
    "tpu.trace_start"() <{level = 10 : i32, message = "bqd,bkd->bqk"}> : () -> ()
    %cst_74 = arith.constant dense<0.000000e+00> : vector<2x8x8xf32>
    %116 = tpu.matmul %114, %115, %cst_74 {dimension_numbers = #tpu.dot_dimension_numbers<[2], [2], [1], [1], [0, 0, 0, 1, 1, 1], [0], [0]>} : vector<2x8x8xf32>, vector<2x8x8xf32>, vector<2x8x8xf32> -> vector<2x8x8xf32>
    "tpu.trace_stop"() : () -> ()
    %117 = vector.shape_cast %13 : vector<8x8xf32> to vector<1x8x8xf32>
    %118 = vector.broadcast %117 : vector<1x8x8xf32> to vector<2x8x8xf32>
    %119 = arith.addf %116, %118 : vector<2x8x8xf32>
    %cst_75 = arith.constant dense<0xFF800000> : vector<2x8xf32>
    %120 = vector.multi_reduction <maximumf>, %119, %cst_75 [2] : vector<2x8x8xf32> to vector<2x8xf32>
    %121 = vector.shape_cast %120 : vector<2x8xf32> to vector<2x8x1xf32>
    %122 = vector.broadcast %121 : vector<2x8x1xf32> to vector<2x8x8xf32>
    %123 = arith.subf %119, %122 : vector<2x8x8xf32>
    %124 = math.exp %123 : vector<2x8x8xf32>
    %cst_76 = arith.constant dense<0.000000e+00> : vector<2x8xf32>
    %125 = vector.multi_reduction <add>, %124, %cst_76 [2] : vector<2x8x8xf32> to vector<2x8xf32>
    %126 = vector.shape_cast %125 : vector<2x8xf32> to vector<2x8x1xf32>
    %127 = tpu.reciprocal %126 : vector<2x8x1xf32> -> vector<2x8x1xf32>
    %128 = vector.broadcast %127 : vector<2x8x1xf32> to vector<2x8x8xf32>
    %129 = arith.mulf %124, %128 : vector<2x8x8xf32>
    %130 = vector.extract_strided_slice %59 {offsets = [0, 0, 24], sizes = [2, 8, 8], strides = [1, 1, 1]} : vector<2x8x32xf32> to vector<2x8x8xf32>
    "tpu.trace_start"() <{level = 10 : i32, message = "bqk,bkd->bqd"}> : () -> ()
    %cst_77 = arith.constant dense<0.000000e+00> : vector<2x8x8xf32>
    %131 = tpu.matmul %129, %130, %cst_77 {dimension_numbers = #tpu.dot_dimension_numbers<[2], [1], [1], [2], [0, 0, 0, 1, 1, 2], [0], [0]>} : vector<2x8x8xf32>, vector<2x8x8xf32>, vector<2x8x8xf32> -> vector<2x8x8xf32>
    "tpu.trace_stop"() : () -> ()
    %132 = tpu.concatenate %77, %95, %113, %131 in 2 : vector<2x8x8xf32>, vector<2x8x8xf32>, vector<2x8x8xf32>, vector<2x8x8xf32> -> vector<2x8x32xf32>
    %133 = vector.shape_cast %132 : vector<2x8x32xf32> to vector<16x32xf32>
    %cst_78 = arith.constant dense<0.000000e+00> : vector<16x32xf32>
    %134 = tpu.matmul %133, %27, %cst_78 {dimension_numbers = #tpu.dot_dimension_numbers<[1], [0], [0], [1], [0, 0, 1, 1], [], []>} : vector<16x32xf32>, vector<32x32xf32>, vector<16x32xf32> -> vector<16x32xf32>
    %135 = vector.broadcast %29 : vector<1x32xf32> to vector<16x32xf32>
    %136 = arith.addf %134, %135 : vector<16x32xf32>
    %137 = arith.addf %12, %136 : vector<16x32xf32>
    %cst_79 = arith.constant dense<0.000000e+00> : vector<16xf32>
    %138 = vector.multi_reduction <add>, %137, %cst_79 [1] : vector<16x32xf32> to vector<16xf32>
    %139 = vector.shape_cast %138 : vector<16xf32> to vector<16x1xf32>
    %cst_80 = arith.constant 3.200000e+01 : f32
    %140 = vector.broadcast %cst_80 : f32 to vector<16x1xf32>
    %141 = arith.divf %139, %140 : vector<16x1xf32>
    %142 = vector.broadcast %141 : vector<16x1xf32> to vector<16x32xf32>
    %143 = arith.subf %137, %142 : vector<16x32xf32>
    %144 = arith.mulf %143, %143 : vector<16x32xf32>
    %cst_81 = arith.constant dense<0.000000e+00> : vector<16xf32>
    %145 = vector.multi_reduction <add>, %144, %cst_81 [1] : vector<16x32xf32> to vector<16xf32>
    %146 = vector.shape_cast %145 : vector<16xf32> to vector<16x1xf32>
    %cst_82 = arith.constant 3.200000e+01 : f32
    %147 = vector.broadcast %cst_82 : f32 to vector<16x1xf32>
    %148 = arith.divf %146, %147 : vector<16x1xf32>
    %149 = vector.broadcast %141 : vector<16x1xf32> to vector<16x32xf32>
    %150 = arith.subf %137, %149 : vector<16x32xf32>
    %cst_83 = arith.constant 9.99999974E-6 : f32
    %151 = vector.broadcast %cst_83 : f32 to vector<16x1xf32>
    %152 = arith.addf %148, %151 : vector<16x1xf32>
    %153 = math.rsqrt %152 : vector<16x1xf32>
    %154 = vector.broadcast %153 : vector<16x1xf32> to vector<16x32xf32>
    %155 = arith.mulf %150, %154 : vector<16x32xf32>
    %156 = vector.broadcast %31 : vector<1x32xf32> to vector<16x32xf32>
    %157 = arith.mulf %155, %156 : vector<16x32xf32>
    %158 = vector.broadcast %33 : vector<1x32xf32> to vector<16x32xf32>
    %159 = arith.addf %157, %158 : vector<16x32xf32>
    %cst_84 = arith.constant dense<0.000000e+00> : vector<16x64xf32>
    %160 = tpu.matmul %159, %35, %cst_84 {dimension_numbers = #tpu.dot_dimension_numbers<[1], [0], [0], [1], [0, 0, 1, 1], [], []>} : vector<16x32xf32>, vector<32x64xf32>, vector<16x64xf32> -> vector<16x64xf32>
    %161 = vector.broadcast %37 : vector<1x64xf32> to vector<16x64xf32>
    %162 = arith.addf %160, %161 : vector<16x64xf32>
    %cst_85 = arith.constant 0.000000e+00 : f32
    %163 = vector.broadcast %cst_85 : f32 to vector<16x64xf32>
    %164 = arith.maximumf %162, %163 : vector<16x64xf32>
    %cst_86 = arith.constant dense<0.000000e+00> : vector<16x32xf32>
    %165 = tpu.matmul %164, %39, %cst_86 {dimension_numbers = #tpu.dot_dimension_numbers<[1], [0], [0], [1], [0, 0, 1, 1], [], []>} : vector<16x64xf32>, vector<64x32xf32>, vector<16x32xf32> -> vector<16x32xf32>
    %166 = vector.broadcast %41 : vector<1x32xf32> to vector<16x32xf32>
    %167 = arith.addf %165, %166 : vector<16x32xf32>
    %168 = arith.addf %159, %167 : vector<16x32xf32>
    %cst_87 = arith.constant dense<0.000000e+00> : vector<16xf32>
    %169 = vector.multi_reduction <add>, %168, %cst_87 [1] : vector<16x32xf32> to vector<16xf32>
    %170 = vector.shape_cast %169 : vector<16xf32> to vector<16x1xf32>
    %cst_88 = arith.constant 3.200000e+01 : f32
    %171 = vector.broadcast %cst_88 : f32 to vector<16x1xf32>
    %172 = arith.divf %170, %171 : vector<16x1xf32>
    %173 = vector.broadcast %172 : vector<16x1xf32> to vector<16x32xf32>
    %174 = arith.subf %168, %173 : vector<16x32xf32>
    %175 = arith.mulf %174, %174 : vector<16x32xf32>
    %cst_89 = arith.constant dense<0.000000e+00> : vector<16xf32>
    %176 = vector.multi_reduction <add>, %175, %cst_89 [1] : vector<16x32xf32> to vector<16xf32>
    %177 = vector.shape_cast %176 : vector<16xf32> to vector<16x1xf32>
    %cst_90 = arith.constant 3.200000e+01 : f32
    %178 = vector.broadcast %cst_90 : f32 to vector<16x1xf32>
    %179 = arith.divf %177, %178 : vector<16x1xf32>
    %180 = vector.broadcast %172 : vector<16x1xf32> to vector<16x32xf32>
    %181 = arith.subf %168, %180 : vector<16x32xf32>
    %cst_91 = arith.constant 9.99999974E-6 : f32
    %182 = vector.broadcast %cst_91 : f32 to vector<16x1xf32>
    %183 = arith.addf %179, %182 : vector<16x1xf32>
    %184 = math.rsqrt %183 : vector<16x1xf32>
    %185 = vector.broadcast %184 : vector<16x1xf32> to vector<16x32xf32>
    %186 = arith.mulf %181, %185 : vector<16x32xf32>
    %187 = vector.broadcast %43 : vector<1x32xf32> to vector<16x32xf32>
    %188 = arith.mulf %186, %187 : vector<16x32xf32>
    %189 = vector.broadcast %45 : vector<1x32xf32> to vector<16x32xf32>
    %190 = arith.addf %188, %189 : vector<16x32xf32>
    %c1 = arith.constant 1 : index
    %c0_92 = arith.constant 0 : index
    %c0_93 = arith.constant 0 : index
    %191 = vector.load %arg6[%c1, %c0_92, %c0_93] : memref<2x32x32xf32, #tpu.memory_space<vmem>>, vector<1x32x32xf32>
    %192 = vector.shape_cast %191 : vector<1x32x32xf32> to vector<32x32xf32>
    %c1_94 = arith.constant 1 : index
    %c0_95 = arith.constant 0 : index
    %c0_96 = arith.constant 0 : index
    %193 = vector.load %arg7[%c1_94, %c0_95, %c0_96] : memref<2x1x32xf32, #tpu.memory_space<vmem>>, vector<1x1x32xf32>
    %194 = vector.shape_cast %193 : vector<1x1x32xf32> to vector<1x32xf32>
    %c1_97 = arith.constant 1 : index
    %c0_98 = arith.constant 0 : index
    %c0_99 = arith.constant 0 : index
    %195 = vector.load %arg8[%c1_97, %c0_98, %c0_99] : memref<2x32x32xf32, #tpu.memory_space<vmem>>, vector<1x32x32xf32>
    %196 = vector.shape_cast %195 : vector<1x32x32xf32> to vector<32x32xf32>
    %c1_100 = arith.constant 1 : index
    %c0_101 = arith.constant 0 : index
    %c0_102 = arith.constant 0 : index
    %197 = vector.load %arg9[%c1_100, %c0_101, %c0_102] : memref<2x1x32xf32, #tpu.memory_space<vmem>>, vector<1x1x32xf32>
    %198 = vector.shape_cast %197 : vector<1x1x32xf32> to vector<1x32xf32>
    %c1_103 = arith.constant 1 : index
    %c0_104 = arith.constant 0 : index
    %c0_105 = arith.constant 0 : index
    %199 = vector.load %arg10[%c1_103, %c0_104, %c0_105] : memref<2x32x32xf32, #tpu.memory_space<vmem>>, vector<1x32x32xf32>
    %200 = vector.shape_cast %199 : vector<1x32x32xf32> to vector<32x32xf32>
    %c1_106 = arith.constant 1 : index
    %c0_107 = arith.constant 0 : index
    %c0_108 = arith.constant 0 : index
    %201 = vector.load %arg11[%c1_106, %c0_107, %c0_108] : memref<2x1x32xf32, #tpu.memory_space<vmem>>, vector<1x1x32xf32>
    %202 = vector.shape_cast %201 : vector<1x1x32xf32> to vector<1x32xf32>
    %c1_109 = arith.constant 1 : index
    %c0_110 = arith.constant 0 : index
    %c0_111 = arith.constant 0 : index
    %203 = vector.load %arg12[%c1_109, %c0_110, %c0_111] : memref<2x32x32xf32, #tpu.memory_space<vmem>>, vector<1x32x32xf32>
    %204 = vector.shape_cast %203 : vector<1x32x32xf32> to vector<32x32xf32>
    %c1_112 = arith.constant 1 : index
    %c0_113 = arith.constant 0 : index
    %c0_114 = arith.constant 0 : index
    %205 = vector.load %arg13[%c1_112, %c0_113, %c0_114] : memref<2x1x32xf32, #tpu.memory_space<vmem>>, vector<1x1x32xf32>
    %206 = vector.shape_cast %205 : vector<1x1x32xf32> to vector<1x32xf32>
    %c1_115 = arith.constant 1 : index
    %c0_116 = arith.constant 0 : index
    %c0_117 = arith.constant 0 : index
    %207 = vector.load %arg14[%c1_115, %c0_116, %c0_117] : memref<2x1x32xf32, #tpu.memory_space<vmem>>, vector<1x1x32xf32>
    %208 = vector.shape_cast %207 : vector<1x1x32xf32> to vector<1x32xf32>
    %c1_118 = arith.constant 1 : index
    %c0_119 = arith.constant 0 : index
    %c0_120 = arith.constant 0 : index
    %209 = vector.load %arg15[%c1_118, %c0_119, %c0_120] : memref<2x1x32xf32, #tpu.memory_space<vmem>>, vector<1x1x32xf32>
    %210 = vector.shape_cast %209 : vector<1x1x32xf32> to vector<1x32xf32>
    %c1_121 = arith.constant 1 : index
    %c0_122 = arith.constant 0 : index
    %c0_123 = arith.constant 0 : index
    %211 = vector.load %arg16[%c1_121, %c0_122, %c0_123] : memref<2x32x64xf32, #tpu.memory_space<vmem>>, vector<1x32x64xf32>
    %212 = vector.shape_cast %211 : vector<1x32x64xf32> to vector<32x64xf32>
    %c1_124 = arith.constant 1 : index
    %c0_125 = arith.constant 0 : index
    %c0_126 = arith.constant 0 : index
    %213 = vector.load %arg17[%c1_124, %c0_125, %c0_126] : memref<2x1x64xf32, #tpu.memory_space<vmem>>, vector<1x1x64xf32>
    %214 = vector.shape_cast %213 : vector<1x1x64xf32> to vector<1x64xf32>
    %c1_127 = arith.constant 1 : index
    %c0_128 = arith.constant 0 : index
    %c0_129 = arith.constant 0 : index
    %215 = vector.load %arg18[%c1_127, %c0_128, %c0_129] : memref<2x64x32xf32, #tpu.memory_space<vmem>>, vector<1x64x32xf32>
    %216 = vector.shape_cast %215 : vector<1x64x32xf32> to vector<64x32xf32>
    %c1_130 = arith.constant 1 : index
    %c0_131 = arith.constant 0 : index
    %c0_132 = arith.constant 0 : index
    %217 = vector.load %arg19[%c1_130, %c0_131, %c0_132] : memref<2x1x32xf32, #tpu.memory_space<vmem>>, vector<1x1x32xf32>
    %218 = vector.shape_cast %217 : vector<1x1x32xf32> to vector<1x32xf32>
    %c1_133 = arith.constant 1 : index
    %c0_134 = arith.constant 0 : index
    %c0_135 = arith.constant 0 : index
    %219 = vector.load %arg20[%c1_133, %c0_134, %c0_135] : memref<2x1x32xf32, #tpu.memory_space<vmem>>, vector<1x1x32xf32>
    %220 = vector.shape_cast %219 : vector<1x1x32xf32> to vector<1x32xf32>
    %c1_136 = arith.constant 1 : index
    %c0_137 = arith.constant 0 : index
    %c0_138 = arith.constant 0 : index
    %221 = vector.load %arg21[%c1_136, %c0_137, %c0_138] : memref<2x1x32xf32, #tpu.memory_space<vmem>>, vector<1x1x32xf32>
    %222 = vector.shape_cast %221 : vector<1x1x32xf32> to vector<1x32xf32>
    %cst_139 = arith.constant dense<0.000000e+00> : vector<16x32xf32>
    %223 = tpu.matmul %190, %192, %cst_139 {dimension_numbers = #tpu.dot_dimension_numbers<[1], [0], [0], [1], [0, 0, 1, 1], [], []>} : vector<16x32xf32>, vector<32x32xf32>, vector<16x32xf32> -> vector<16x32xf32>
    %224 = vector.broadcast %194 : vector<1x32xf32> to vector<16x32xf32>
    %225 = arith.addf %223, %224 : vector<16x32xf32>
    %cst_140 = arith.constant 0.353553385 : f32
    %226 = vector.broadcast %cst_140 : f32 to vector<16x32xf32>
    %227 = arith.mulf %225, %226 : vector<16x32xf32>
    %cst_141 = arith.constant dense<0.000000e+00> : vector<16x32xf32>
    %228 = tpu.matmul %190, %196, %cst_141 {dimension_numbers = #tpu.dot_dimension_numbers<[1], [0], [0], [1], [0, 0, 1, 1], [], []>} : vector<16x32xf32>, vector<32x32xf32>, vector<16x32xf32> -> vector<16x32xf32>
    %229 = vector.broadcast %198 : vector<1x32xf32> to vector<16x32xf32>
    %230 = arith.addf %228, %229 : vector<16x32xf32>
    %cst_142 = arith.constant dense<0.000000e+00> : vector<16x32xf32>
    %231 = tpu.matmul %190, %200, %cst_142 {dimension_numbers = #tpu.dot_dimension_numbers<[1], [0], [0], [1], [0, 0, 1, 1], [], []>} : vector<16x32xf32>, vector<32x32xf32>, vector<16x32xf32> -> vector<16x32xf32>
    %232 = vector.broadcast %202 : vector<1x32xf32> to vector<16x32xf32>
    %233 = arith.addf %231, %232 : vector<16x32xf32>
    %234 = vector.shape_cast %227 : vector<16x32xf32> to vector<2x8x32xf32>
    %235 = vector.shape_cast %230 : vector<16x32xf32> to vector<2x8x32xf32>
    %236 = vector.shape_cast %233 : vector<16x32xf32> to vector<2x8x32xf32>
    %237 = vector.extract_strided_slice %234 {offsets = [0, 0, 0], sizes = [2, 8, 8], strides = [1, 1, 1]} : vector<2x8x32xf32> to vector<2x8x8xf32>
    %238 = vector.extract_strided_slice %235 {offsets = [0, 0, 0], sizes = [2, 8, 8], strides = [1, 1, 1]} : vector<2x8x32xf32> to vector<2x8x8xf32>
    "tpu.trace_start"() <{level = 10 : i32, message = "bqd,bkd->bqk"}> : () -> ()
    %cst_143 = arith.constant dense<0.000000e+00> : vector<2x8x8xf32>
    %239 = tpu.matmul %237, %238, %cst_143 {dimension_numbers = #tpu.dot_dimension_numbers<[2], [2], [1], [1], [0, 0, 0, 1, 1, 1], [0], [0]>} : vector<2x8x8xf32>, vector<2x8x8xf32>, vector<2x8x8xf32> -> vector<2x8x8xf32>
    "tpu.trace_stop"() : () -> ()
    %240 = vector.shape_cast %13 : vector<8x8xf32> to vector<1x8x8xf32>
    %241 = vector.broadcast %240 : vector<1x8x8xf32> to vector<2x8x8xf32>
    %242 = arith.addf %239, %241 : vector<2x8x8xf32>
    %cst_144 = arith.constant dense<0xFF800000> : vector<2x8xf32>
    %243 = vector.multi_reduction <maximumf>, %242, %cst_144 [2] : vector<2x8x8xf32> to vector<2x8xf32>
    %244 = vector.shape_cast %243 : vector<2x8xf32> to vector<2x8x1xf32>
    %245 = vector.broadcast %244 : vector<2x8x1xf32> to vector<2x8x8xf32>
    %246 = arith.subf %242, %245 : vector<2x8x8xf32>
    %247 = math.exp %246 : vector<2x8x8xf32>
    %cst_145 = arith.constant dense<0.000000e+00> : vector<2x8xf32>
    %248 = vector.multi_reduction <add>, %247, %cst_145 [2] : vector<2x8x8xf32> to vector<2x8xf32>
    %249 = vector.shape_cast %248 : vector<2x8xf32> to vector<2x8x1xf32>
    %250 = tpu.reciprocal %249 : vector<2x8x1xf32> -> vector<2x8x1xf32>
    %251 = vector.broadcast %250 : vector<2x8x1xf32> to vector<2x8x8xf32>
    %252 = arith.mulf %247, %251 : vector<2x8x8xf32>
    %253 = vector.extract_strided_slice %236 {offsets = [0, 0, 0], sizes = [2, 8, 8], strides = [1, 1, 1]} : vector<2x8x32xf32> to vector<2x8x8xf32>
    "tpu.trace_start"() <{level = 10 : i32, message = "bqk,bkd->bqd"}> : () -> ()
    %cst_146 = arith.constant dense<0.000000e+00> : vector<2x8x8xf32>
    %254 = tpu.matmul %252, %253, %cst_146 {dimension_numbers = #tpu.dot_dimension_numbers<[2], [1], [1], [2], [0, 0, 0, 1, 1, 2], [0], [0]>} : vector<2x8x8xf32>, vector<2x8x8xf32>, vector<2x8x8xf32> -> vector<2x8x8xf32>
    "tpu.trace_stop"() : () -> ()
    %255 = vector.extract_strided_slice %234 {offsets = [0, 0, 8], sizes = [2, 8, 8], strides = [1, 1, 1]} : vector<2x8x32xf32> to vector<2x8x8xf32>
    %256 = vector.extract_strided_slice %235 {offsets = [0, 0, 8], sizes = [2, 8, 8], strides = [1, 1, 1]} : vector<2x8x32xf32> to vector<2x8x8xf32>
    "tpu.trace_start"() <{level = 10 : i32, message = "bqd,bkd->bqk"}> : () -> ()
    %cst_147 = arith.constant dense<0.000000e+00> : vector<2x8x8xf32>
    %257 = tpu.matmul %255, %256, %cst_147 {dimension_numbers = #tpu.dot_dimension_numbers<[2], [2], [1], [1], [0, 0, 0, 1, 1, 1], [0], [0]>} : vector<2x8x8xf32>, vector<2x8x8xf32>, vector<2x8x8xf32> -> vector<2x8x8xf32>
    "tpu.trace_stop"() : () -> ()
    %258 = vector.shape_cast %13 : vector<8x8xf32> to vector<1x8x8xf32>
    %259 = vector.broadcast %258 : vector<1x8x8xf32> to vector<2x8x8xf32>
    %260 = arith.addf %257, %259 : vector<2x8x8xf32>
    %cst_148 = arith.constant dense<0xFF800000> : vector<2x8xf32>
    %261 = vector.multi_reduction <maximumf>, %260, %cst_148 [2] : vector<2x8x8xf32> to vector<2x8xf32>
    %262 = vector.shape_cast %261 : vector<2x8xf32> to vector<2x8x1xf32>
    %263 = vector.broadcast %262 : vector<2x8x1xf32> to vector<2x8x8xf32>
    %264 = arith.subf %260, %263 : vector<2x8x8xf32>
    %265 = math.exp %264 : vector<2x8x8xf32>
    %cst_149 = arith.constant dense<0.000000e+00> : vector<2x8xf32>
    %266 = vector.multi_reduction <add>, %265, %cst_149 [2] : vector<2x8x8xf32> to vector<2x8xf32>
    %267 = vector.shape_cast %266 : vector<2x8xf32> to vector<2x8x1xf32>
    %268 = tpu.reciprocal %267 : vector<2x8x1xf32> -> vector<2x8x1xf32>
    %269 = vector.broadcast %268 : vector<2x8x1xf32> to vector<2x8x8xf32>
    %270 = arith.mulf %265, %269 : vector<2x8x8xf32>
    %271 = vector.extract_strided_slice %236 {offsets = [0, 0, 8], sizes = [2, 8, 8], strides = [1, 1, 1]} : vector<2x8x32xf32> to vector<2x8x8xf32>
    "tpu.trace_start"() <{level = 10 : i32, message = "bqk,bkd->bqd"}> : () -> ()
    %cst_150 = arith.constant dense<0.000000e+00> : vector<2x8x8xf32>
    %272 = tpu.matmul %270, %271, %cst_150 {dimension_numbers = #tpu.dot_dimension_numbers<[2], [1], [1], [2], [0, 0, 0, 1, 1, 2], [0], [0]>} : vector<2x8x8xf32>, vector<2x8x8xf32>, vector<2x8x8xf32> -> vector<2x8x8xf32>
    "tpu.trace_stop"() : () -> ()
    %273 = vector.extract_strided_slice %234 {offsets = [0, 0, 16], sizes = [2, 8, 8], strides = [1, 1, 1]} : vector<2x8x32xf32> to vector<2x8x8xf32>
    %274 = vector.extract_strided_slice %235 {offsets = [0, 0, 16], sizes = [2, 8, 8], strides = [1, 1, 1]} : vector<2x8x32xf32> to vector<2x8x8xf32>
    "tpu.trace_start"() <{level = 10 : i32, message = "bqd,bkd->bqk"}> : () -> ()
    %cst_151 = arith.constant dense<0.000000e+00> : vector<2x8x8xf32>
    %275 = tpu.matmul %273, %274, %cst_151 {dimension_numbers = #tpu.dot_dimension_numbers<[2], [2], [1], [1], [0, 0, 0, 1, 1, 1], [0], [0]>} : vector<2x8x8xf32>, vector<2x8x8xf32>, vector<2x8x8xf32> -> vector<2x8x8xf32>
    "tpu.trace_stop"() : () -> ()
    %276 = vector.shape_cast %13 : vector<8x8xf32> to vector<1x8x8xf32>
    %277 = vector.broadcast %276 : vector<1x8x8xf32> to vector<2x8x8xf32>
    %278 = arith.addf %275, %277 : vector<2x8x8xf32>
    %cst_152 = arith.constant dense<0xFF800000> : vector<2x8xf32>
    %279 = vector.multi_reduction <maximumf>, %278, %cst_152 [2] : vector<2x8x8xf32> to vector<2x8xf32>
    %280 = vector.shape_cast %279 : vector<2x8xf32> to vector<2x8x1xf32>
    %281 = vector.broadcast %280 : vector<2x8x1xf32> to vector<2x8x8xf32>
    %282 = arith.subf %278, %281 : vector<2x8x8xf32>
    %283 = math.exp %282 : vector<2x8x8xf32>
    %cst_153 = arith.constant dense<0.000000e+00> : vector<2x8xf32>
    %284 = vector.multi_reduction <add>, %283, %cst_153 [2] : vector<2x8x8xf32> to vector<2x8xf32>
    %285 = vector.shape_cast %284 : vector<2x8xf32> to vector<2x8x1xf32>
    %286 = tpu.reciprocal %285 : vector<2x8x1xf32> -> vector<2x8x1xf32>
    %287 = vector.broadcast %286 : vector<2x8x1xf32> to vector<2x8x8xf32>
    %288 = arith.mulf %283, %287 : vector<2x8x8xf32>
    %289 = vector.extract_strided_slice %236 {offsets = [0, 0, 16], sizes = [2, 8, 8], strides = [1, 1, 1]} : vector<2x8x32xf32> to vector<2x8x8xf32>
    "tpu.trace_start"() <{level = 10 : i32, message = "bqk,bkd->bqd"}> : () -> ()
    %cst_154 = arith.constant dense<0.000000e+00> : vector<2x8x8xf32>
    %290 = tpu.matmul %288, %289, %cst_154 {dimension_numbers = #tpu.dot_dimension_numbers<[2], [1], [1], [2], [0, 0, 0, 1, 1, 2], [0], [0]>} : vector<2x8x8xf32>, vector<2x8x8xf32>, vector<2x8x8xf32> -> vector<2x8x8xf32>
    "tpu.trace_stop"() : () -> ()
    %291 = vector.extract_strided_slice %234 {offsets = [0, 0, 24], sizes = [2, 8, 8], strides = [1, 1, 1]} : vector<2x8x32xf32> to vector<2x8x8xf32>
    %292 = vector.extract_strided_slice %235 {offsets = [0, 0, 24], sizes = [2, 8, 8], strides = [1, 1, 1]} : vector<2x8x32xf32> to vector<2x8x8xf32>
    "tpu.trace_start"() <{level = 10 : i32, message = "bqd,bkd->bqk"}> : () -> ()
    %cst_155 = arith.constant dense<0.000000e+00> : vector<2x8x8xf32>
    %293 = tpu.matmul %291, %292, %cst_155 {dimension_numbers = #tpu.dot_dimension_numbers<[2], [2], [1], [1], [0, 0, 0, 1, 1, 1], [0], [0]>} : vector<2x8x8xf32>, vector<2x8x8xf32>, vector<2x8x8xf32> -> vector<2x8x8xf32>
    "tpu.trace_stop"() : () -> ()
    %294 = vector.shape_cast %13 : vector<8x8xf32> to vector<1x8x8xf32>
    %295 = vector.broadcast %294 : vector<1x8x8xf32> to vector<2x8x8xf32>
    %296 = arith.addf %293, %295 : vector<2x8x8xf32>
    %cst_156 = arith.constant dense<0xFF800000> : vector<2x8xf32>
    %297 = vector.multi_reduction <maximumf>, %296, %cst_156 [2] : vector<2x8x8xf32> to vector<2x8xf32>
    %298 = vector.shape_cast %297 : vector<2x8xf32> to vector<2x8x1xf32>
    %299 = vector.broadcast %298 : vector<2x8x1xf32> to vector<2x8x8xf32>
    %300 = arith.subf %296, %299 : vector<2x8x8xf32>
    %301 = math.exp %300 : vector<2x8x8xf32>
    %cst_157 = arith.constant dense<0.000000e+00> : vector<2x8xf32>
    %302 = vector.multi_reduction <add>, %301, %cst_157 [2] : vector<2x8x8xf32> to vector<2x8xf32>
    %303 = vector.shape_cast %302 : vector<2x8xf32> to vector<2x8x1xf32>
    %304 = tpu.reciprocal %303 : vector<2x8x1xf32> -> vector<2x8x1xf32>
    %305 = vector.broadcast %304 : vector<2x8x1xf32> to vector<2x8x8xf32>
    %306 = arith.mulf %301, %305 : vector<2x8x8xf32>
    %307 = vector.extract_strided_slice %236 {offsets = [0, 0, 24], sizes = [2, 8, 8], strides = [1, 1, 1]} : vector<2x8x32xf32> to vector<2x8x8xf32>
    "tpu.trace_start"() <{level = 10 : i32, message = "bqk,bkd->bqd"}> : () -> ()
    %cst_158 = arith.constant dense<0.000000e+00> : vector<2x8x8xf32>
    %308 = tpu.matmul %306, %307, %cst_158 {dimension_numbers = #tpu.dot_dimension_numbers<[2], [1], [1], [2], [0, 0, 0, 1, 1, 2], [0], [0]>} : vector<2x8x8xf32>, vector<2x8x8xf32>, vector<2x8x8xf32> -> vector<2x8x8xf32>
    "tpu.trace_stop"() : () -> ()
    %309 = tpu.concatenate %254, %272, %290, %308 in 2 : vector<2x8x8xf32>, vector<2x8x8xf32>, vector<2x8x8xf32>, vector<2x8x8xf32> -> vector<2x8x32xf32>
    %310 = vector.shape_cast %309 : vector<2x8x32xf32> to vector<16x32xf32>
    %cst_159 = arith.constant dense<0.000000e+00> : vector<16x32xf32>
    %311 = tpu.matmul %310, %204, %cst_159 {dimension_numbers = #tpu.dot_dimension_numbers<[1], [0], [0], [1], [0, 0, 1, 1], [], []>} : vector<16x32xf32>, vector<32x32xf32>, vector<16x32xf32> -> vector<16x32xf32>
    %312 = vector.broadcast %206 : vector<1x32xf32> to vector<16x32xf32>
    %313 = arith.addf %311, %312 : vector<16x32xf32>
    %314 = arith.addf %190, %313 : vector<16x32xf32>
    %cst_160 = arith.constant dense<0.000000e+00> : vector<16xf32>
    %315 = vector.multi_reduction <add>, %314, %cst_160 [1] : vector<16x32xf32> to vector<16xf32>
    %316 = vector.shape_cast %315 : vector<16xf32> to vector<16x1xf32>
    %cst_161 = arith.constant 3.200000e+01 : f32
    %317 = vector.broadcast %cst_161 : f32 to vector<16x1xf32>
    %318 = arith.divf %316, %317 : vector<16x1xf32>
    %319 = vector.broadcast %318 : vector<16x1xf32> to vector<16x32xf32>
    %320 = arith.subf %314, %319 : vector<16x32xf32>
    %321 = arith.mulf %320, %320 : vector<16x32xf32>
    %cst_162 = arith.constant dense<0.000000e+00> : vector<16xf32>
    %322 = vector.multi_reduction <add>, %321, %cst_162 [1] : vector<16x32xf32> to vector<16xf32>
    %323 = vector.shape_cast %322 : vector<16xf32> to vector<16x1xf32>
    %cst_163 = arith.constant 3.200000e+01 : f32
    %324 = vector.broadcast %cst_163 : f32 to vector<16x1xf32>
    %325 = arith.divf %323, %324 : vector<16x1xf32>
    %326 = vector.broadcast %318 : vector<16x1xf32> to vector<16x32xf32>
    %327 = arith.subf %314, %326 : vector<16x32xf32>
    %cst_164 = arith.constant 9.99999974E-6 : f32
    %328 = vector.broadcast %cst_164 : f32 to vector<16x1xf32>
    %329 = arith.addf %325, %328 : vector<16x1xf32>
    %330 = math.rsqrt %329 : vector<16x1xf32>
    %331 = vector.broadcast %330 : vector<16x1xf32> to vector<16x32xf32>
    %332 = arith.mulf %327, %331 : vector<16x32xf32>
    %333 = vector.broadcast %208 : vector<1x32xf32> to vector<16x32xf32>
    %334 = arith.mulf %332, %333 : vector<16x32xf32>
    %335 = vector.broadcast %210 : vector<1x32xf32> to vector<16x32xf32>
    %336 = arith.addf %334, %335 : vector<16x32xf32>
    %cst_165 = arith.constant dense<0.000000e+00> : vector<16x64xf32>
    %337 = tpu.matmul %336, %212, %cst_165 {dimension_numbers = #tpu.dot_dimension_numbers<[1], [0], [0], [1], [0, 0, 1, 1], [], []>} : vector<16x32xf32>, vector<32x64xf32>, vector<16x64xf32> -> vector<16x64xf32>
    %338 = vector.broadcast %214 : vector<1x64xf32> to vector<16x64xf32>
    %339 = arith.addf %337, %338 : vector<16x64xf32>
    %cst_166 = arith.constant 0.000000e+00 : f32
    %340 = vector.broadcast %cst_166 : f32 to vector<16x64xf32>
    %341 = arith.maximumf %339, %340 : vector<16x64xf32>
    %cst_167 = arith.constant dense<0.000000e+00> : vector<16x32xf32>
    %342 = tpu.matmul %341, %216, %cst_167 {dimension_numbers = #tpu.dot_dimension_numbers<[1], [0], [0], [1], [0, 0, 1, 1], [], []>} : vector<16x64xf32>, vector<64x32xf32>, vector<16x32xf32> -> vector<16x32xf32>
    %343 = vector.broadcast %218 : vector<1x32xf32> to vector<16x32xf32>
    %344 = arith.addf %342, %343 : vector<16x32xf32>
    %345 = arith.addf %336, %344 : vector<16x32xf32>
    %cst_168 = arith.constant dense<0.000000e+00> : vector<16xf32>
    %346 = vector.multi_reduction <add>, %345, %cst_168 [1] : vector<16x32xf32> to vector<16xf32>
    %347 = vector.shape_cast %346 : vector<16xf32> to vector<16x1xf32>
    %cst_169 = arith.constant 3.200000e+01 : f32
    %348 = vector.broadcast %cst_169 : f32 to vector<16x1xf32>
    %349 = arith.divf %347, %348 : vector<16x1xf32>
    %350 = vector.broadcast %349 : vector<16x1xf32> to vector<16x32xf32>
    %351 = arith.subf %345, %350 : vector<16x32xf32>
    %352 = arith.mulf %351, %351 : vector<16x32xf32>
    %cst_170 = arith.constant dense<0.000000e+00> : vector<16xf32>
    %353 = vector.multi_reduction <add>, %352, %cst_170 [1] : vector<16x32xf32> to vector<16xf32>
    %354 = vector.shape_cast %353 : vector<16xf32> to vector<16x1xf32>
    %cst_171 = arith.constant 3.200000e+01 : f32
    %355 = vector.broadcast %cst_171 : f32 to vector<16x1xf32>
    %356 = arith.divf %354, %355 : vector<16x1xf32>
    %357 = vector.broadcast %349 : vector<16x1xf32> to vector<16x32xf32>
    %358 = arith.subf %345, %357 : vector<16x32xf32>
    %cst_172 = arith.constant 9.99999974E-6 : f32
    %359 = vector.broadcast %cst_172 : f32 to vector<16x1xf32>
    %360 = arith.addf %356, %359 : vector<16x1xf32>
    %361 = math.rsqrt %360 : vector<16x1xf32>
    %362 = vector.broadcast %361 : vector<16x1xf32> to vector<16x32xf32>
    %363 = arith.mulf %358, %362 : vector<16x32xf32>
    %364 = vector.broadcast %220 : vector<1x32xf32> to vector<16x32xf32>
    %365 = arith.mulf %363, %364 : vector<16x32xf32>
    %366 = vector.broadcast %222 : vector<1x32xf32> to vector<16x32xf32>
    %367 = arith.addf %365, %366 : vector<16x32xf32>
    %c0_173 = arith.constant 0 : index
    %c0_174 = arith.constant 0 : index
    %368 = vector.load %arg22[%c0_173, %c0_174] : memref<32x128xf32, #tpu.memory_space<vmem>>, vector<32x128xf32>
    %c0_175 = arith.constant 0 : index
    %c0_176 = arith.constant 0 : index
    %369 = vector.load %arg23[%c0_175, %c0_176] : memref<1x128xf32, #tpu.memory_space<vmem>>, vector<1x128xf32>
    %cst_177 = arith.constant dense<0.000000e+00> : vector<16x128xf32>
    %370 = tpu.matmul %367, %368, %cst_177 {dimension_numbers = #tpu.dot_dimension_numbers<[1], [0], [0], [1], [0, 0, 1, 1], [], []>} : vector<16x32xf32>, vector<32x128xf32>, vector<16x128xf32> -> vector<16x128xf32>
    %371 = vector.broadcast %369 : vector<1x128xf32> to vector<16x128xf32>
    %372 = arith.addf %370, %371 : vector<16x128xf32>
    %373 = vector.shape_cast %372 : vector<16x128xf32> to vector<2x8x128xf32>
    %c0_178 = arith.constant 0 : index
    %c0_179 = arith.constant 0 : index
    %c0_180 = arith.constant 0 : index
    %374 = vector.load %arg24[%c0_178, %c0_179, %c0_180] : memref<2x8x128xf32, #tpu.memory_space<vmem>>, vector<2x8x128xf32>
    tpu.vector_store %arg24[%c0_178, %c0_179, %c0_180], %373 {strides = array<i32>} : memref<2x8x128xf32, #tpu.memory_space<vmem>>, vector<2x8x128xf32>,
    return
  }
  func.func @transform_0(%arg0: i32) -> (i32, i32, i32) {
    %c0_i32 = arith.constant 0 : i32
    %c0_i32_0 = arith.constant 0 : i32
    %c0_i32_1 = arith.constant 0 : i32
    return %arg0, %c0_i32, %c0_i32_0 : i32, i32, i32
  }
  func.func @transform_1(%arg0: i32) -> (i32, i32) {
    %c0_i32 = arith.constant 0 : i32
    %c0_i32_0 = arith.constant 0 : i32
    %c0_i32_1 = arith.constant 0 : i32
    return %c0_i32, %c0_i32_0 : i32, i32
  }
  func.func @transform_2(%arg0: i32) -> (i32, i32) {
    %c0_i32 = arith.constant 0 : i32
    %c0_i32_0 = arith.constant 0 : i32
    %c0_i32_1 = arith.constant 0 : i32
    return %c0_i32, %c0_i32_0 : i32, i32
  }
  func.func @transform_3(%arg0: i32) -> (i32, i32) {
    %c0_i32 = arith.constant 0 : i32
    %c0_i32_0 = arith.constant 0 : i32
    %c0_i32_1 = arith.constant 0 : i32
    return %c0_i32, %c0_i32_0 : i32, i32
  }
  func.func @transform_4(%arg0: i32) -> (i32, i32) {
    %c0_i32 = arith.constant 0 : i32
    %c0_i32_0 = arith.constant 0 : i32
    %c0_i32_1 = arith.constant 0 : i32
    return %c0_i32, %c0_i32_0 : i32, i32
  }
  func.func @transform_5(%arg0: i32) -> (i32, i32, i32) {
    %c0_i32 = arith.constant 0 : i32
    %c0_i32_0 = arith.constant 0 : i32
    %c0_i32_1 = arith.constant 0 : i32
    %c0_i32_2 = arith.constant 0 : i32
    return %c0_i32, %c0_i32_0, %c0_i32_1 : i32, i32, i32
  }
  func.func @transform_6(%arg0: i32) -> (i32, i32, i32) {
    %c0_i32 = arith.constant 0 : i32
    %c0_i32_0 = arith.constant 0 : i32
    %c0_i32_1 = arith.constant 0 : i32
    %c0_i32_2 = arith.constant 0 : i32
    return %c0_i32, %c0_i32_0, %c0_i32_1 : i32, i32, i32
  }
  func.func @transform_7(%arg0: i32) -> (i32, i32, i32) {
    %c0_i32 = arith.constant 0 : i32
    %c0_i32_0 = arith.constant 0 : i32
    %c0_i32_1 = arith.constant 0 : i32
    %c0_i32_2 = arith.constant 0 : i32
    return %c0_i32, %c0_i32_0, %c0_i32_1 : i32, i32, i32
  }
  func.func @transform_8(%arg0: i32) -> (i32, i32, i32) {
    %c0_i32 = arith.constant 0 : i32
    %c0_i32_0 = arith.constant 0 : i32
    %c0_i32_1 = arith.constant 0 : i32
    %c0_i32_2 = arith.constant 0 : i32
    return %c0_i32, %c0_i32_0, %c0_i32_1 : i32, i32, i32
  }
  func.func @transform_9(%arg0: i32) -> (i32, i32, i32) {
    %c0_i32 = arith.constant 0 : i32
    %c0_i32_0 = arith.constant 0 : i32
    %c0_i32_1 = arith.constant 0 : i32
    %c0_i32_2 = arith.constant 0 : i32
    return %c0_i32, %c0_i32_0, %c0_i32_1 : i32, i32, i32
  }
  func.func @transform_10(%arg0: i32) -> (i32, i32, i32) {
    %c0_i32 = arith.constant 0 : i32
    %c0_i32_0 = arith.constant 0 : i32
    %c0_i32_1 = arith.constant 0 : i32
    %c0_i32_2 = arith.constant 0 : i32
    return %c0_i32, %c0_i32_0, %c0_i32_1 : i32, i32, i32
  }
  func.func @transform_11(%arg0: i32) -> (i32, i32, i32) {
    %c0_i32 = arith.constant 0 : i32
    %c0_i32_0 = arith.constant 0 : i32
    %c0_i32_1 = arith.constant 0 : i32
    %c0_i32_2 = arith.constant 0 : i32
    return %c0_i32, %c0_i32_0, %c0_i32_1 : i32, i32, i32
  }
  func.func @transform_12(%arg0: i32) -> (i32, i32, i32) {
    %c0_i32 = arith.constant 0 : i32
    %c0_i32_0 = arith.constant 0 : i32
    %c0_i32_1 = arith.constant 0 : i32
    %c0_i32_2 = arith.constant 0 : i32
    return %c0_i32, %c0_i32_0, %c0_i32_1 : i32, i32, i32
  }
  func.func @transform_13(%arg0: i32) -> (i32, i32, i32) {
    %c0_i32 = arith.constant 0 : i32
    %c0_i32_0 = arith.constant 0 : i32
    %c0_i32_1 = arith.constant 0 : i32
    %c0_i32_2 = arith.constant 0 : i32
    return %c0_i32, %c0_i32_0, %c0_i32_1 : i32, i32, i32
  }
  func.func @transform_14(%arg0: i32) -> (i32, i32, i32) {
    %c0_i32 = arith.constant 0 : i32
    %c0_i32_0 = arith.constant 0 : i32
    %c0_i32_1 = arith.constant 0 : i32
    %c0_i32_2 = arith.constant 0 : i32
    return %c0_i32, %c0_i32_0, %c0_i32_1 : i32, i32, i32
  }
  func.func @transform_15(%arg0: i32) -> (i32, i32, i32) {
    %c0_i32 = arith.constant 0 : i32
    %c0_i32_0 = arith.constant 0 : i32
    %c0_i32_1 = arith.constant 0 : i32
    %c0_i32_2 = arith.constant 0 : i32
    return %c0_i32, %c0_i32_0, %c0_i32_1 : i32, i32, i32
  }
  func.func @transform_16(%arg0: i32) -> (i32, i32, i32) {
    %c0_i32 = arith.constant 0 : i32
    %c0_i32_0 = arith.constant 0 : i32
    %c0_i32_1 = arith.constant 0 : i32
    %c0_i32_2 = arith.constant 0 : i32
    return %c0_i32, %c0_i32_0, %c0_i32_1 : i32, i32, i32
  }
  func.func @transform_17(%arg0: i32) -> (i32, i32, i32) {
    %c0_i32 = arith.constant 0 : i32
    %c0_i32_0 = arith.constant 0 : i32
    %c0_i32_1 = arith.constant 0 : i32
    %c0_i32_2 = arith.constant 0 : i32
    return %c0_i32, %c0_i32_0, %c0_i32_1 : i32, i32, i32
  }
  func.func @transform_18(%arg0: i32) -> (i32, i32, i32) {
    %c0_i32 = arith.constant 0 : i32
    %c0_i32_0 = arith.constant 0 : i32
    %c0_i32_1 = arith.constant 0 : i32
    %c0_i32_2 = arith.constant 0 : i32
    return %c0_i32, %c0_i32_0, %c0_i32_1 : i32, i32, i32
  }
  func.func @transform_19(%arg0: i32) -> (i32, i32, i32) {
    %c0_i32 = arith.constant 0 : i32
    %c0_i32_0 = arith.constant 0 : i32
    %c0_i32_1 = arith.constant 0 : i32
    %c0_i32_2 = arith.constant 0 : i32
    return %c0_i32, %c0_i32_0, %c0_i32_1 : i32, i32, i32
  }
  func.func @transform_20(%arg0: i32) -> (i32, i32, i32) {
    %c0_i32 = arith.constant 0 : i32
    %c0_i32_0 = arith.constant 0 : i32
    %c0_i32_1 = arith.constant 0 : i32
    %c0_i32_2 = arith.constant 0 : i32
    return %c0_i32, %c0_i32_0, %c0_i32_1 : i32, i32, i32
  }
  func.func @transform_21(%arg0: i32) -> (i32, i32) {
    %c0_i32 = arith.constant 0 : i32
    %c0_i32_0 = arith.constant 0 : i32
    %c0_i32_1 = arith.constant 0 : i32
    return %c0_i32, %c0_i32_0 : i32, i32
  }
  func.func @transform_22(%arg0: i32) -> (i32, i32) {
    %c0_i32 = arith.constant 0 : i32
    %c0_i32_0 = arith.constant 0 : i32
    %c0_i32_1 = arith.constant 0 : i32
    return %c0_i32, %c0_i32_0 : i32, i32
  }
  func.func @transform_23(%arg0: i32) -> (i32, i32, i32) {
    %c0_i32 = arith.constant 0 : i32
    %c0_i32_0 = arith.constant 0 : i32
    %c0_i32_1 = arith.constant 0 : i32
    return %arg0, %c0_i32, %c0_i32_0 : i32, i32, i32
  }
}

</mosaic_0001>

<bundles_post_ra>
// kernel: tpu_custom_call.1
= control target key start
LH: loop header
LB: loop body
LE: loop exit
PB: predicated region body
PF: predicated region fallthrough
CT: control target
= control target key end

     0   :  { %s6612_s0 = inlined_call_operand.hbm [shape: f32[2,8,16], index: 0, kind: input, shape index: {}]   ;;  %s6613_s1 = inlined_call_operand.hbm [shape: f32[8,32], index: 1, kind: input, shape index: {}]   ;;  %s6614_s2 = inlined_call_operand.hbm [shape: f32[8,8], index: 2, kind: input, shape index: {}]   ;;  %s6615_s3 = inlined_call_operand.hbm [shape: f32[16,32], index: 3, kind: input, shape index: {}]   ;;  %s6616_s4 = inlined_call_operand.hbm [shape: f32[1,32], index: 4, kind: input, shape index: {}]   ;;  %s6617_s5 = inlined_call_operand.vmem [shape: f32[2,32,32], index: 5, kind: input, shape index: {}]   ;;  %s6618_s6 = inlined_call_operand.hbm [shape: f32[2,1,32], index: 6, kind: input, shape index: {}]   ;;  %s6619_s7 = inlined_call_operand.vmem [shape: f32[2,32,32], index: 7, kind: input, shape index: {}]   ;;  %s6620_s8 = inlined_call_operand.hbm [shape: f32[2,1,32], index: 8, kind: input, shape index: {}]   ;;  %s6621_s9 = inlined_call_operand.vmem [shape: f32[2,32,32], index: 9, kind: input, shape index: {}]   ;;  %s6622_s10 = inlined_call_operand.hbm [shape: f32[2,1,32], index: 10, kind: input, shape index: {}]   ;;  %s6623_s11 = inlined_call_operand.hbm [shape: f32[2,32,32], index: 11, kind: input, shape index: {}]   ;;  %s6624_s12 = inlined_call_operand.hbm [shape: f32[2,1,32], index: 12, kind: input, shape index: {}]   ;;  %s6625_s13 = inlined_call_operand.hbm [shape: f32[2,1,32], index: 13, kind: input, shape index: {}]   ;;  %s6626_s14 = inlined_call_operand.hbm [shape: f32[2,1,32], index: 14, kind: input, shape index: {}]   ;;  %s6627_s15 = inlined_call_operand.hbm [shape: f32[2,32,64], index: 15, kind: input, shape index: {}]   ;;  %s6628_s16 = inlined_call_operand.hbm [shape: f32[2,1,64], index: 16, kind: input, shape index: {}]   ;;  %s6629_s17 = inlined_call_operand.vmem [shape: f32[2,64,32], index: 17, kind: input, shape index: {}]   ;;  %s6630_s18 = inlined_call_operand.vmem [shape: f32[2,1,32], index: 18, kind: input, shape index: {}]   ;;  %s6631_s19 = inlined_call_operand.vmem [shape: f32[2,1,32], index: 19, kind: input, shape index: {}]   ;;  %s6632_s20 = inlined_call_operand.vmem [shape: f32[2,1,32], index: 20, kind: input, shape index: {}]   ;;  %s6633_s21 = inlined_call_operand.hbm [shape: f32[32,128], index: 21, kind: input, shape index: {}]   ;;  %s6634_s22 = inlined_call_operand.vmem [shape: f32[1,128], index: 22, kind: input, shape index: {}]   ;;  %s6635_s23 = inlined_call_operand.hbm [shape: f32[2,8,128], index: 23, kind: output, shape index: {}]  }
   0x1   :  { %6649 = sst [smem:[#allocation36_spill]] %s6612_s0 }
   0x2   :  { %6650 = sst [smem:[#allocation37_spill]] %s6613_s1 }
   0x3   :  { %6651 = sst [smem:[#allocation38_spill]] %s6614_s2 }
   0x4   :  { %6652 = sst [smem:[#allocation39_spill]] %s6615_s3 }
   0x5   :  { %6653 = sst [smem:[#allocation40_spill]] %s6616_s4 }
   0x6   :  { %6654 = sst [smem:[#allocation41_spill]] %s6617_s5 }
   0x7   :  { %6655 = sst [smem:[#allocation42_spill]] %s6618_s6 }
   0x8   :  { %6656 = sst [smem:[#allocation43_spill]] %s6619_s7 }
   0x9   :  { %6657 = sst [smem:[#allocation44_spill]] %s6634_s22 }
   0xa   :  { %6658 = sst [smem:[#allocation45_spill]] %s6635_s23 }
   0xb   :  { %28 = vsyncpa [#allocation3], 0 }
   0xc   :  { %29 = vsyncpa [#allocation6], 0 }
   0xd   :  { %30 = vsyncpa [#allocation9], 0 }
   0xe   :  { %31 = vsyncpa [#allocation12], 0 }
   0xf   :  { %32 = vsyncpa [#allocation15], 0 }
  0x10   :  { %33 = vsyncpa [#allocation18], 0 }
  0x11   :  { %34 = vsyncpa [#allocation21], 0 }
  0x12   :  { %35 = vsyncpa [#allocation24], 0 }
  0x13   :  { %36 = vsyncpa [#allocation4], 0  ;;  %s5674_s4 = smov [#allocation5]   ;;  %s6659_s5 = sld [smem:[#allocation37_spill]] }
  0x14   :  { %s55_s30 = sshll.u32 %s5674_s4, 4  ;;  %s56_s30 = int_to_ptr.vmem [resolvable:$true] %s55_s30 }
  0x19   :  { %s5304_s1 = scalar_lea.hbm %s6659_s5, 128 }
  0x1a   :  { %p5305_p0 = scmp.ne.s32.totalorder %s6659_s5, %s5304_s1  ;;  %p5308_p1 = scmp.lt.u32.totalorder %s5304_s1, %s6659_s5 }
  0x1c   :  { %p5310_p2 = pnand %p5308_p1, %p5305_p0 }
  0x1e   :  { %5313 = shalt.err (!%p5310_p2)
}
  0x1f   :  { %s5314_s7 = scalar_lea.vmem %s56_s30, 128  ;;  %p5319_p4 = scmp.lt.s32.totalorder %s56_s30, %s56_s30 }
  0x20   :  { %p5315_p3 = scmp.ne.s32.totalorder %s56_s30, %s5314_s7  ;;  %p5320_p5 = scmp.lt.s32.totalorder %s5314_s7, %s5314_s7 }
  0x22   :  { %p5321_p6 = por %p5320_p5, %p5319_p4 }
  0x24   :  { %p5322_p7 = pnand %p5321_p6, %p5315_p3 }
  0x26   :  { %5325 = shalt.err (!%p5322_p7)
}
  0x27   :  { %58 = dma.hbm_to_vmem [thread:$0]  %s6659_s5, 128, %s56_s30, [#allocation6]  }
  0x28   :  { %s5675_s3 = smov [#allocation8]   ;;  %s5676_s4 = smov [#allocation11]  }
  0x29   :  { %s74_s0 = sshll.u32 %s5675_s3, 4  ;;  %s98_s24 = sshll.u32 %s5676_s4, 4  ;;  %s75_s0 = int_to_ptr.vmem [resolvable:$true] %s74_s0  ;;  %s99_s24 = int_to_ptr.vmem [resolvable:$true] %s98_s24 }
  0x2a   :  { %s6660_s26 = sld [smem:[#allocation39_spill]] }
  0x30   :  { %s5326_s2 = scalar_lea.hbm %s6660_s26, 256 }
  0x31   :  { %p5327_p8 = scmp.ne.s32.totalorder %s6660_s26, %s5326_s2  ;;  %p5330_p9 = scmp.lt.u32.totalorder %s5326_s2, %s6660_s26 }
  0x33   :  { %p5332_p10 = pnand %p5330_p9, %p5327_p8 }
  0x35   :  { %5335 = shalt.err (!%p5332_p10)
}
  0x36   :  { %s5336_s30 = scalar_lea.vmem %s75_s0, 256  ;;  %p5341_p12 = scmp.lt.s32.totalorder %s75_s0, %s75_s0 }
  0x37   :  { %p5337_p11 = scmp.ne.s32.totalorder %s75_s0, %s5336_s30  ;;  %p5342_p13 = scmp.lt.s32.totalorder %s5336_s30, %s5336_s30 }
  0x39   :  { %p5343_p0 = por %p5342_p13, %p5341_p12 }
  0x3b   :  { %p5344_p1 = pnand %p5343_p0, %p5337_p11 }
  0x3d   :  { %5347 = shalt.err (!%p5344_p1)
}
  0x3e   :  { %s6645_s5 = smov 128   ;;  %s6647_s28 = smov 8  }
  0x3f   :  { %80 = dma.hbm_to_vmem [thread:$0]  %s6660_s26, 256, %s75_s0, [#allocation9], %s6645_s5, %s6645_s5, %s6647_s28  }
  0x40   :  { %s6661_s25 = sld [smem:[#allocation42_spill]] }
  0x46   :  { %s5348_s1 = scalar_lea.hbm %s6661_s25, 32 }
  0x47   :  { %p5349_p2 = scmp.ne.s32.totalorder %s6661_s25, %s5348_s1  ;;  %p5352_p3 = scmp.lt.u32.totalorder %s5348_s1, %s6661_s25 }
  0x49   :  { %p5354_p4 = pnand %p5352_p3, %p5349_p2 }
  0x4b   :  { %5357 = shalt.err (!%p5354_p4)
}
  0x4c   :  { %s5358_s30 = scalar_lea.vmem %s99_s24, 32  ;;  %p5363_p6 = scmp.lt.s32.totalorder %s99_s24, %s99_s24 }
  0x4d   :  { %p5359_p5 = scmp.ne.s32.totalorder %s99_s24, %s5358_s30  ;;  %p5364_p7 = scmp.lt.s32.totalorder %s5358_s30, %s5358_s30 }
  0x4f   :  { %p5365_p8 = por %p5364_p7, %p5363_p6 }
  0x51   :  { %p5366_p9 = pnand %p5365_p8, %p5359_p5 }
  0x53   :  { %5369 = shalt.err (!%p5366_p9)
}
  0x54   :  { %s5679_s0 = smov 16   ;;  %s5680_s26 = smov 1  }
  0x55   :  { %104 = dma.hbm_to_vmem [thread:$0]  %s6661_s25, 32, %s99_s24, [#allocation12], %s5679_s0, %s5679_s0, %s5680_s26  }
  0x56   :  { %s5681_s23 = smov [#allocation14]   ;;  %s5682_s1 = smov [#allocation17]  }
  0x57   :  { %s126_s4 = sshll.u32 %s5681_s23, 4  ;;  %s150_s2 = sshll.u32 %s5682_s1, 4  ;;  %s127_s4 = int_to_ptr.vmem [resolvable:$true] %s126_s4  ;;  %s151_s2 = int_to_ptr.vmem [resolvable:$true] %s150_s2 }
  0x58   :  { %s5370_s7 = scalar_lea.hbm %s6622_s10, 32 }
  0x59   :  { %p5371_p10 = scmp.ne.s32.totalorder %s6622_s10, %s5370_s7  ;;  %p5374_p11 = scmp.lt.u32.totalorder %s5370_s7, %s6622_s10 }
  0x5b   :  { %p5376_p12 = pnand %p5374_p11, %p5371_p10 }
  0x5d   :  { %5379 = shalt.err (!%p5376_p12)
}
  0x5e   :  { %s5380_s24 = scalar_lea.vmem %s127_s4, 32  ;;  %p5385_p0 = scmp.lt.s32.totalorder %s127_s4, %s127_s4 }
  0x5f   :  { %p5381_p13 = scmp.ne.s32.totalorder %s127_s4, %s5380_s24  ;;  %p5386_p1 = scmp.lt.s32.totalorder %s5380_s24, %s5380_s24 }
  0x61   :  { %p5387_p2 = por %p5386_p1, %p5385_p0 }
  0x63   :  { %p5388_p3 = pnand %p5387_p2, %p5381_p13 }
  0x65   :  { %5391 = shalt.err (!%p5388_p3)
}
  0x66   :  { %132 = dma.hbm_to_vmem [thread:$0]  %s6622_s10, 32, %s127_s4, [#allocation15], %s5679_s0, %s5679_s0, %s5680_s26  }
  0x67   :  { %s5392_s28 = scalar_lea.hbm %s6624_s12, 32 }
  0x68   :  { %p5393_p4 = scmp.ne.s32.totalorder %s6624_s12, %s5392_s28  ;;  %p5396_p5 = scmp.lt.u32.totalorder %s5392_s28, %s6624_s12 }
  0x6a   :  { %p5398_p6 = pnand %p5396_p5, %p5393_p4 }
  0x6c   :  { %5401 = shalt.err (!%p5398_p6)
}
  0x6d   :  { %s5402_s27 = scalar_lea.vmem %s151_s2, 32  ;;  %p5407_p8 = scmp.lt.s32.totalorder %s151_s2, %s151_s2 }
  0x6e   :  { %p5403_p7 = scmp.ne.s32.totalorder %s151_s2, %s5402_s27  ;;  %p5408_p9 = scmp.lt.s32.totalorder %s5402_s27, %s5402_s27 }
  0x70   :  { %p5409_p10 = por %p5408_p9, %p5407_p8 }
  0x72   :  { %p5410_p11 = pnand %p5409_p10, %p5403_p7 }
  0x74   :  { %5413 = shalt.err (!%p5410_p11)
}
  0x75   :  { %156 = dma.hbm_to_vmem [thread:$0]  %s6624_s12, 32, %s151_s2, [#allocation18], %s5679_s0, %s5679_s0, %s5680_s26  }
  0x76   :  { %s5683_s7 = smov [#allocation20]   ;;  %s5684_s24 = smov [#allocation23]  }
  0x77   :  { %s174_s30 = sshll.u32 %s5683_s7, 4  ;;  %s198_s25 = sshll.u32 %s5684_s24, 4  ;;  %s175_s30 = int_to_ptr.vmem [resolvable:$true] %s174_s30  ;;  %s199_s25 = int_to_ptr.vmem [resolvable:$true] %s198_s25 }
  0x78   :  { %s5414_s22 = scalar_lea.hbm %s6626_s14, 32 }
  0x79   :  { %p5415_p12 = scmp.ne.s32.totalorder %s6626_s14, %s5414_s22  ;;  %p5418_p13 = scmp.lt.u32.totalorder %s5414_s22, %s6626_s14 }
  0x7b   :  { %p5420_p0 = pnand %p5418_p13, %p5415_p12 }
  0x7d   :  { %5423 = shalt.err (!%p5420_p0)
}
  0x7e   :  { %s5424_s12 = scalar_lea.vmem %s175_s30, 32  ;;  %p5429_p2 = scmp.lt.s32.totalorder %s175_s30, %s175_s30 }
  0x7f   :  { %p5425_p1 = scmp.ne.s32.totalorder %s175_s30, %s5424_s12  ;;  %p5430_p3 = scmp.lt.s32.totalorder %s5424_s12, %s5424_s12 }
  0x81   :  { %p5431_p4 = por %p5430_p3, %p5429_p2 }
  0x83   :  { %p5432_p5 = pnand %p5431_p4, %p5425_p1 }
  0x85   :  { %5435 = shalt.err (!%p5432_p5)
}
  0x86   :  { %180 = dma.hbm_to_vmem [thread:$0]  %s6626_s14, 32, %s175_s30, [#allocation21], %s5679_s0, %s5679_s0, %s5680_s26  }
  0x87   :  { %s5436_s4 = scalar_lea.hbm %s6628_s16, 32 }
  0x88   :  { %p5437_p6 = scmp.ne.s32.totalorder %s6628_s16, %s5436_s4  ;;  %p5440_p7 = scmp.lt.u32.totalorder %s5436_s4, %s6628_s16 }
  0x8a   :  { %p5442_p8 = pnand %p5440_p7, %p5437_p6 }
  0x8c   :  { %5445 = shalt.err (!%p5442_p8)
}
  0x8d   :  { %s5446_s22 = scalar_lea.vmem %s199_s25, 32  ;;  %p5451_p10 = scmp.lt.s32.totalorder %s199_s25, %s199_s25 }
  0x8e   :  { %p5447_p9 = scmp.ne.s32.totalorder %s199_s25, %s5446_s22  ;;  %p5452_p11 = scmp.lt.s32.totalorder %s5446_s22, %s5446_s22 }
  0x90   :  { %p5453_p12 = por %p5452_p11, %p5451_p10 }
  0x92   :  { %p5454_p13 = pnand %p5453_p12, %p5447_p9 }
  0x94   :  { %5457 = shalt.err (!%p5454_p13)
}
  0x95   :  { %204 = dma.hbm_to_vmem [thread:$0]  %s6628_s16, 32, %s199_s25, [#allocation24], %s5679_s0, %s5679_s0, %s5680_s26  }
  0x96   :  { %s5685_s28 = smov [#allocation2]   ;;  %s5686_s23 = smov [#allocation7]  }
  0x97   :  { %s42_s3 = sshll.u32 %s5685_s28, 4  ;;  %s65_s1 = sshll.u32 %s5686_s23, 4  ;;  %s43_s3 = int_to_ptr.vmem [resolvable:$true] %s42_s3  ;;  %s66_s1 = int_to_ptr.vmem [resolvable:$true] %s65_s1 }
  0x98   :  { %s6662_s6 = sld [smem:[#allocation36_spill]] }
  0x9e   :  { %s5458_s27 = scalar_lea.hbm %s6662_s6, 256 }
  0x9f   :  { %p5459_p0 = scmp.ne.s32.totalorder %s6662_s6, %s5458_s27  ;;  %p5462_p1 = scmp.lt.u32.totalorder %s5458_s27, %s6662_s6 }
  0xa1   :  { %p5464_p2 = pnand %p5462_p1, %p5459_p0 }
  0xa3   :  { %5467 = shalt.err (!%p5464_p2)
}
  0xa4   :  { %s5468_s16 = scalar_lea.vmem %s43_s3, 256  ;;  %p5473_p4 = scmp.lt.s32.totalorder %s43_s3, %s43_s3 }
  0xa5   :  { %p5469_p3 = scmp.ne.s32.totalorder %s43_s3, %s5468_s16  ;;  %p5474_p5 = scmp.lt.s32.totalorder %s5468_s16, %s5468_s16 }
  0xa7   :  { %p5475_p6 = por %p5474_p5, %p5473_p4 }
  0xa9   :  { %p5476_p7 = pnand %p5475_p6, %p5469_p3 }
  0xab   :  { %5479 = shalt.err (!%p5476_p7)
}
  0xac   :  { %s6663_s25 = smov 8   ;;  %s6664_s29 = smov 128  }
  0xad   :  { %48 = dma.hbm_to_vmem [thread:$0]  %s6662_s6, 256, %s43_s3, [#allocation3], %s6664_s29, %s6664_s29, %s6663_s25  }
  0xae   :  { %s6665_s28 = sld [smem:[#allocation38_spill]] }
  0xb4   :  { %s5480_s23 = scalar_lea.hbm %s6665_s28, 128 }
  0xb5   :  { %p5481_p8 = scmp.ne.s32.totalorder %s6665_s28, %s5480_s23  ;;  %p5484_p9 = scmp.lt.u32.totalorder %s5480_s23, %s6665_s28 }
  0xb7   :  { %p5486_p10 = pnand %p5484_p9, %p5481_p8 }
  0xb9   :  { %5489 = shalt.err (!%p5486_p10)
}
  0xba   :  { %s5490_s4 = scalar_lea.vmem %s66_s1, 128  ;;  %p5495_p12 = scmp.lt.s32.totalorder %s66_s1, %s66_s1 }
  0xbb   :  { %p5491_p11 = scmp.ne.s32.totalorder %s66_s1, %s5490_s4  ;;  %p5496_p13 = scmp.lt.s32.totalorder %s5490_s4, %s5490_s4 }
  0xbd   :  { %p5497_p0 = por %p5496_p13, %p5495_p12 }
  0xbf   :  { %p5498_p1 = pnand %p5497_p0, %p5491_p11 }
  0xc1   :  { %5501 = shalt.err (!%p5498_p1)
}
  0xc2   :  { %68 = dma.hbm_to_vmem [thread:$0]  %s6665_s28, 128, %s66_s1, [#allocation6]  }
  0xc3   :  { %s5687_s7 = smov [#allocation10]   ;;  %s5688_s16 = smov [#allocation13]  }
  0xc4   :  { %s87_s24 = sshll.u32 %s5687_s7, 4  ;;  %s112_s5 = sshll.u32 %s5688_s16, 4  ;;  %s88_s24 = int_to_ptr.vmem [resolvable:$true] %s87_s24  ;;  %s113_s5 = int_to_ptr.vmem [resolvable:$true] %s112_s5 }
  0xc5   :  { %s6666_s30 = sld [smem:[#allocation40_spill]] }
  0xcb   :  { %s5502_s23 = scalar_lea.hbm %s6666_s30, 16 }
  0xcc   :  { %p5503_p2 = scmp.ne.s32.totalorder %s6666_s30, %s5502_s23  ;;  %p5506_p3 = scmp.lt.u32.totalorder %s5502_s23, %s6666_s30 }
  0xce   :  { %p5508_p4 = pnand %p5506_p3, %p5503_p2 }
  0xd0   :  { %5511 = shalt.err (!%p5508_p4)
}
  0xd1   :  { %s5512_s1 = scalar_lea.vmem %s88_s24, 16  ;;  %s5516_s28 = scalar_lea.vmem %s88_s24, 32 }
  0xd2   :  { %p5513_p5 = scmp.ne.s32.totalorder %s88_s24, %s5512_s1  ;;  %p5517_p6 = scmp.lt.s32.totalorder %s88_s24, %s88_s24 }
  0xd3   :  { %p5518_p7 = scmp.lt.s32.totalorder %s5516_s28, %s5512_s1 }
  0xd5   :  { %p5519_p8 = por %p5518_p7, %p5517_p6 }
  0xd7   :  { %p5520_p9 = pnand %p5519_p8, %p5513_p5 }
  0xd9   :  { %5523 = shalt.err (!%p5520_p9)
}
  0xda   :  { %90 = dma.hbm_to_vmem [thread:$0]  %s6666_s30, 16, %s88_s24, [#allocation9]  }
  0xdb   :  { %s5524_s16 = scalar_lea.hbm %s6620_s8, 32 }
  0xdc   :  { %p5525_p10 = scmp.ne.s32.totalorder %s6620_s8, %s5524_s16  ;;  %p5528_p11 = scmp.lt.u32.totalorder %s5524_s16, %s6620_s8 }
  0xde   :  { %p5530_p12 = pnand %p5528_p11, %p5525_p10 }
  0xe0   :  { %5533 = shalt.err (!%p5530_p12)
}
  0xe1   :  { %s5534_s2 = scalar_lea.vmem %s113_s5, 32  ;;  %p5539_p0 = scmp.lt.s32.totalorder %s113_s5, %s113_s5 }
  0xe2   :  { %p5535_p13 = scmp.ne.s32.totalorder %s113_s5, %s5534_s2  ;;  %p5540_p1 = scmp.lt.s32.totalorder %s5534_s2, %s5534_s2 }
  0xe4   :  { %p5541_p2 = por %p5540_p1, %p5539_p0 }
  0xe6   :  { %p5542_p3 = pnand %p5541_p2, %p5535_p13 }
  0xe8   :  { %5545 = shalt.err (!%p5542_p3)
}
  0xe9   :  { %118 = dma.hbm_to_vmem [thread:$0]  %s6620_s8, 32, %s113_s5, [#allocation12], %s5679_s0, %s5679_s0, %s5680_s26  }
  0xea   :  { %s5689_s27 = smov [#allocation16]   ;;  %s5690_s1 = smov [#allocation19]  }
  0xeb   :  { %s138_s10 = sshll.u32 %s5689_s27, 4  ;;  %s162_s28 = sshll.u32 %s5690_s1, 4  ;;  %s139_s10 = int_to_ptr.vmem [resolvable:$true] %s138_s10  ;;  %s163_s28 = int_to_ptr.vmem [resolvable:$true] %s162_s28 }
  0xec   :  { %s5546_s6 = scalar_lea.hbm %s6623_s11, 1024 }
  0xed   :  { %p5547_p4 = scmp.ne.s32.totalorder %s6623_s11, %s5546_s6  ;;  %p5550_p5 = scmp.lt.u32.totalorder %s5546_s6, %s6623_s11 }
  0xef   :  { %p5552_p6 = pnand %p5550_p5, %p5547_p4 }
  0xf1   :  { %5555 = shalt.err (!%p5552_p6)
}
  0xf2   :  { %s5556_s8 = scalar_lea.vmem %s139_s10, 1024  ;;  %p5561_p8 = scmp.lt.s32.totalorder %s139_s10, %s139_s10 }
  0xf3   :  { %p5557_p7 = scmp.ne.s32.totalorder %s139_s10, %s5556_s8  ;;  %p5562_p9 = scmp.lt.s32.totalorder %s5556_s8, %s5556_s8 }
  0xf5   :  { %p5563_p10 = por %p5562_p9, %p5561_p8 }
  0xf7   :  { %p5564_p11 = pnand %p5563_p10, %p5557_p7 }
  0xf9   :  { %5567 = shalt.err (!%p5564_p11)
}
  0xfa   :  { %144 = dma.hbm_to_vmem [thread:$0]  %s6623_s11, 1024, %s139_s10, [#allocation15], %s6664_s29, %s6664_s29, %s6663_s25  }
  0xfb   :  { %s5568_s24 = scalar_lea.hbm %s6625_s13, 32 }
  0xfc   :  { %p5569_p12 = scmp.ne.s32.totalorder %s6625_s13, %s5568_s24  ;;  %p5572_p13 = scmp.lt.u32.totalorder %s5568_s24, %s6625_s13 }
  0xfe   :  { %p5574_p0 = pnand %p5572_p13, %p5569_p12 }
 0x100   :  { %5577 = shalt.err (!%p5574_p0)
}
 0x101   :  { %s5578_s3 = scalar_lea.vmem %s163_s28, 32  ;;  %p5583_p2 = scmp.lt.s32.totalorder %s163_s28, %s163_s28 }
 0x102   :  { %p5579_p1 = scmp.ne.s32.totalorder %s163_s28, %s5578_s3  ;;  %p5584_p3 = scmp.lt.s32.totalorder %s5578_s3, %s5578_s3 }
 0x104   :  { %p5585_p4 = por %p5584_p3, %p5583_p2 }
 0x106   :  { %p5586_p5 = pnand %p5585_p4, %p5579_p1 }
 0x108   :  { %5589 = shalt.err (!%p5586_p5)
}
 0x109   :  { %168 = dma.hbm_to_vmem [thread:$0]  %s6625_s13, 32, %s163_s28, [#allocation18], %s5679_s0, %s5679_s0, %s5680_s26  }
 0x10a   :  { %s5691_s6 = smov [#allocation22]   ;;  %s5692_s16 = smov [#allocation25]  }
 0x10b   :  { %s186_s7 = sshll.u32 %s5691_s6, 4  ;;  %s218_s22 = sshll.u32 %s5692_s16, 4  ;;  %s187_s7 = int_to_ptr.vmem [resolvable:$true] %s186_s7  ;;  %s219_s22 = int_to_ptr.vmem [resolvable:$true] %s218_s22 }
 0x10c   :  { %s5590_s5 = scalar_lea.hbm %s6627_s15, 1024 }
 0x10d   :  { %p5591_p6 = scmp.ne.s32.totalorder %s6627_s15, %s5590_s5  ;;  %p5594_p7 = scmp.lt.u32.totalorder %s5590_s5, %s6627_s15 }
 0x10f   :  { %p5596_p8 = pnand %p5594_p7, %p5591_p6 }
 0x111   :  { %5599 = shalt.err (!%p5596_p8)
}
 0x112   :  { %s5600_s13 = scalar_lea.vmem %s187_s7, 1024  ;;  %p5605_p10 = scmp.lt.s32.totalorder %s187_s7, %s187_s7 }
 0x113   :  { %p5601_p9 = scmp.ne.s32.totalorder %s187_s7, %s5600_s13  ;;  %p5606_p11 = scmp.lt.s32.totalorder %s5600_s13, %s5600_s13 }
 0x115   :  { %p5607_p12 = por %p5606_p11, %p5605_p10 }
 0x117   :  { %p5608_p13 = pnand %p5607_p12, %p5601_p9 }
 0x119   :  { %5611 = shalt.err (!%p5608_p13)
}
 0x11a   :  { %192 = dma.hbm_to_vmem [thread:$0]  %s6627_s15, 1024, %s187_s7, [#allocation21], %s6664_s29, %s6664_s29, %s6663_s25  }
 0x11b   :  { %s5612_s1 = scalar_lea.hbm %s6633_s21, 512 }
 0x11c   :  { %p5613_p0 = scmp.ne.s32.totalorder %s6633_s21, %s5612_s1  ;;  %p5616_p1 = scmp.lt.u32.totalorder %s5612_s1, %s6633_s21 }
 0x11e   :  { %p5618_p2 = pnand %p5616_p1, %p5613_p0 }
 0x120   :  { %5621 = shalt.err (!%p5618_p2)
}
 0x121   :  { %s5622_s6 = scalar_lea.vmem %s219_s22, 512  ;;  %p5627_p4 = scmp.lt.s32.totalorder %s219_s22, %s219_s22 }
 0x122   :  { %p5623_p3 = scmp.ne.s32.totalorder %s219_s22, %s5622_s6  ;;  %p5628_p5 = scmp.lt.s32.totalorder %s5622_s6, %s5622_s6 }
 0x124   :  { %p5629_p6 = por %p5628_p5, %p5627_p4 }
 0x126   :  { %p5630_p7 = pnand %p5629_p6, %p5623_p3 }
 0x128   :  { %5633 = shalt.err (!%p5630_p7)
}
 0x129   :  { %224 = dma.hbm_to_vmem [thread:$0]  %s6633_s21, 512, %s219_s22, [#allocation24], %s6664_s29, %s6664_s29, %s6663_s25  }
 0x12a   :  { %5656 = dma.done.wait [#allocation3], 256  }
 0x12b   :  { %5657 = vsyncadd [#allocation3], 4294967040 }
 0x12c   :  { %5658 = dma.done.wait [#allocation6], 256  }
 0x12d   :  { %5659 = vsyncadd [#allocation6], 4294967040 }
 0x12e   :  { %5660 = dma.done.wait [#allocation9], 272  }
 0x12f   :  { %5661 = vsyncadd [#allocation9], 4294967024 }
 0x130   :  { %5662 = dma.done.wait [#allocation12], 64  }
 0x131   :  { %5663 = vsyncadd [#allocation12], 4294967232 }
 0x132   :  { %5664 = dma.done.wait [#allocation15], 1056  }
 0x133   :  { %5665 = vsyncadd [#allocation15], 4294966240 }
 0x134   :  { %5666 = dma.done.wait [#allocation18], 64  }
 0x135   :  { %5667 = vsyncadd [#allocation18], 4294967232 }
 0x136   :  { %5668 = dma.done.wait [#allocation21], 1056  }
 0x137   :  { %5669 = vsyncadd [#allocation21], 4294966240 }
 0x138   :  { %5670 = dma.done.wait [#allocation24], 544  }
 0x139   :  { %5671 = vsyncadd [#allocation24], 4294966752  ;;  %vm284_vm0 = vcmask 130048   ;;  %v275_v0 = vld [vmem:[#allocation8] sm:$0xff]  ;;  %v276_v1 = vld [vmem:[#allocation8 + $0x8] sm:$0xff]  ;;  %s6667_s22 = sld [smem:[#allocation41_spill]] }
 0x13a   :  { %v272_v2 = vld [vmem:[#allocation2] sm:$0xff]  ;;  %v5073_v3 = vpack.c.bf16 %v276_v1, %v275_v0  ;;  %s6668_s12 = sld [smem:[#allocation43_spill]]  ;;  %v273_v10 = vld [vmem:[#allocation2 + $0x8] sm:$0xff]  ;;  %v4472_v20 = vld [vmem:[#allocation10] ss:$0 sm:$0xff]  ;;  %vm413_vm1 = vcmask 261120  }
 0x13b   :  { %4751 = vmatprep.mubr.msk.f32.mxu0 %vm284_vm0, %v272_v2  ;;  %v379_v17 = vld [vmem:[%s6621_s9] sm:$0xff]  ;;  %v380_v18 = vld [vmem:[%s6621_s9 + $0x8] sm:$0xff]  ;;  %v274_v22 = vld [vmem:[#allocation5] sm:$0xff]  ;;  %v5693_v31 = vmov 0.0   ;;  %vm5694_vm2 = vmmov 0   ;;  %vm659_vm3 = vcmask 64512  }
 0x13c   :  { %5074 = vmatprep.subr.bf16.mxu0 %v5073_v3  ;;  %v5093_v19 = vpack.c.bf16 %v380_v18, %v379_v17  ;;  %v381_v26 = vld [vmem:[%s6621_s9 + $0x10] sm:$0xff]  ;;  %v382_v27 = vld [vmem:[%s6621_s9 + $0x18] sm:$0xff]  ;;  %s5695_s8 = smov 120   ;;  %s5696_s5 = smov 112   ;;  %vm2000_vm4 = vcmask 195584   ;;  %vm2230_vm5 = vcmask 523264  }
 0x13d   :  { %5076 = vmatpush3.bf16.msra.mxu0 %v5073_v3  ;;  %v5097_v30 = vpack.c.bf16 %v382_v27, %v381_v26  ;;  %v4478_v32 = vld [vmem:[#allocation13] ss:$0 sm:$0xff]  ;;  %v4475_v33 = vld [vmem:[#allocation11] ss:$0 sm:$0xff]  ;;  %v4481_v43 = vld [vmem:[#allocation14] ss:$0 sm:$0xff] }
 0x13e   :  { %v6130_v49 = vld [vmem:[#allocation7] sm:$0xff]  ;;  %s5697_s23 = smov 104   ;;  %s5698_s2 = smov 24  }
 0x13f   :  { %v369_v4 = vld [vmem:[%s6667_s22] sm:$0xff]  ;;  %v370_v5 = vld [vmem:[%s6667_s22 + $0x8] sm:$0xff]  ;;  %v371_v11 = vld [vmem:[%s6667_s22 + $0x10] sm:$0xff]  ;;  %s6669_s4 = sld [smem:[#allocation44_spill]] }
 0x140   :  { %v5077_v6 = vpack.c.bf16 %v370_v5, %v369_v4  ;;  %v374_v7 = vld [vmem:[%s6668_s12] sm:$0xff]  ;;  %v375_v8 = vld [vmem:[%s6668_s12 + $0x8] sm:$0xff]  ;;  %4752 = vmatmul.mubr.msk.f32.vlgmr.msra.gmra.mrb[0].mxu0 %vm284_vm0, %v273_v10  ;;  %v372_v12 = vld [vmem:[%s6667_s22 + $0x18] sm:$0xff] }
 0x141   :  { %v5085_v9 = vpack.c.bf16 %v375_v8, %v374_v7  ;;  %v5081_v13 = vpack.c.bf16 %v372_v12, %v371_v11  ;;  %v376_v14 = vld [vmem:[%s6668_s12 + $0x10] sm:$0xff]  ;;  %v377_v15 = vld [vmem:[%s6668_s12 + $0x18] sm:$0xff] }
 0x142   :  { %5078 = vmatprep.subr.bf16.mxu1 %v5077_v6  ;;  %v5089_v16 = vpack.c.bf16 %v377_v15, %v376_v14 }
 0x143   :  { %5080 = vmatpush3.bf16.msra.mxu1 %v5077_v6  ;;  %5086 = vmatprep.subr.bf16.mxu0 %v5085_v9 }
 0x144   :  { %5088 = vmatpush3.bf16.msra.mxu0 %v5085_v9  ;;  %5082 = vmatprep.subr.bf16.mxu1 %v5081_v13 }
 0x145   :  { %5090 = vmatprep.subr.bf16.mxu0 %v5089_v16 }
 0x147   :  { %5084 = vmatpush3.bf16.msra.mxu1 %v5081_v13 }
 0x148   :  { %5092 = vmatpush3.bf16.msra.mxu0 %v5089_v16  ;;  %5094 = vmatprep.subr.bf16.mxu1 %v5093_v19 }
 0x149   :  { %4787 = vmatprep.subr.mxu0 %v5693_v31 }
 0x213   :  { %v4753_v21 = vpop.f32.mrb[0].mxu0 }
 0x214   :  { %v363_v23 = vadd.f32 %v4753_v21, %v4472_v20  ;;  %v357_v24 = vpop.f32.mrb[1].mxu0 }
 0x215   :  { %v358_v25 = vadd.f32 %v4472_v20, %v357_v24 }
 0x216   :  { %v6076_v29 = vadd.f32 %v363_v23, %v274_v22 }
 0x217   :  { %v6074_v28 = vadd.f32 %v358_v25, %v274_v22 }
 0x219   :  { %4762 = vmatprep.mubr.msk.f32.mxu1 %vm413_vm1, %v6074_v28  ;;  %4773 = vmatprep.mubr.msk.f32.mxu0 %vm413_vm1, %v6074_v28 }
 0x21a   :  { %4763 = vmatmul.mubr.msk.f32.vlgmr.msra.gmra.mrb[0].mxu1 %vm413_vm1, %v6076_v29  ;;  %4774 = vmatmul.mubr.msk.f32.vlgmr.msra.gmra.mrb[2].mxu0 %vm413_vm1, %v6076_v29 }
 0x21b   :  { %5096 = vmatpush3.bf16.msra.mxu1 %v5093_v19  ;;  %4784 = vmatprep.mubr.msk.f32.mxu1 %vm413_vm1, %v6074_v28 }
 0x21c   :  { %5098 = vmatprep.subr.bf16.mxu1 %v5097_v30  ;;  %4789 = vmatprep.mubr.msk.f32.mxu0 %vm5694_vm2, %v5693_v31 }
 0x21f   :  { %5100 = vmatpush3.bf16.msra.mxu1 %v5097_v30 }
 0x220   :  { %4797 = vmatprep.subr.mxu1 %v5693_v31 }
 0x222   :  { %4785 = vmatmul.mubr.msk.f32.vlgmr.msra.gmra.mrb[2].mxu1 %vm413_vm1, %v6076_v29 }
 0x223   :  { %4799 = vmatprep.mubr.msk.f32.mxu1 %vm5694_vm2, %v5693_v31 }
 0x2ed   :  { %v4764_v34 = vpop.f32.mrb[0].mxu1  ;;  %v4775_v35 = vpop.f32.mrb[2].mxu0 }
 0x2ee   :  { %v6096_v36 = vadd.f32 %v4775_v35, %v4478_v32  ;;  %v486_v37 = vpop.f32.mrb[1].mxu1  ;;  %v569_v38 = vpop.f32.mrb[3].mxu0  ;;  %v492_v42 = vadd.f32 %v4764_v34, %v4475_v33 }
 0x2ef   :  { %v487_v39 = vadd.f32 %v4475_v33, %v486_v37  ;;  %v6098_v40 = vadd.f32 %v4478_v32, %v569_v38 }
 0x2f0   :  { %1060 = vrot.lane.b32.xlu1 %v6096_v36, %s5695_s8  ;;  %v6115_v45 = vmul.f32 0.35355338, %v492_v42 }
 0x2f1   :  { %v6102_v41 = vmul.f32 0.35355338, %v487_v39  ;;  %4788 = vmatpush3.xpose.msk.msra.mxu0 %vm659_vm3, %v6098_v40 }
 0x2f2   :  { %4792 = vmatprep.subr.mxu0 %v5693_v31 }
 0x2f4   :  { %980 = vrot.lane.b32.xlu1 %v6102_v41, %s5695_s8  ;;  %4790 = vmatmul.mubr.msk.f32.vlgmr.msra.gmra.mrb[4].mxu0 %vm659_vm3, %v6102_v41 }
 0x2f5   :  { %v4786_v44 = vpop.f32.mrb[2].mxu1  ;;  %4793 = vmatpush3.xpose.msk.msra.mxu0 %vm659_vm3, %v6096_v36  ;;  %4794 = vmatprep.mubr.msk.f32.mxu0 %vm5694_vm2, %v5693_v31 }
 0x2f6   :  { %v650_v46 = vpop.f32.mrb[3].mxu1  ;;  %4802 = vmatprep.subr.mxu0 %v5693_v31  ;;  %v6118_v47 = vadd.f32 %v4786_v44, %v4481_v43 }
 0x2f7   :  { %v6120_v48 = vadd.f32 %v4481_v43, %v650_v46 }
 0x2f8   :  { %4795 = vmatmul.mubr.msk.f32.vlgmr.msra.gmra.mrb[6].mxu0 %vm659_vm3, %v6115_v45 }
 0x2f9   :  { %4798 = vmatpush3.msra.mxu1 %v6120_v48  ;;  %4803 = vmatpush3.msra.mxu0 %v6118_v47 }
 0x2fa   :  { %4807 = vmatprep.subr.mxu1 %v5693_v31  ;;  %4804 = vmatprep.mubr.msk.f32.mxu0 %vm5694_vm2, %v5693_v31 }
 0x2fb   :  { %4812 = vmatprep.subr.mxu0 %v5693_v31 }
 0x362   :  { %v1061_v4 = vpop.permute.xlu1 %1060 }
 0x366   :  { %v981_v5 = vpop.permute.xlu1 %980 }
 0x3c7   :  { %v732_v50 = vpop.f32.mrb[4].mxu0 }
 0x3c8   :  { %v733_v51 = vadd.f32 %v732_v50, %v6130_v49  ;;  %v4791_v52 = vpop.f32.mrb[5].mxu0 }
 0x3ca   :  { %v812_v53 = vsel %vm659_vm3, %v733_v51, -inf }
 0x3cb   :  { %813 = vmax.xlane.f32.xlu0 %v812_v53  ;;  %v808_v54 = vpop.f32.mrb[6].mxu0 }
 0x3cc   :  { %v809_v55 = vadd.f32 %v808_v54, %v6130_v49  ;;  %v4796_v56 = vpop.f32.mrb[7].mxu0 }
 0x3ce   :  { %v815_v57 = vsel %vm659_vm3, %v809_v55, -inf }
 0x3cf   :  { %816 = vmax.xlane.f32.xlu0 %v815_v57 }
 0x3e5   :  { %982 = vrot.lane.b32.xlu0 %v6098_v40, %s5695_s8 }
 0x458   :  { %v814_v58 = vpop.xlane.xlu0 %813 }
 0x459   :  { %v818_v59 = vsub.f32 %v733_v51, %v814_v58 }
 0x45b   :  { %v820_v60 = vmul.f32 1.442695, %v818_v59 }
 0x45c   :  { %v817_v61 = vpop.xlane.xlu0 %816 }
 0x45d   :  { %5223 = vpow2.f32 %v820_v60  ;;  %v819_v62 = vsub.f32 %v809_v55, %v817_v61 }
 0x45f   :  { %v822_v63 = vmul.f32 1.442695, %v819_v62 }
 0x460   :  { %v983_v10 = vpop.permute.xlu0 %982 }
 0x461   :  { %5225 = vpow2.f32 %v822_v63 }
 0x467   :  { %v5224_v0 = vpop.eup %5223 }
 0x468   :  { %v824_v1 = vsel %vm659_vm3, %v5224_v0, 0.0 }
 0x469   :  { %825 = vadd.xlane.f32.xlu1 %v824_v1 }
 0x46b   :  { %v5226_v2 = vpop.eup %5225 }
 0x46c   :  { %v827_v3 = vsel %vm659_vm3, %v5226_v2, 0.0 }
 0x46d   :  { %828 = vadd.xlane.f32.xlu1 %v827_v3 }
 0x47e   :  { %1058 = vrot.lane.b32.xlu1 %v6115_v45, %s5695_s8 }
 0x4f6   :  { %v826_v6 = vpop.xlane.xlu1 %825 }
 0x4f7   :  { %5227 = vrcp.f32 %v826_v6 }
 0x4fa   :  { %v829_v7 = vpop.xlane.xlu1 %828 }
 0x4fb   :  { %5229 = vrcp.f32 %v829_v7 }
 0x4fe   :  { %v1059_v13 = vpop.permute.xlu1 %1058 }
 0x501   :  { %v5228_v8 = vpop.eup %5227 }
 0x502   :  { %v832_v9 = vmul.f32 %v5228_v8, %v5224_v0 }
 0x504   :  { %4800 = vmatmul.mubr.msk.f32.vlgmr.msra.gmra.mrb[4].mxu1 %vm659_vm3, %v832_v9 }
 0x505   :  { %v5230_v11 = vpop.eup %5229  ;;  %4808 = vmatpush3.xpose.msk.msra.mxu1 %vm659_vm3, %v983_v10  ;;  %4809 = vmatprep.mubr.msk.f32.mxu1 %vm5694_vm2, %v5693_v31 }
 0x506   :  { %v833_v12 = vmul.f32 %v5230_v11, %v5226_v2  ;;  %4817 = vmatprep.subr.mxu1 %v5693_v31 }
 0x508   :  { %4805 = vmatmul.mubr.msk.f32.vlgmr.msra.gmra.mrb[8].mxu0 %vm659_vm3, %v833_v12  ;;  %4810 = vmatmul.mubr.msk.f32.vlgmr.msra.gmra.mrb[6].mxu1 %vm659_vm3, %v981_v5 }
 0x509   :  { %4813 = vmatpush3.xpose.msk.msra.mxu0 %vm659_vm3, %v1061_v4  ;;  %4814 = vmatprep.mubr.msk.f32.mxu0 %vm5694_vm2, %v5693_v31 }
 0x50a   :  { %4822 = vmatprep.subr.mxu0 %v5693_v31  ;;  %4819 = vmatprep.mubr.msk.f32.mxu1 %vm5694_vm2, %v5693_v31 }
 0x50c   :  { %4815 = vmatmul.mubr.msk.f32.vlgmr.msra.gmra.mrb[10].mxu0 %vm659_vm3, %v1059_v13 }
 0x50d   :  { %4824 = vmatprep.mubr.msk.f32.mxu0 %vm5694_vm2, %v5693_v31 }
 0x5d7   :  { %v6158_v14 = vpop.f32.mrb[4].mxu1 }
 0x5d8   :  { %v4801_v15 = vpop.f32.mrb[5].mxu1 }
 0x5db   :  { %v6160_v16 = vpop.f32.mrb[8].mxu0  ;;  %v1054_v17 = vpop.f32.mrb[6].mxu1 }
 0x5dc   :  { %v1055_v18 = vadd.f32 %v1054_v17, %v6130_v49  ;;  %v4806_v19 = vpop.f32.mrb[9].mxu0  ;;  %v4811_v20 = vpop.f32.mrb[7].mxu1 }
 0x5de   :  { %v1136_v21 = vsel %vm659_vm3, %v1055_v18, -inf }
 0x5df   :  { %1137 = vmax.xlane.f32.xlu0 %v1136_v21  ;;  %v1132_v22 = vpop.f32.mrb[10].mxu0 }
 0x5e0   :  { %v1133_v23 = vadd.f32 %v1132_v22, %v6130_v49  ;;  %v4816_v24 = vpop.f32.mrb[11].mxu0 }
 0x5e2   :  { %v1139_v25 = vsel %vm659_vm3, %v1133_v23, -inf }
 0x5e3   :  { %1140 = vmax.xlane.f32.xlu1 %v1139_v25 }
 0x5f4   :  { %1236 = vrot.lane.b32.xlu1 %v6118_v47, %s5695_s8 }
 0x5f5   :  { %1159 = vrot.lane.b32.xlu0 %v6120_v48, %s5695_s8 }
 0x5f8   :  { %1314 = vrot.lane.b32.xlu1 %v6098_v40, %s5696_s5 }
 0x5fc   :  { %1392 = vrot.lane.b32.xlu1 %v6096_v36, %s5696_s5 }
 0x600   :  { %1390 = vrot.lane.b32.xlu1 %v6115_v45, %s5696_s5 }
 0x66c   :  { %v1138_v26 = vpop.xlane.xlu0 %1137 }
 0x66d   :  { %v1142_v27 = vsub.f32 %v1055_v18, %v1138_v26 }
 0x66f   :  { %v1144_v30 = vmul.f32 1.442695, %v1142_v27 }
 0x670   :  { %v1160_v32 = vpop.permute.xlu0 %1159  ;;  %v1141_v33 = vpop.xlane.xlu1 %1140 }
 0x671   :  { %5231 = vpow2.f32 %v1144_v30  ;;  %v1143_v34 = vsub.f32 %v1133_v23, %v1141_v33  ;;  %4818 = vmatpush3.msra.mxu1 %v1160_v32 }
 0x672   :  { %4827 = vmatprep.subr.mxu1 %v5693_v31 }
 0x673   :  { %v1146_v35 = vmul.f32 1.442695, %v1143_v34 }
 0x674   :  { %v1237_v37 = vpop.permute.xlu1 %1236 }
 0x675   :  { %5233 = vpow2.f32 %v1146_v35  ;;  %4823 = vmatpush3.msra.mxu0 %v1237_v37 }
 0x676   :  { %4832 = vmatprep.subr.mxu0 %v5693_v31 }
 0x678   :  { %v1315_v50 = vpop.permute.xlu1 %1314 }
 0x67b   :  { %v5232_v38 = vpop.eup %5231 }
 0x67c   :  { %v1148_v39 = vsel %vm659_vm3, %v5232_v38, 0.0  ;;  %v1393_v54 = vpop.permute.xlu1 %1392 }
 0x67d   :  { %1149 = vadd.xlane.f32.xlu0 %v1148_v39 }
 0x67f   :  { %v5234_v42 = vpop.eup %5233 }
 0x680   :  { %v1151_v43 = vsel %vm659_vm3, %v5234_v42, 0.0  ;;  %v1391_v57 = vpop.permute.xlu1 %1390 }
 0x681   :  { %1152 = vadd.xlane.f32.xlu0 %v1151_v43 }
 0x697   :  { %1312 = vrot.lane.b32.xlu0 %v6102_v41, %s5696_s5 }
 0x70a   :  { %v1150_v44 = vpop.xlane.xlu0 %1149 }
 0x70b   :  { %5235 = vrcp.f32 %v1150_v44 }
 0x70e   :  { %v1153_v46 = vpop.xlane.xlu0 %1152 }
 0x70f   :  { %5237 = vrcp.f32 %v1153_v46 }
 0x712   :  { %v1313_v56 = vpop.permute.xlu0 %1312 }
 0x715   :  { %v5236_v51 = vpop.eup %5235 }
 0x716   :  { %v1156_v52 = vmul.f32 %v5236_v51, %v5232_v38 }
 0x718   :  { %4820 = vmatmul.mubr.msk.f32.vlgmr.msra.gmra.mrb[8].mxu1 %vm659_vm3, %v1156_v52 }
 0x719   :  { %v5238_v53 = vpop.eup %5237  ;;  %4828 = vmatpush3.xpose.msk.msra.mxu1 %vm659_vm3, %v1315_v50  ;;  %4829 = vmatprep.mubr.msk.f32.mxu1 %vm5694_vm2, %v5693_v31 }
 0x71a   :  { %v1157_v55 = vmul.f32 %v5238_v53, %v5234_v42  ;;  %4837 = vmatprep.subr.mxu1 %v5693_v31 }
 0x71c   :  { %4825 = vmatmul.mubr.msk.f32.vlgmr.msra.gmra.mrb[12].mxu0 %vm659_vm3, %v1157_v55  ;;  %4830 = vmatmul.mubr.msk.f32.vlgmr.msra.gmra.mrb[10].mxu1 %vm659_vm3, %v1313_v56 }
 0x71d   :  { %4833 = vmatpush3.xpose.msk.msra.mxu0 %vm659_vm3, %v1393_v54  ;;  %4834 = vmatprep.mubr.msk.f32.mxu0 %vm5694_vm2, %v5693_v31 }
 0x71e   :  { %4842 = vmatprep.subr.mxu0 %v5693_v31  ;;  %4839 = vmatprep.mubr.msk.f32.mxu1 %vm5694_vm2, %v5693_v31 }
 0x720   :  { %4835 = vmatmul.mubr.msk.f32.vlgmr.msra.gmra.mrb[14].mxu0 %vm659_vm3, %v1391_v57 }
 0x721   :  { %4844 = vmatprep.mubr.msk.f32.mxu0 %vm5694_vm2, %v5693_v31 }
 0x7eb   :  { %v6198_v58 = vpop.f32.mrb[8].mxu1 }
 0x7ec   :  { %v4821_v59 = vpop.f32.mrb[9].mxu1 }
 0x7ef   :  { %v6200_v60 = vpop.f32.mrb[12].mxu0  ;;  %v1386_v61 = vpop.f32.mrb[10].mxu1 }
 0x7f0   :  { %v1387_v62 = vadd.f32 %v1386_v61, %v6130_v49  ;;  %v4826_v63 = vpop.f32.mrb[13].mxu0  ;;  %v4831_v0 = vpop.f32.mrb[11].mxu1 }
 0x7f2   :  { %v1468_v1 = vsel %vm659_vm3, %v1387_v62, -inf }
 0x7f3   :  { %1469 = vmax.xlane.f32.xlu0 %v1468_v1  ;;  %v1464_v2 = vpop.f32.mrb[14].mxu0  ;;  %v384_v1 = vld [vmem:[#allocation16] sm:$0xff] }
 0x7f4   :  { %v1465_v3 = vadd.f32 %v1464_v2, %v6130_v49  ;;  %v4836_v4 = vpop.f32.mrb[15].mxu0  ;;  %v385_v2 = vld [vmem:[#allocation16 + $0x8] sm:$0xff] }
 0x7f5   :  { %v387_v4 = vld [vmem:[#allocation16 + $0x18] sm:$0xff] }
 0x7f6   :  { %v1471_v5 = vsel %vm659_vm3, %v1465_v3, -inf }
 0x7f7   :  { %1472 = vmax.xlane.f32.xlu1 %v1471_v5 }
 0x808   :  { %1566 = vrot.lane.b32.xlu1 %v6118_v47, %s5696_s5 }
 0x809   :  { %1490 = vrot.lane.b32.xlu0 %v6120_v48, %s5696_s5 }
 0x80c   :  { %1644 = vrot.lane.b32.xlu1 %v6098_v40, %s5697_s23 }
 0x810   :  { %1722 = vrot.lane.b32.xlu1 %v6096_v36, %s5697_s23 }
 0x814   :  { %1720 = vrot.lane.b32.xlu1 %v6115_v45, %s5697_s23 }
 0x880   :  { %v1470_v6 = vpop.xlane.xlu0 %1469 }
 0x881   :  { %v1474_v7 = vsub.f32 %v1387_v62, %v1470_v6 }
 0x883   :  { %v1476_v8 = vmul.f32 1.442695, %v1474_v7 }
 0x884   :  { %v1491_v9 = vpop.permute.xlu0 %1490  ;;  %v1473_v10 = vpop.xlane.xlu1 %1472 }
 0x885   :  { %5239 = vpow2.f32 %v1476_v8  ;;  %v1475_v11 = vsub.f32 %v1465_v3, %v1473_v10  ;;  %4838 = vmatpush3.msra.mxu1 %v1491_v9  ;;  %v5101_v3 = vpack.c.bf16 %v385_v2, %v384_v1  ;;  %v4511_v2 = vld [vmem:[#allocation19] ss:$0 sm:$0xff] }
 0x886   :  { %4847 = vmatprep.subr.mxu1 %v5693_v31 }
 0x887   :  { %v1478_v12 = vmul.f32 1.442695, %v1475_v11 }
 0x888   :  { %v1567_v13 = vpop.permute.xlu1 %1566 }
 0x889   :  { %5241 = vpow2.f32 %v1478_v12  ;;  %4843 = vmatpush3.msra.mxu0 %v1567_v13 }
 0x88a   :  { %4852 = vmatprep.subr.mxu0 %v5693_v31 }
 0x88c   :  { %v1645_v19 = vpop.permute.xlu1 %1644 }
 0x88f   :  { %v5240_v36 = vpop.eup %5239 }
 0x890   :  { %v1480_v40 = vsel %vm659_vm3, %v5240_v36, 0.0  ;;  %v1723_v23 = vpop.permute.xlu1 %1722 }
 0x891   :  { %1481 = vadd.xlane.f32.xlu0 %v1480_v40 }
 0x893   :  { %v5242_v45 = vpop.eup %5241 }
 0x894   :  { %v1483_v15 = vsel %vm659_vm3, %v5242_v45, 0.0  ;;  %v1721_v25 = vpop.permute.xlu1 %1720 }
 0x895   :  { %1484 = vadd.xlane.f32.xlu0 %v1483_v15 }
 0x8ab   :  { %1642 = vrot.lane.b32.xlu0 %v6102_v41, %s5697_s23 }
 0x91e   :  { %v1482_v17 = vpop.xlane.xlu0 %1481 }
 0x91f   :  { %5243 = vrcp.f32 %v1482_v17 }
 0x922   :  { %v1485_v18 = vpop.xlane.xlu0 %1484 }
 0x923   :  { %5245 = vrcp.f32 %v1485_v18 }
 0x926   :  { %v1643_v41 = vpop.permute.xlu0 %1642 }
 0x929   :  { %v5244_v20 = vpop.eup %5243 }
 0x92a   :  { %v1488_v21 = vmul.f32 %v5244_v20, %v5240_v36 }
 0x92c   :  { %4840 = vmatmul.mubr.msk.f32.vlgmr.msra.gmra.mrb[12].mxu1 %vm659_vm3, %v1488_v21  ;;  %v4508_v21 = vld [vmem:[#allocation17] ss:$0 sm:$0xff] }
 0x92d   :  { %v5246_v22 = vpop.eup %5245  ;;  %4848 = vmatpush3.xpose.msk.msra.mxu1 %vm659_vm3, %v1645_v19  ;;  %4849 = vmatprep.mubr.msk.f32.mxu1 %vm5694_vm2, %v5693_v31 }
 0x92e   :  { %v1489_v24 = vmul.f32 %v5246_v22, %v5242_v45  ;;  %4857 = vmatprep.subr.mxu1 %v5693_v31 }
 0x930   :  { %4845 = vmatmul.mubr.msk.f32.vlgmr.msra.gmra.mrb[16].mxu0 %vm659_vm3, %v1489_v24  ;;  %4850 = vmatmul.mubr.msk.f32.vlgmr.msra.gmra.mrb[14].mxu1 %vm659_vm3, %v1643_v41 }
 0x931   :  { %4853 = vmatpush3.xpose.msk.msra.mxu0 %vm659_vm3, %v1723_v23  ;;  %4854 = vmatprep.mubr.msk.f32.mxu0 %vm5694_vm2, %v5693_v31 }
 0x932   :  { %4862 = vmatprep.subr.mxu0 %v5693_v31  ;;  %4859 = vmatprep.mubr.msk.f32.mxu1 %vm5694_vm2, %v5693_v31 }
 0x934   :  { %4855 = vmatmul.mubr.msk.f32.vlgmr.msra.gmra.mrb[18].mxu0 %vm659_vm3, %v1721_v25 }
 0x935   :  { %4864 = vmatprep.mubr.msk.f32.mxu0 %vm5694_vm2, %v5693_v31 }
 0x9ff   :  { %v1562_v26 = vpop.f32.mrb[12].mxu1 }
 0xa00   :  { %v4841_v27 = vpop.f32.mrb[13].mxu1 }
 0xa03   :  { %v1638_v30 = vpop.f32.mrb[16].mxu0  ;;  %v1716_v32 = vpop.f32.mrb[14].mxu1 }
 0xa04   :  { %v1717_v33 = vadd.f32 %v1716_v32, %v6130_v49  ;;  %v4846_v34 = vpop.f32.mrb[17].mxu0  ;;  %v4851_v35 = vpop.f32.mrb[15].mxu1 }
 0xa06   :  { %v1798_v37 = vsel %vm659_vm3, %v1717_v33, -inf }
 0xa07   :  { %1799 = vmax.xlane.f32.xlu0 %v1798_v37  ;;  %v1794_v38 = vpop.f32.mrb[18].mxu0 }
 0xa08   :  { %v1795_v39 = vadd.f32 %v1794_v38, %v6130_v49  ;;  %v4856_v42 = vpop.f32.mrb[19].mxu0 }
 0xa09   :  { %v392_v42 = vld [vmem:[#allocation22 + $0x8] sm:$0xff] }
 0xa0a   :  { %v1801_v43 = vsel %vm659_vm3, %v1795_v39, -inf }
 0xa0b   :  { %1802 = vmax.xlane.f32.xlu1 %v1801_v43 }
 0xa1c   :  { %1896 = vrot.lane.b32.xlu1 %v6118_v47, %s5697_s23 }
 0xa20   :  { %1974 = vrot.lane.b32.xlu1 %v6198_v58, %s6663_s25 }
 0xa24   :  { %1976 = vrot.lane.b32.xlu1 %v6200_v60, %s6663_s25 }
 0xa28   :  { %1984 = vrot.lane.b32.xlu1 %v1638_v30, %s5679_s0 }
 0xa94   :  { %v1800_v44 = vpop.xlane.xlu0 %1799 }
 0xa95   :  { %v1804_v46 = vsub.f32 %v1717_v33, %v1800_v44  ;;  %v393_v44 = vld [vmem:[#allocation22 + $0x10] sm:$0xff] }
 0xa97   :  { %v1806_v50 = vmul.f32 1.442695, %v1804_v46  ;;  %v394_v46 = vld [vmem:[#allocation22 + $0x18] sm:$0xff] }
 0xa98   :  { %v1803_v51 = vpop.xlane.xlu1 %1802 }
 0xa99   :  { %5247 = vpow2.f32 %v1806_v50  ;;  %v1805_v52 = vsub.f32 %v1795_v39, %v1803_v51  ;;  %v5113_v50 = vpack.c.bf16 %v394_v46, %v393_v44  ;;  %v396_v51 = vld [vmem:[%s6629_s17] sm:$0xff]  ;;  %v4523_v46 = vld [vmem:[%s6667_s22 + $0x30] sm:$0xff] }
 0xa9b   :  { %v1808_v53 = vmul.f32 1.442695, %v1805_v52  ;;  %v397_v52 = vld [vmem:[%s6629_s17 + $0x8] sm:$0xff] }
 0xa9c   :  { %v1897_v54 = vpop.permute.xlu1 %1896 }
 0xa9d   :  { %5249 = vpow2.f32 %v1808_v53  ;;  %4863 = vmatpush3.msra.mxu0 %v1897_v54  ;;  %v398_v53 = vld [vmem:[%s6629_s17 + $0x10] sm:$0xff]  ;;  %v5117_v54 = vpack.c.bf16 %v397_v52, %v396_v51 }
 0xa9e   :  { %v4531_v51 = vld [vmem:[%s6621_s9 + $0x30] sm:$0xff] }
 0xaa0   :  { %v1975_v10 = vpop.permute.xlu1 %1974 }
 0xaa1   :  { %v1996_v13 = vsel %vm659_vm3, %v6158_v14, %v1975_v10  ;;  %v402_v10 = vld [vmem:[%s6629_s17 + $0x30] sm:$0xff] }
 0xaa3   :  { %v5248_v55 = vpop.eup %5247 }
 0xaa4   :  { %v1810_v47 = vsel %vm659_vm3, %v5248_v55, 0.0  ;;  %v1977_v11 = vpop.permute.xlu1 %1976 }
 0xaa5   :  { %1811 = vadd.xlane.f32.xlu0 %v1810_v47  ;;  %v1997_v17 = vsel %vm659_vm3, %v6160_v16, %v1977_v11  ;;  %v403_v11 = vld [vmem:[%s6629_s17 + $0x38] sm:$0xff] }
 0xaa7   :  { %v5250_v56 = vpop.eup %5249 }
 0xaa8   :  { %v1813_v57 = vsel %vm659_vm3, %v5250_v56, 0.0  ;;  %v1985_v36 = vpop.permute.xlu1 %1984 }
 0xaa9   :  { %1814 = vadd.xlane.f32.xlu0 %v1813_v57  ;;  %v1999_v18 = vsel %vm284_vm0, %v1997_v17, %v1985_v36  ;;  %v401_v57 = vld [vmem:[%s6629_s17 + $0x28] sm:$0xff] }
 0xabf   :  { %1820 = vrot.lane.b32.xlu0 %v6120_v48, %s5697_s23  ;;  %v386_v48 = vld [vmem:[#allocation16 + $0x10] sm:$0xff] }
 0xac0   :  { %v5105_v5 = vpack.c.bf16 %v387_v4, %v386_v48  ;;  %v4512_v48 = vld [vmem:[#allocation20] ss:$0 sm:$0xff] }
 0xac3   :  { %1982 = vrot.lane.b32.xlu0 %v1562_v26, %s5679_s0 }
 0xb32   :  { %v1812_v58 = vpop.xlane.xlu0 %1811 }
 0xb33   :  { %5251 = vrcp.f32 %v1812_v58 }
 0xb36   :  { %v1815_v59 = vpop.xlane.xlu0 %1814 }
 0xb37   :  { %5253 = vrcp.f32 %v1815_v59 }
 0xb3a   :  { %v1821_v60 = vpop.permute.xlu0 %1820 }
 0xb3b   :  { %4858 = vmatpush3.msra.mxu1 %v1821_v60 }
 0xb3c   :  { %5102 = vmatprep.subr.bf16.mxu1 %v5101_v3 }
 0xb3d   :  { %v5252_v61 = vpop.eup %5251 }
 0xb3e   :  { %v1818_v62 = vmul.f32 %v5252_v61, %v5248_v55  ;;  %v1983_v12 = vpop.permute.xlu0 %1982  ;;  %v399_v55 = vld [vmem:[%s6629_s17 + $0x18] sm:$0xff] }
 0xb3f   :  { %v1998_v40 = vsel %vm284_vm0, %v1996_v13, %v1983_v12  ;;  %v5121_v47 = vpack.c.bf16 %v399_v55, %v398_v53  ;;  %v5129_v12 = vpack.c.bf16 %v403_v11, %v402_v10  ;;  %v4513_v13 = vld [vmem:[#allocation23] ss:$0 sm:$0xff]  ;;  %v4525_v55 = vld [vmem:[%s6668_s12 + $0x20] sm:$0xff]  ;;  %v4550_v11 = vld [vmem:[#allocation14 + $0x1] ss:$0 sm:$0xff] }
 0xb40   :  { %4860 = vmatmul.mubr.msk.f32.vlgmr.msra.gmra.mrb[16].mxu1 %vm659_vm3, %v1818_v62  ;;  %v4532_v53 = vld [vmem:[%s6621_s9 + $0x38] sm:$0xff] }
 0xb41   :  { %v5254_v63 = vpop.eup %5253  ;;  %5104 = vmatpush3.bf16.msra.mxu1 %v5101_v3 }
 0xb42   :  { %v1819_v0 = vmul.f32 %v5254_v63, %v5250_v56  ;;  %5106 = vmatprep.subr.bf16.mxu1 %v5105_v5  ;;  %v400_v56 = vld [vmem:[%s6629_s17 + $0x20] sm:$0xff] }
 0xb43   :  { %v5125_v58 = vpack.c.bf16 %v401_v57, %v400_v56 }
 0xb44   :  { %4865 = vmatmul.mubr.msk.f32.vlgmr.msra.gmra.mrb[20].mxu0 %vm659_vm3, %v1819_v0 }
 0xb45   :  { %5108 = vmatpush3.bf16.msra.mxu1 %v5105_v5 }
 0xb46   :  { %5118 = vmatprep.subr.bf16.mxu1 %v5117_v54 }
 0xc13   :  { %v1892_v6 = vpop.f32.mrb[16].mxu1 }
 0xc14   :  { %1990 = vrot.lane.b32.xlu0 %v1892_v6, %s5698_s2  ;;  %v4861_v7 = vpop.f32.mrb[17].mxu1 }
 0xc17   :  { %v1968_v8 = vpop.f32.mrb[20].mxu0 }
 0xc18   :  { %1992 = vrot.lane.b32.xlu1 %v1968_v8, %s5698_s2  ;;  %v4866_v9 = vpop.f32.mrb[21].mxu0 }
 0xc86   :  { %v1991_v45 = vpop.permute.xlu0 %1990 }
 0xc87   :  { %v2001_v15 = vsel %vm2000_vm4, %v1998_v40, %v1991_v45 }
 0xc88   :  { %4875 = vmatprep.mubr.msk.f32.mxu1 %vm413_vm1, %v2001_v15 }
 0xc8a   :  { %v1993_v19 = vpop.permute.xlu1 %1992 }
 0xc8b   :  { %v2002_v20 = vsel %vm2000_vm4, %v1999_v18, %v1993_v19  ;;  %v4516_v19 = vld [vmem:[%s6630_s18] ss:$0 sm:$0xff] }
 0xc8c   :  { %4876 = vmatmul.mubr.msk.f32.vlgmr.msra.gmra.mrb[18].mxu1 %vm413_vm1, %v2002_v20 }
 0xc8d   :  { %5120 = vmatpush3.bf16.msra.mxu1 %v5117_v54  ;;  %v5153_v54 = vpack.c.bf16 %v4532_v53, %v4531_v51 }
 0xc8e   :  { %5122 = vmatprep.subr.bf16.mxu1 %v5121_v47 }
 0xc91   :  { %5124 = vmatpush3.bf16.msra.mxu1 %v5121_v47  ;;  %v4526_v47 = vld [vmem:[%s6668_s12 + $0x28] sm:$0xff] }
 0xc92   :  { %5126 = vmatprep.subr.bf16.mxu1 %v5125_v58  ;;  %v5141_v56 = vpack.c.bf16 %v4526_v47, %v4525_v55 }
 0xc95   :  { %5128 = vmatpush3.bf16.msra.mxu1 %v5125_v58 }
 0xc96   :  { %5130 = vmatprep.subr.bf16.mxu1 %v5129_v12 }
 0xc99   :  { %5132 = vmatpush3.bf16.msra.mxu1 %v5129_v12 }
 0xd5f   :  { %v4877_v14 = vpop.f32.mrb[18].mxu1 }
 0xd60   :  { %v2087_v22 = vadd.f32 %v4877_v14, %v4508_v21  ;;  %v2081_v23 = vpop.f32.mrb[19].mxu1 }
 0xd61   :  { %v2082_v24 = vadd.f32 %v4508_v21, %v2081_v23 }
 0xd62   :  { %v2091_v41 = vadd.f32 %v2087_v22, %v6076_v29 }
 0xd63   :  { %v2090_v25 = vadd.f32 %v2082_v24, %v6074_v28  ;;  %v391_v28 = vld [vmem:[#allocation22] sm:$0xff] }
 0xd64   :  { %v2095_v26 = vsel %vm413_vm1, %v2091_v41, 0.0  ;;  %v5109_v43 = vpack.c.bf16 %v392_v42, %v391_v28  ;;  %v4529_v42 = vld [vmem:[%s6621_s9 + $0x20] sm:$0xff] }
 0xd65   :  { %2096 = vadd.xlane.f32.xlu1 %v2095_v26  ;;  %v2092_v16 = vsel %vm413_vm1, %v2090_v25, 0.0 }
 0xd66   :  { %2093 = vadd.xlane.f32.xlu0 %v2092_v16  ;;  %5110 = vmatprep.subr.bf16.mxu0 %v5109_v43 }
 0xd67   :  { %5112 = vmatpush3.bf16.msra.mxu0 %v5109_v43  ;;  %v4530_v43 = vld [vmem:[%s6621_s9 + $0x28] sm:$0xff] }
 0xd68   :  { %5114 = vmatprep.subr.bf16.mxu0 %v5113_v50  ;;  %v5149_v44 = vpack.c.bf16 %v4530_v43, %v4529_v42 }
 0xd6a   :  { %5150 = vmatprep.subr.bf16.mxu1 %v5149_v44 }
 0xd6b   :  { %5116 = vmatpush3.bf16.msra.mxu0 %v5113_v50  ;;  %v4524_v50 = vld [vmem:[%s6667_s22 + $0x38] sm:$0xff] }
 0xd6c   :  { %v5137_v52 = vpack.c.bf16 %v4524_v50, %v4523_v46 }
 0xdf2   :  { %v2097_v27 = vpop.xlane.xlu1 %2096 }
 0xdf3   :  { %v2100_v30 = vmul.f32 0.03125, %v2097_v27  ;;  %v2094_v32 = vpop.xlane.xlu0 %2093 }
 0xdf4   :  { %v2099_v33 = vmul.f32 0.03125, %v2094_v32 }
 0xdf5   :  { %v2102_v34 = vsub.f32 %v2091_v41, %v2100_v30 }
 0xdf6   :  { %v2101_v35 = vsub.f32 %v2090_v25, %v2099_v33 }
 0xdf7   :  { %v2104_v39 = vmul.f32 %v2102_v34, %v2102_v34 }
 0xdf8   :  { %v2103_v37 = vmul.f32 %v2101_v35, %v2101_v35 }
 0xdf9   :  { %v2108_v29 = vsel %vm413_vm1, %v2104_v39, 0.0  ;;  %v4521_v39 = vld [vmem:[%s6667_s22 + $0x20] sm:$0xff] }
 0xdfa   :  { %v2105_v38 = vsel %vm413_vm1, %v2103_v37, 0.0 }
 0xdfb   :  { %2106 = vadd.xlane.f32.xlu0 %v2105_v38 }
 0xdff   :  { %2109 = vadd.xlane.f32.xlu0 %v2108_v29  ;;  %v4522_v29 = vld [vmem:[%s6667_s22 + $0x28] sm:$0xff] }
 0xe00   :  { %v5133_v28 = vpack.c.bf16 %v4522_v29, %v4521_v39 }
 0xe02   :  { %5134 = vmatprep.subr.bf16.mxu0 %v5133_v28 }
 0xe88   :  { %v2107_v59 = vpop.xlane.xlu0 %2106 }
 0xe89   :  { %v2111_v60 = vmul.f32 0.03125, %v2107_v59 }
 0xe8b   :  { %v2113_v61 = vadd.f32 1e-05, %v2111_v60 }
 0xe8c   :  { %v2110_v62 = vpop.xlane.xlu0 %2109 }
 0xe8d   :  { %5255 = vrsqrt.f32 %v2113_v61  ;;  %v2112_v63 = vmul.f32 0.03125, %v2110_v62 }
 0xe8f   :  { %v2114_v0 = vadd.f32 1e-05, %v2112_v63 }
 0xe91   :  { %5257 = vrsqrt.f32 %v2114_v0  ;;  %v4519_v0 = vld [vmem:[%s6631_s19] ss:$0 sm:$0xff] }
 0xe97   :  { %v5256_v1 = vpop.eup %5255 }
 0xe98   :  { %v2117_v3 = vmul.f32 %v5256_v1, %v2101_v35 }
 0xe9a   :  { %v2125_v4 = vmul.f32 %v4511_v2, %v2117_v3 }
 0xe9b   :  { %v5258_v5 = vpop.eup %5257 }
 0xe9c   :  { %v2118_v6 = vmul.f32 %v5258_v5, %v2102_v34  ;;  %v2133_v7 = vadd.f32 %v4512_v48, %v2125_v4 }
 0xe9e   :  { %v2126_v8 = vmul.f32 %v4511_v2, %v2118_v6  ;;  %4886 = vmatprep.mubr.msk.f32.mxu0 %vm413_vm1, %v2133_v7  ;;  %v4527_v6 = vld [vmem:[%s6668_s12 + $0x30] sm:$0xff] }
 0xea0   :  { %v2134_v9 = vadd.f32 %v4512_v48, %v2126_v8  ;;  %v4520_v48 = vld [vmem:[%s6632_s20] ss:$0 sm:$0xff] }
 0xea2   :  { %4887 = vmatmul.mubr.msk.f32.vlgmr.msra.gmra.mrb[22].mxu0 %vm413_vm1, %v2134_v9 }
 0xea3   :  { %5136 = vmatpush3.bf16.msra.mxu0 %v5133_v28 }
 0xea4   :  { %5138 = vmatprep.subr.bf16.mxu0 %v5137_v52 }
 0xea7   :  { %5140 = vmatpush3.bf16.msra.mxu0 %v5137_v52 }
 0xea8   :  { %5142 = vmatprep.subr.bf16.mxu0 %v5141_v56 }
 0xf75   :  { %v4888_v36 = vpop.f32.mrb[22].mxu0 }
 0xf76   :  { %v2219_v40 = vadd.f32 %v4888_v36, %v4513_v13  ;;  %v2213_v45 = vpop.f32.mrb[23].mxu0 }
 0xf77   :  { %v2214_v15 = vadd.f32 %v4513_v13, %v2213_v45 }
 0xf78   :  { %v2223_v18 = vmax.f32 %v2219_v40, 0.0 }
 0xf79   :  { %v2222_v17 = vmax.f32 %v2214_v15, 0.0  ;;  %v4544_v15 = vld [vmem:[#allocation11 + $0x1] ss:$0 sm:$0xff] }
 0xf7b   :  { %4905 = vmatprep.mubr.msk.f32.mxu1 %vm2230_vm5, %v2222_v17  ;;  %v4547_v17 = vld [vmem:[#allocation13 + $0x1] ss:$0 sm:$0xff] }
 0xf7c   :  { %4906 = vmatmul.mubr.msk.f32.vlgmr.msra.gmra.mrb[20].mxu1 %vm2230_vm5, %v2223_v18 }
 0xf7d   :  { %5152 = vmatpush3.bf16.msra.mxu1 %v5149_v44 }
 0xf7e   :  { %5154 = vmatprep.subr.bf16.mxu1 %v5153_v54 }
 0xf81   :  { %5156 = vmatpush3.bf16.msra.mxu1 %v5153_v54 }
 0xf82   :  { %4951 = vmatprep.subr.mxu1 %v5693_v31 }
0x104f   :  { %v4907_v20 = vpop.f32.mrb[20].mxu1 }
0x1050   :  { %v2309_v21 = vadd.f32 %v4907_v20, %v4516_v19  ;;  %v2303_v14 = vpop.f32.mrb[21].mxu1 }
0x1051   :  { %v2304_v22 = vadd.f32 %v4516_v19, %v2303_v14 }
0x1052   :  { %v2313_v23 = vadd.f32 %v2309_v21, %v2134_v9 }
0x1053   :  { %v2312_v24 = vadd.f32 %v2304_v22, %v2133_v7  ;;  %v4528_v7 = vld [vmem:[%s6668_s12 + $0x38] sm:$0xff] }
0x1054   :  { %v2317_v41 = vsel %vm413_vm1, %v2313_v23, 0.0  ;;  %v5145_v10 = vpack.c.bf16 %v4528_v7, %v4527_v6 }
0x1055   :  { %2318 = vadd.xlane.f32.xlu1 %v2317_v41  ;;  %v2314_v25 = vsel %vm413_vm1, %v2312_v24, 0.0 }
0x1056   :  { %2315 = vadd.xlane.f32.xlu0 %v2314_v25 }
0x10e2   :  { %v2319_v26 = vpop.xlane.xlu1 %2318 }
0x10e3   :  { %v2321_v16 = vmul.f32 0.03125, %v2319_v26  ;;  %v2316_v27 = vpop.xlane.xlu0 %2315 }
0x10e4   :  { %v2320_v30 = vmul.f32 0.03125, %v2316_v27 }
0x10e5   :  { %v2323_v32 = vsub.f32 %v2313_v23, %v2321_v16 }
0x10e6   :  { %v2322_v33 = vsub.f32 %v2312_v24, %v2320_v30 }
0x10e7   :  { %v2325_v34 = vmul.f32 %v2323_v32, %v2323_v32 }
0x10e8   :  { %v2324_v35 = vmul.f32 %v2322_v33, %v2322_v33 }
0x10e9   :  { %v2329_v37 = vsel %vm413_vm1, %v2325_v34, 0.0 }
0x10ea   :  { %2330 = vadd.xlane.f32.xlu1 %v2329_v37  ;;  %v2326_v38 = vsel %vm413_vm1, %v2324_v35, 0.0 }
0x10eb   :  { %2327 = vadd.xlane.f32.xlu0 %v2326_v38 }
0x1177   :  { %v2331_v57 = vpop.xlane.xlu1 %2330 }
0x1178   :  { %v2333_v58 = vmul.f32 0.03125, %v2331_v57  ;;  %v2328_v59 = vpop.xlane.xlu0 %2327 }
0x1179   :  { %v2332_v60 = vmul.f32 0.03125, %v2328_v59 }
0x117a   :  { %v2335_v61 = vadd.f32 1e-05, %v2333_v58 }
0x117b   :  { %v2334_v62 = vadd.f32 1e-05, %v2332_v60 }
0x117c   :  { %5259 = vrsqrt.f32 %v2335_v61 }
0x117d   :  { %5261 = vrsqrt.f32 %v2334_v62 }
0x1186   :  { %v5260_v63 = vpop.eup %5259 }
0x1187   :  { %v5262_v1 = vpop.eup %5261  ;;  %v2339_v2 = vmul.f32 %v5260_v63, %v2323_v32 }
0x1188   :  { %v2338_v3 = vmul.f32 %v5262_v1, %v2322_v33 }
0x1189   :  { %v2347_v4 = vmul.f32 %v4519_v0, %v2339_v2 }
0x118a   :  { %v2346_v5 = vmul.f32 %v4519_v0, %v2338_v3 }
0x118b   :  { %v6354_v9 = vadd.f32 %v4520_v48, %v2347_v4 }
0x118c   :  { %v6352_v8 = vadd.f32 %v4520_v48, %v2346_v5  ;;  %v6439_v48 = vld [vmem:[#allocation7] sm:$0xff] }
0x118e   :  { %4916 = vmatprep.mubr.msk.f32.mxu0 %vm413_vm1, %v6352_v8  ;;  %4938 = vmatprep.mubr.msk.f32.mxu1 %vm413_vm1, %v6352_v8 }
0x118f   :  { %4917 = vmatmul.mubr.msk.f32.vlgmr.msra.gmra.mrb[24].mxu0 %vm413_vm1, %v6354_v9  ;;  %4939 = vmatmul.mubr.msk.f32.vlgmr.msra.gmra.mrb[22].mxu1 %vm413_vm1, %v6354_v9 }
0x1190   :  { %5144 = vmatpush3.bf16.msra.mxu0 %v5141_v56  ;;  %4927 = vmatprep.mubr.msk.f32.mxu0 %vm413_vm1, %v6352_v8 }
0x1191   :  { %5146 = vmatprep.subr.bf16.mxu0 %v5145_v10  ;;  %4953 = vmatprep.mubr.msk.f32.mxu1 %vm5694_vm2, %v5693_v31 }
0x1194   :  { %5148 = vmatpush3.bf16.msra.mxu0 %v5145_v10 }
0x1195   :  { %4941 = vmatprep.subr.mxu0 %v5693_v31 }
0x1197   :  { %4928 = vmatmul.mubr.msk.f32.vlgmr.msra.gmra.mrb[26].mxu0 %vm413_vm1, %v6354_v9 }
0x1198   :  { %4943 = vmatprep.mubr.msk.f32.mxu0 %vm5694_vm2, %v5693_v31 }
0x1262   :  { %v4918_v12 = vpop.f32.mrb[24].mxu0  ;;  %v4940_v13 = vpop.f32.mrb[22].mxu1 }
0x1263   :  { %v2488_v36 = vpop.f32.mrb[25].mxu0  ;;  %v2652_v40 = vpop.f32.mrb[23].mxu1  ;;  %v2494_v14 = vadd.f32 %v4918_v12, %v4544_v15  ;;  %v6395_v41 = vadd.f32 %v4940_v13, %v4550_v11 }
0x1264   :  { %v6373_v45 = vadd.f32 %v4550_v11, %v2652_v40  ;;  %v2489_v19 = vadd.f32 %v4544_v15, %v2488_v36 }
0x1265   :  { %v6392_v24 = vmul.f32 0.35355338, %v2494_v14 }
0x1266   :  { %4952 = vmatpush3.msra.mxu1 %v6373_v45  ;;  %v6381_v22 = vmul.f32 0.35355338, %v2489_v19 }
0x1267   :  { %4961 = vmatprep.subr.mxu1 %v5693_v31 }
0x126a   :  { %v4929_v18 = vpop.f32.mrb[26].mxu0 }
0x126b   :  { %v2571_v20 = vpop.f32.mrb[27].mxu0  ;;  %v6384_v23 = vadd.f32 %v4929_v18, %v4547_v17 }
0x126c   :  { %v6377_v21 = vadd.f32 %v4547_v17, %v2571_v20 }
0x126e   :  { %4942 = vmatpush3.xpose.msk.msra.mxu0 %vm659_vm3, %v6377_v21 }
0x126f   :  { %4946 = vmatprep.subr.mxu0 %v5693_v31 }
0x1271   :  { %4944 = vmatmul.mubr.msk.f32.vlgmr.msra.gmra.mrb[28].mxu0 %vm659_vm3, %v6381_v22 }
0x1272   :  { %4947 = vmatpush3.xpose.msk.msra.mxu0 %vm659_vm3, %v6384_v23  ;;  %4948 = vmatprep.mubr.msk.f32.mxu0 %vm5694_vm2, %v5693_v31 }
0x1273   :  { %4956 = vmatprep.subr.mxu0 %v5693_v31 }
0x1275   :  { %4949 = vmatmul.mubr.msk.f32.vlgmr.msra.gmra.mrb[30].mxu0 %vm659_vm3, %v6392_v24 }
0x1276   :  { %4957 = vmatpush3.msra.mxu0 %v6395_v41  ;;  %4958 = vmatprep.mubr.msk.f32.mxu0 %vm5694_vm2, %v5693_v31 }
0x1277   :  { %4966 = vmatprep.subr.mxu0 %v5693_v31 }
0x1344   :  { %v2733_v25 = vpop.f32.mrb[28].mxu0 }
0x1345   :  { %v2734_v26 = vadd.f32 %v2733_v25, %v6130_v49  ;;  %v4945_v16 = vpop.f32.mrb[29].mxu0 }
0x1347   :  { %v2813_v27 = vsel %vm659_vm3, %v2734_v26, -inf }
0x1348   :  { %2814 = vmax.xlane.f32.xlu0 %v2813_v27  ;;  %v2809_v30 = vpop.f32.mrb[30].mxu0 }
0x1349   :  { %v2810_v32 = vadd.f32 %v2809_v30, %v6130_v49  ;;  %v4950_v33 = vpop.f32.mrb[31].mxu0 }
0x134b   :  { %v2816_v34 = vsel %vm659_vm3, %v2810_v32, -inf }
0x134c   :  { %2817 = vmax.xlane.f32.xlu1 %v2816_v34 }
0x135d   :  { %3061 = vrot.lane.b32.xlu1 %v6384_v23, %s5695_s8 }
0x1361   :  { %2981 = vrot.lane.b32.xlu1 %v6381_v22, %s5695_s8 }
0x13d5   :  { %v2815_v35 = vpop.xlane.xlu0 %2814 }
0x13d6   :  { %v2819_v37 = vsub.f32 %v2734_v26, %v2815_v35 }
0x13d8   :  { %v2821_v38 = vmul.f32 1.442695, %v2819_v37 }
0x13d9   :  { %v2818_v39 = vpop.xlane.xlu1 %2817 }
0x13da   :  { %5263 = vpow2.f32 %v2821_v38  ;;  %v2820_v29 = vsub.f32 %v2810_v32, %v2818_v39 }
0x13dc   :  { %v2823_v28 = vmul.f32 1.442695, %v2820_v29 }
0x13dd   :  { %v3062_v50 = vpop.permute.xlu1 %3061 }
0x13de   :  { %5265 = vpow2.f32 %v2823_v28 }
0x13e1   :  { %v2982_v51 = vpop.permute.xlu1 %2981 }
0x13e4   :  { %v5264_v42 = vpop.eup %5263 }
0x13e5   :  { %v2825_v43 = vsel %vm659_vm3, %v5264_v42, 0.0 }
0x13e6   :  { %2826 = vadd.xlane.f32.xlu0 %v2825_v43 }
0x13e8   :  { %v5266_v44 = vpop.eup %5265 }
0x13e9   :  { %v2828_v46 = vsel %vm659_vm3, %v5266_v44, 0.0 }
0x13ea   :  { %2829 = vadd.xlane.f32.xlu1 %v2828_v46 }
0x13fb   :  { %3059 = vrot.lane.b32.xlu1 %v6392_v24, %s5695_s8 }
0x13fc   :  { %2983 = vrot.lane.b32.xlu0 %v6377_v21, %s5695_s8 }
0x1473   :  { %v2827_v52 = vpop.xlane.xlu0 %2826 }
0x1474   :  { %5267 = vrcp.f32 %v2827_v52 }
0x1477   :  { %v2830_v53 = vpop.xlane.xlu1 %2829  ;;  %v2984_v47 = vpop.permute.xlu0 %2983 }
0x1478   :  { %5269 = vrcp.f32 %v2830_v53 }
0x147b   :  { %v3060_v58 = vpop.permute.xlu1 %3059 }
0x147e   :  { %v5268_v54 = vpop.eup %5267 }
0x147f   :  { %v2833_v55 = vmul.f32 %v5268_v54, %v5264_v42 }
0x1481   :  { %4954 = vmatmul.mubr.msk.f32.vlgmr.msra.gmra.mrb[24].mxu1 %vm659_vm3, %v2833_v55 }
0x1482   :  { %v5270_v56 = vpop.eup %5269  ;;  %4962 = vmatpush3.xpose.msk.msra.mxu1 %vm659_vm3, %v2984_v47  ;;  %4963 = vmatprep.mubr.msk.f32.mxu1 %vm5694_vm2, %v5693_v31 }
0x1483   :  { %v2834_v57 = vmul.f32 %v5270_v56, %v5266_v44  ;;  %4971 = vmatprep.subr.mxu1 %v5693_v31 }
0x1485   :  { %4959 = vmatmul.mubr.msk.f32.vlgmr.msra.gmra.mrb[32].mxu0 %vm659_vm3, %v2834_v57  ;;  %4964 = vmatmul.mubr.msk.f32.vlgmr.msra.gmra.mrb[26].mxu1 %vm659_vm3, %v2982_v51 }
0x1486   :  { %4967 = vmatpush3.xpose.msk.msra.mxu0 %vm659_vm3, %v3062_v50  ;;  %4968 = vmatprep.mubr.msk.f32.mxu0 %vm5694_vm2, %v5693_v31 }
0x1487   :  { %4976 = vmatprep.subr.mxu0 %v5693_v31  ;;  %4973 = vmatprep.mubr.msk.f32.mxu1 %vm5694_vm2, %v5693_v31 }
0x1489   :  { %4969 = vmatmul.mubr.msk.f32.vlgmr.msra.gmra.mrb[34].mxu0 %vm659_vm3, %v3060_v58 }
0x148a   :  { %4978 = vmatprep.mubr.msk.f32.mxu0 %vm5694_vm2, %v5693_v31 }
0x1554   :  { %v6433_v59 = vpop.f32.mrb[24].mxu1 }
0x1555   :  { %v4955_v60 = vpop.f32.mrb[25].mxu1 }
0x1558   :  { %v6435_v61 = vpop.f32.mrb[32].mxu0  ;;  %v3055_v62 = vpop.f32.mrb[26].mxu1 }
0x1559   :  { %v3056_v63 = vadd.f32 %v3055_v62, %v6130_v49  ;;  %v4960_v0 = vpop.f32.mrb[33].mxu0  ;;  %v4965_v1 = vpop.f32.mrb[27].mxu1 }
0x155b   :  { %v3137_v2 = vsel %vm659_vm3, %v3056_v63, -inf }
0x155c   :  { %3138 = vmax.xlane.f32.xlu0 %v3137_v2  ;;  %v3133_v3 = vpop.f32.mrb[34].mxu0 }
0x155d   :  { %v3134_v4 = vadd.f32 %v6439_v48, %v3133_v3  ;;  %v4970_v5 = vpop.f32.mrb[35].mxu0 }
0x155f   :  { %v3140_v6 = vsel %vm659_vm3, %v3134_v4, -inf }
0x1560   :  { %3141 = vmax.xlane.f32.xlu1 %v3140_v6 }
0x1571   :  { %3237 = vrot.lane.b32.xlu1 %v6395_v41, %s5695_s8 }
0x1572   :  { %3160 = vrot.lane.b32.xlu0 %v6373_v45, %s5695_s8 }
0x1575   :  { %3315 = vrot.lane.b32.xlu1 %v6377_v21, %s5696_s5 }
0x1579   :  { %3393 = vrot.lane.b32.xlu1 %v6384_v23, %s5696_s5 }
0x157d   :  { %3391 = vrot.lane.b32.xlu1 %v6392_v24, %s5696_s5 }
0x15e9   :  { %v3139_v49 = vpop.xlane.xlu0 %3138 }
0x15ea   :  { %v3143_v7 = vsub.f32 %v3056_v63, %v3139_v49 }
0x15ec   :  { %v3145_v10 = vmul.f32 1.442695, %v3143_v7 }
0x15ed   :  { %v3161_v11 = vpop.permute.xlu0 %3160  ;;  %v3142_v12 = vpop.xlane.xlu1 %3141 }
0x15ee   :  { %5271 = vpow2.f32 %v3145_v10  ;;  %v3144_v13 = vsub.f32 %v3134_v4, %v3142_v12  ;;  %4972 = vmatpush3.msra.mxu1 %v3161_v11 }
0x15ef   :  { %4981 = vmatprep.subr.mxu1 %v5693_v31 }
0x15f0   :  { %v3147_v36 = vmul.f32 1.442695, %v3144_v13 }
0x15f1   :  { %v3238_v40 = vpop.permute.xlu1 %3237 }
0x15f2   :  { %5273 = vpow2.f32 %v3147_v36  ;;  %4977 = vmatpush3.msra.mxu0 %v3238_v40 }
0x15f3   :  { %4986 = vmatprep.subr.mxu0 %v5693_v31 }
0x15f5   :  { %v3316_v25 = vpop.permute.xlu1 %3315 }
0x15f8   :  { %v5272_v15 = vpop.eup %5271 }
0x15f9   :  { %v3149_v17 = vsel %vm659_vm3, %v5272_v15, 0.0  ;;  %v3394_v30 = vpop.permute.xlu1 %3393 }
0x15fa   :  { %3150 = vadd.xlane.f32.xlu0 %v3149_v17 }
0x15fc   :  { %v5274_v18 = vpop.eup %5273 }
0x15fd   :  { %v3152_v19 = vsel %vm659_vm3, %v5274_v18, 0.0  ;;  %v3392_v34 = vpop.permute.xlu1 %3391 }
0x15fe   :  { %3153 = vadd.xlane.f32.xlu0 %v3152_v19 }
0x1614   :  { %3313 = vrot.lane.b32.xlu0 %v6381_v22, %s5696_s5 }
0x1687   :  { %v3151_v20 = vpop.xlane.xlu0 %3150 }
0x1688   :  { %5275 = vrcp.f32 %v3151_v20 }
0x168b   :  { %v3154_v14 = vpop.xlane.xlu0 %3153 }
0x168c   :  { %5277 = vrcp.f32 %v3154_v14 }
0x168f   :  { %v3314_v33 = vpop.permute.xlu0 %3313 }
0x1692   :  { %v5276_v26 = vpop.eup %5275 }
0x1693   :  { %v3157_v16 = vmul.f32 %v5276_v26, %v5272_v15 }
0x1695   :  { %4974 = vmatmul.mubr.msk.f32.vlgmr.msra.gmra.mrb[28].mxu1 %vm659_vm3, %v3157_v16 }
0x1696   :  { %v5278_v27 = vpop.eup %5277  ;;  %4982 = vmatpush3.xpose.msk.msra.mxu1 %vm659_vm3, %v3316_v25  ;;  %4983 = vmatprep.mubr.msk.f32.mxu1 %vm5694_vm2, %v5693_v31 }
0x1697   :  { %v3158_v32 = vmul.f32 %v5278_v27, %v5274_v18  ;;  %4991 = vmatprep.subr.mxu1 %v5693_v31 }
0x1699   :  { %4979 = vmatmul.mubr.msk.f32.vlgmr.msra.gmra.mrb[36].mxu0 %vm659_vm3, %v3158_v32  ;;  %4984 = vmatmul.mubr.msk.f32.vlgmr.msra.gmra.mrb[30].mxu1 %vm659_vm3, %v3314_v33 }
0x169a   :  { %4987 = vmatpush3.xpose.msk.msra.mxu0 %vm659_vm3, %v3394_v30  ;;  %4988 = vmatprep.mubr.msk.f32.mxu0 %vm5694_vm2, %v5693_v31 }
0x169b   :  { %4996 = vmatprep.subr.mxu0 %v5693_v31  ;;  %4993 = vmatprep.mubr.msk.f32.mxu1 %vm5694_vm2, %v5693_v31 }
0x169d   :  { %4989 = vmatmul.mubr.msk.f32.vlgmr.msra.gmra.mrb[38].mxu0 %vm659_vm3, %v3392_v34 }
0x169e   :  { %4998 = vmatprep.mubr.msk.f32.mxu0 %vm5694_vm2, %v5693_v31 }
0x1768   :  { %v6475_v35 = vpop.f32.mrb[28].mxu1 }
0x1769   :  { %v4975_v37 = vpop.f32.mrb[29].mxu1 }
0x176c   :  { %v6477_v38 = vpop.f32.mrb[36].mxu0  ;;  %v3387_v39 = vpop.f32.mrb[30].mxu1 }
0x176d   :  { %v3388_v29 = vadd.f32 %v6439_v48, %v3387_v39  ;;  %v4980_v28 = vpop.f32.mrb[37].mxu0  ;;  %v4985_v42 = vpop.f32.mrb[31].mxu1 }
0x176e   :  { %v2378_v28 = vld [vmem:[#allocation16 + $0x20] sm:$0xff]  ;;  %v2379_v42 = vld [vmem:[#allocation16 + $0x28] sm:$0xff] }
0x176f   :  { %v3469_v43 = vsel %vm659_vm3, %v3388_v29, -inf }
0x1770   :  { %3470 = vmax.xlane.f32.xlu0 %v3469_v43  ;;  %v3465_v44 = vpop.f32.mrb[38].mxu0  ;;  %v5157_v43 = vpack.c.bf16 %v2379_v42, %v2378_v28  ;;  %v4581_v42 = vld [vmem:[#allocation20 + $0x1] ss:$0 sm:$0xff] }
0x1771   :  { %v3466_v46 = vadd.f32 %v6439_v48, %v3465_v44  ;;  %v4990_v50 = vpop.f32.mrb[39].mxu0  ;;  %v2381_v44 = vld [vmem:[#allocation16 + $0x38] sm:$0xff] }
0x1773   :  { %v3472_v51 = vsel %vm659_vm3, %v3466_v46, -inf }
0x1774   :  { %3473 = vmax.xlane.f32.xlu1 %v3472_v51 }
0x1785   :  { %3567 = vrot.lane.b32.xlu1 %v6395_v41, %s5696_s5 }
0x1786   :  { %3491 = vrot.lane.b32.xlu0 %v6373_v45, %s5696_s5 }
0x1789   :  { %3645 = vrot.lane.b32.xlu1 %v6377_v21, %s5697_s23 }
0x178d   :  { %3723 = vrot.lane.b32.xlu1 %v6384_v23, %s5697_s23 }
0x1791   :  { %3721 = vrot.lane.b32.xlu1 %v6392_v24, %s5697_s23 }
0x17fd   :  { %v3471_v52 = vpop.xlane.xlu0 %3470 }
0x17fe   :  { %v3475_v53 = vsub.f32 %v3388_v29, %v3471_v52 }
0x1800   :  { %v3477_v54 = vmul.f32 1.442695, %v3475_v53 }
0x1801   :  { %v3492_v55 = vpop.permute.xlu0 %3491  ;;  %v3474_v47 = vpop.xlane.xlu1 %3473 }
0x1802   :  { %5279 = vpow2.f32 %v3477_v54  ;;  %v3476_v56 = vsub.f32 %v3466_v46, %v3474_v47  ;;  %4992 = vmatpush3.msra.mxu1 %v3492_v55 }
0x1803   :  { %5001 = vmatprep.subr.mxu1 %v5693_v31 }
0x1804   :  { %v3479_v57 = vmul.f32 1.442695, %v3476_v56 }
0x1805   :  { %v3568_v58 = vpop.permute.xlu1 %3567 }
0x1806   :  { %5281 = vpow2.f32 %v3479_v57  ;;  %4997 = vmatpush3.msra.mxu0 %v3568_v58 }
0x1807   :  { %5006 = vmatprep.subr.mxu0 %v5693_v31 }
0x1809   :  { %v3646_v0 = vpop.permute.xlu1 %3645 }
0x180c   :  { %v5280_v21 = vpop.eup %5279 }
0x180d   :  { %v3481_v23 = vsel %vm659_vm3, %v5280_v21, 0.0  ;;  %v3724_v4 = vpop.permute.xlu1 %3723 }
0x180e   :  { %3482 = vadd.xlane.f32.xlu0 %v3481_v23 }
0x1810   :  { %v5282_v24 = vpop.eup %5281 }
0x1811   :  { %v3484_v60 = vsel %vm659_vm3, %v5282_v24, 0.0  ;;  %v3722_v6 = vpop.permute.xlu1 %3721 }
0x1812   :  { %3485 = vadd.xlane.f32.xlu0 %v3484_v60 }
0x1828   :  { %3643 = vrot.lane.b32.xlu0 %v6381_v22, %s5697_s23 }
0x189b   :  { %v3483_v62 = vpop.xlane.xlu0 %3482 }
0x189c   :  { %5283 = vrcp.f32 %v3483_v62 }
0x189f   :  { %v3486_v63 = vpop.xlane.xlu0 %3485 }
0x18a0   :  { %5285 = vrcp.f32 %v3486_v63 }
0x18a3   :  { %v3644_v22 = vpop.permute.xlu0 %3643 }
0x18a6   :  { %v5284_v1 = vpop.eup %5283 }
0x18a7   :  { %v3489_v2 = vmul.f32 %v5284_v1, %v5280_v21 }
0x18a9   :  { %4994 = vmatmul.mubr.msk.f32.vlgmr.msra.gmra.mrb[32].mxu1 %vm659_vm3, %v3489_v2 }
0x18aa   :  { %v5286_v3 = vpop.eup %5285  ;;  %5002 = vmatpush3.xpose.msk.msra.mxu1 %vm659_vm3, %v3646_v0  ;;  %5003 = vmatprep.mubr.msk.f32.mxu1 %vm5694_vm2, %v5693_v31  ;;  %v4577_v0 = vld [vmem:[#allocation17 + $0x1] ss:$0 sm:$0xff] }
0x18ab   :  { %v3490_v5 = vmul.f32 %v5286_v3, %v5282_v24  ;;  %5011 = vmatprep.subr.mxu1 %v5693_v31 }
0x18ad   :  { %4999 = vmatmul.mubr.msk.f32.vlgmr.msra.gmra.mrb[40].mxu0 %vm659_vm3, %v3490_v5  ;;  %5004 = vmatmul.mubr.msk.f32.vlgmr.msra.gmra.mrb[34].mxu1 %vm659_vm3, %v3644_v22 }
0x18ae   :  { %5007 = vmatpush3.xpose.msk.msra.mxu0 %vm659_vm3, %v3724_v4  ;;  %5008 = vmatprep.mubr.msk.f32.mxu0 %vm5694_vm2, %v5693_v31 }
0x18af   :  { %5016 = vmatprep.subr.mxu0 %v5693_v31  ;;  %5013 = vmatprep.mubr.msk.f32.mxu1 %vm5694_vm2, %v5693_v31 }
0x18b1   :  { %5009 = vmatmul.mubr.msk.f32.vlgmr.msra.gmra.mrb[42].mxu0 %vm659_vm3, %v3722_v6 }
0x18b2   :  { %5018 = vmatprep.mubr.msk.f32.mxu0 %vm5694_vm2, %v5693_v31 }
0x197c   :  { %v3563_v49 = vpop.f32.mrb[32].mxu1 }
0x197d   :  { %v4995_v7 = vpop.f32.mrb[33].mxu1 }
0x1980   :  { %v3639_v10 = vpop.f32.mrb[40].mxu0  ;;  %v3717_v11 = vpop.f32.mrb[34].mxu1 }
0x1981   :  { %v3718_v12 = vadd.f32 %v6439_v48, %v3717_v11  ;;  %v5000_v13 = vpop.f32.mrb[41].mxu0  ;;  %v5005_v36 = vpop.f32.mrb[35].mxu1 }
0x1983   :  { %v3799_v40 = vsel %vm659_vm3, %v3718_v12, -inf }
0x1984   :  { %3800 = vmax.xlane.f32.xlu0 %v3799_v40  ;;  %v3795_v15 = vpop.f32.mrb[42].mxu0 }
0x1985   :  { %v3796_v17 = vadd.f32 %v6439_v48, %v3795_v15  ;;  %v5010_v18 = vpop.f32.mrb[43].mxu0  ;;  %v2390_v15 = vld [vmem:[#allocation22 + $0x28] sm:$0xff] }
0x1986   :  { %v2391_v18 = vld [vmem:[#allocation22 + $0x30] sm:$0xff] }
0x1987   :  { %v3802_v19 = vsel %vm659_vm3, %v3796_v17, -inf }
0x1988   :  { %3803 = vmax.xlane.f32.xlu1 %v3802_v19  ;;  %v2392_v19 = vld [vmem:[#allocation22 + $0x38] sm:$0xff] }
0x1999   :  { %3897 = vrot.lane.b32.xlu1 %v6395_v41, %s5697_s23 }
0x199d   :  { %3975 = vrot.lane.b32.xlu1 %v6475_v35, %s6663_s25 }
0x19a1   :  { %3977 = vrot.lane.b32.xlu1 %v6477_v38, %s6663_s25 }
0x19a5   :  { %3985 = vrot.lane.b32.xlu1 %v3639_v10, %s5679_s0 }
0x1a11   :  { %v3801_v31 = vpop.xlane.xlu0 %3800 }
0x1a12   :  { %v3805_v20 = vsub.f32 %v3718_v12, %v3801_v31  ;;  %v5169_v31 = vpack.c.bf16 %v2392_v19, %v2391_v18 }
0x1a14   :  { %v3807_v14 = vmul.f32 1.442695, %v3805_v20  ;;  %v4533_v20 = vld [vmem:[%s6629_s17 + $0x40] sm:$0xff] }
0x1a15   :  { %v3804_v25 = vpop.xlane.xlu1 %3803 }
0x1a16   :  { %5287 = vpow2.f32 %v3807_v14  ;;  %v3806_v48 = vsub.f32 %v3796_v17, %v3804_v25  ;;  %v4534_v14 = vld [vmem:[%s6629_s17 + $0x48] sm:$0xff]  ;;  %v4535_v25 = vld [vmem:[%s6629_s17 + $0x50] sm:$0xff] }
0x1a18   :  { %v3809_v26 = vmul.f32 1.442695, %v3806_v48  ;;  %v5173_v48 = vpack.c.bf16 %v4534_v14, %v4533_v20 }
0x1a19   :  { %v3898_v16 = vpop.permute.xlu1 %3897 }
0x1a1a   :  { %5289 = vpow2.f32 %v3809_v26  ;;  %5017 = vmatpush3.msra.mxu0 %v3898_v16  ;;  %v4536_v26 = vld [vmem:[%s6629_s17 + $0x58] sm:$0xff] }
0x1a1b   :  { %v5177_v16 = vpack.c.bf16 %v4536_v26, %v4535_v25 }
0x1a1d   :  { %v3976_v54 = vpop.permute.xlu1 %3975 }
0x1a1e   :  { %v3997_v56 = vsel %vm659_vm3, %v6433_v59, %v3976_v54 }
0x1a20   :  { %v5288_v27 = vpop.eup %5287 }
0x1a21   :  { %v3811_v41 = vsel %vm659_vm3, %v5288_v27, 0.0  ;;  %v3978_v55 = vpop.permute.xlu1 %3977 }
0x1a22   :  { %3812 = vadd.xlane.f32.xlu0 %v3811_v41  ;;  %v3998_v24 = vsel %vm659_vm3, %v6435_v61, %v3978_v55  ;;  %v4538_v41 = vld [vmem:[%s6629_s17 + $0x68] sm:$0xff]  ;;  %v4582_v55 = vld [vmem:[#allocation23 + $0x1] ss:$0 sm:$0xff] }
0x1a24   :  { %v5290_v30 = vpop.eup %5289 }
0x1a25   :  { %v3814_v32 = vsel %vm659_vm3, %v5290_v30, 0.0  ;;  %v3986_v57 = vpop.permute.xlu1 %3985 }
0x1a26   :  { %3815 = vadd.xlane.f32.xlu0 %v3814_v32  ;;  %v4000_v60 = vsel %vm284_vm0, %v3998_v24, %v3986_v57  ;;  %v4585_v24 = vld [vmem:[%s6630_s18 + $0x1] ss:$0 sm:$0xff] }
0x1a3c   :  { %3821 = vrot.lane.b32.xlu0 %v6373_v45, %s5697_s23  ;;  %v2380_v45 = vld [vmem:[#allocation16 + $0x30] sm:$0xff] }
0x1a3d   :  { %v5161_v46 = vpack.c.bf16 %v2381_v44, %v2380_v45 }
0x1a40   :  { %3983 = vrot.lane.b32.xlu0 %v3563_v49, %s5679_s0 }
0x1aaf   :  { %v3813_v33 = vpop.xlane.xlu0 %3812 }
0x1ab0   :  { %5291 = vrcp.f32 %v3813_v33 }
0x1ab3   :  { %v3816_v34 = vpop.xlane.xlu0 %3815 }
0x1ab4   :  { %5293 = vrcp.f32 %v3816_v34 }
0x1ab7   :  { %v3822_v35 = vpop.permute.xlu0 %3821 }
0x1ab8   :  { %5012 = vmatpush3.msra.mxu1 %v3822_v35 }
0x1ab9   :  { %5158 = vmatprep.subr.bf16.mxu1 %v5157_v43 }
0x1aba   :  { %v5292_v37 = vpop.eup %5291 }
0x1abb   :  { %v3819_v38 = vmul.f32 %v5292_v37, %v5288_v27  ;;  %v3984_v47 = vpop.permute.xlu0 %3983  ;;  %v4537_v27 = vld [vmem:[%s6629_s17 + $0x60] sm:$0xff] }
0x1abc   :  { %v3999_v58 = vsel %vm284_vm0, %v3997_v56, %v3984_v47 }
0x1abd   :  { %5014 = vmatmul.mubr.msk.f32.vlgmr.msra.gmra.mrb[36].mxu1 %vm659_vm3, %v3819_v38 }
0x1abe   :  { %v5294_v39 = vpop.eup %5293  ;;  %5160 = vmatpush3.bf16.msra.mxu1 %v5157_v43 }
0x1abf   :  { %v3820_v29 = vmul.f32 %v5294_v39, %v5290_v30  ;;  %5162 = vmatprep.subr.bf16.mxu1 %v5161_v46  ;;  %v5181_v30 = vpack.c.bf16 %v4538_v41, %v4537_v27  ;;  %v4589_v41 = vld [vmem:[%s6632_s20 + $0x1] ss:$0 sm:$0xff] }
0x1ac1   :  { %5019 = vmatmul.mubr.msk.f32.vlgmr.msra.gmra.mrb[44].mxu0 %vm659_vm3, %v3820_v29  ;;  %v4580_v29 = vld [vmem:[#allocation19 + $0x1] ss:$0 sm:$0xff] }
0x1ac2   :  { %5164 = vmatpush3.bf16.msra.mxu1 %v5161_v46 }
0x1ac3   :  { %5174 = vmatprep.subr.bf16.mxu1 %v5173_v48 }
0x1b90   :  { %v3893_v50 = vpop.f32.mrb[36].mxu1 }
0x1b91   :  { %3991 = vrot.lane.b32.xlu0 %v3893_v50, %s5698_s2  ;;  %v5015_v51 = vpop.f32.mrb[37].mxu1 }
0x1b94   :  { %v3969_v52 = vpop.f32.mrb[44].mxu0 }
0x1b95   :  { %3993 = vrot.lane.b32.xlu1 %v3969_v52, %s5698_s2  ;;  %v5020_v53 = vpop.f32.mrb[45].mxu0  ;;  %v4539_v52 = vld [vmem:[%s6629_s17 + $0x70] sm:$0xff] }
0x1b96   :  { %v4540_v53 = vld [vmem:[%s6629_s17 + $0x78] sm:$0xff] }
0x1b97   :  { %v5185_v54 = vpack.c.bf16 %v4540_v53, %v4539_v52 }
0x1c03   :  { %v3992_v21 = vpop.permute.xlu0 %3991 }
0x1c04   :  { %v4001_v23 = vsel %vm2000_vm4, %v3999_v58, %v3992_v21 }
0x1c05   :  { %5029 = vmatprep.mubr.msk.f32.mxu1 %vm413_vm1, %v4001_v23 }
0x1c07   :  { %v3994_v62 = vpop.permute.xlu1 %3993 }
0x1c08   :  { %v4002_v63 = vsel %vm2000_vm4, %v4000_v60, %v3994_v62 }
0x1c09   :  { %5030 = vmatmul.mubr.msk.f32.vlgmr.msra.gmra.mrb[38].mxu1 %vm413_vm1, %v4002_v63 }
0x1c0a   :  { %5176 = vmatpush3.bf16.msra.mxu1 %v5173_v48  ;;  %v4588_v48 = vld [vmem:[%s6631_s19 + $0x1] ss:$0 sm:$0xff]  ;;  %s5699_s19 = smov [#allocation26]  }
0x1c0b   :  { %5178 = vmatprep.subr.bf16.mxu1 %v5177_v16  ;;  %s4453_s3 = sshll.u32 %s5699_s19, 4  ;;  %s4454_s3 = int_to_ptr.vmem [resolvable:$true] %s4453_s3 }
0x1c0c   :  { %s5634_s20 = scalar_lea.vmem %s4454_s3, 256  ;;  %p5639_p9 = scmp.lt.s32.totalorder %s4454_s3, %s4454_s3 }
0x1c0d   :  { %p5635_p8 = scmp.ne.s32.totalorder %s4454_s3, %s5634_s20  ;;  %p5640_p10 = scmp.lt.s32.totalorder %s5634_s20, %s5634_s20 }
0x1c0e   :  { %5180 = vmatpush3.bf16.msra.mxu1 %v5177_v16 }
0x1c0f   :  { %5182 = vmatprep.subr.bf16.mxu1 %v5181_v30  ;;  %p5641_p11 = por %p5640_p10, %p5639_p9 }
0x1c11   :  { %p5642_p12 = pnand %p5641_p11, %p5635_p8 }
0x1c12   :  { %5184 = vmatpush3.bf16.msra.mxu1 %v5181_v30 }
0x1c13   :  { %5186 = vmatprep.subr.bf16.mxu1 %v5185_v54 }
0x1c16   :  { %5188 = vmatpush3.bf16.msra.mxu1 %v5185_v54 }
0x1cdc   :  { %v5031_v59 = vpop.f32.mrb[38].mxu1 }
0x1cdd   :  { %v4087_v1 = vadd.f32 %v5031_v59, %v4577_v0  ;;  %v4081_v2 = vpop.f32.mrb[39].mxu1 }
0x1cde   :  { %v4082_v3 = vadd.f32 %v4577_v0, %v4081_v2 }
0x1cdf   :  { %v4091_v4 = vadd.f32 %v4087_v1, %v6354_v9 }
0x1ce0   :  { %v4090_v5 = vadd.f32 %v4082_v3, %v6352_v8  ;;  %v2389_v8 = vld [vmem:[#allocation22 + $0x20] sm:$0xff] }
0x1ce1   :  { %v4095_v22 = vsel %vm413_vm1, %v4091_v4, 0.0  ;;  %v5165_v17 = vpack.c.bf16 %v2390_v15, %v2389_v8  ;;  %v4357_v8 = vld [vmem:[#allocation25 + $0x18] sm:$0xff] }
0x1ce2   :  { %4096 = vadd.xlane.f32.xlu1 %v4095_v22  ;;  %v4092_v61 = vsel %vm413_vm1, %v4090_v5, 0.0 }
0x1ce3   :  { %4093 = vadd.xlane.f32.xlu0 %v4092_v61  ;;  %5166 = vmatprep.subr.bf16.mxu0 %v5165_v17 }
0x1ce4   :  { %5168 = vmatpush3.bf16.msra.mxu0 %v5165_v17 }
0x1ce5   :  { %5170 = vmatprep.subr.bf16.mxu0 %v5169_v31 }
0x1ce8   :  { %5172 = vmatpush3.bf16.msra.mxu0 %v5169_v31 }
0x1d6f   :  { %v4097_v6 = vpop.xlane.xlu1 %4096 }
0x1d70   :  { %v4099_v49 = vmul.f32 0.03125, %v4097_v6  ;;  %v4094_v7 = vpop.xlane.xlu0 %4093 }
0x1d71   :  { %v4098_v10 = vmul.f32 0.03125, %v4094_v7 }
0x1d72   :  { %v4101_v11 = vsub.f32 %v4091_v4, %v4099_v49 }
0x1d73   :  { %v4100_v12 = vsub.f32 %v4090_v5, %v4098_v10 }
0x1d74   :  { %v4103_v40 = vmul.f32 %v4101_v11, %v4101_v11 }
0x1d75   :  { %v4102_v13 = vmul.f32 %v4100_v12, %v4100_v12 }
0x1d76   :  { %v4107_v9 = vsel %vm413_vm1, %v4103_v40, 0.0 }
0x1d77   :  { %v4104_v36 = vsel %vm413_vm1, %v4102_v13, 0.0  ;;  %v4354_v13 = vld [vmem:[#allocation25] sm:$0xff] }
0x1d78   :  { %4105 = vadd.xlane.f32.xlu0 %v4104_v36  ;;  %v4355_v36 = vld [vmem:[#allocation25 + $0x8] sm:$0xff] }
0x1d79   :  { %v5189_v40 = vpack.c.bf16 %v4355_v36, %v4354_v13 }
0x1d7b   :  { %5190 = vmatprep.subr.bf16.mxu0 %v5189_v40 }
0x1d7c   :  { %4108 = vadd.xlane.f32.xlu0 %v4107_v9  ;;  %v4356_v9 = vld [vmem:[#allocation25 + $0x10] sm:$0xff] }
0x1d7d   :  { %v5193_v15 = vpack.c.bf16 %v4357_v8, %v4356_v9 }
0x1e05   :  { %v4106_v32 = vpop.xlane.xlu0 %4105 }
0x1e06   :  { %v4110_v33 = vmul.f32 0.03125, %v4106_v32 }
0x1e08   :  { %v4112_v34 = vadd.f32 1e-05, %v4110_v33 }
0x1e09   :  { %v4109_v35 = vpop.xlane.xlu0 %4108 }
0x1e0a   :  { %5295 = vrsqrt.f32 %v4112_v34  ;;  %v4111_v37 = vmul.f32 0.03125, %v4109_v35  ;;  %v4590_v35 = vld [vmem:[%s6669_s4] ss:$0 sm:$0xff] }
0x1e0c   :  { %v4113_v38 = vadd.f32 1e-05, %v4111_v37 }
0x1e0e   :  { %5297 = vrsqrt.f32 %v4113_v38 }
0x1e14   :  { %v5296_v39 = vpop.eup %5295 }
0x1e15   :  { %v4116_v28 = vmul.f32 %v5296_v39, %v4100_v12 }
0x1e17   :  { %v4124_v43 = vmul.f32 %v4580_v29, %v4116_v28 }
0x1e18   :  { %v5298_v45 = vpop.eup %5297 }
0x1e19   :  { %v4117_v44 = vmul.f32 %v5298_v45, %v4101_v11  ;;  %v4132_v46 = vadd.f32 %v4581_v42, %v4124_v43 }
0x1e1b   :  { %v4125_v50 = vmul.f32 %v4580_v29, %v4117_v44  ;;  %5040 = vmatprep.mubr.msk.f32.mxu0 %vm413_vm1, %v4132_v46 }
0x1e1d   :  { %v4133_v51 = vadd.f32 %v4581_v42, %v4125_v50 }
0x1e1f   :  { %5041 = vmatmul.mubr.msk.f32.vlgmr.msra.gmra.mrb[46].mxu0 %vm413_vm1, %v4133_v51 }
0x1e20   :  { %5192 = vmatpush3.bf16.msra.mxu0 %v5189_v40 }
0x1e21   :  { %5194 = vmatprep.subr.bf16.mxu0 %v5193_v15 }
0x1e24   :  { %5196 = vmatpush3.bf16.msra.mxu0 %v5193_v15 }
0x1ef2   :  { %v5042_v47 = vpop.f32.mrb[46].mxu0 }
0x1ef3   :  { %v4218_v56 = vadd.f32 %v5042_v47, %v4582_v55  ;;  %v4212_v57 = vpop.f32.mrb[47].mxu0 }
0x1ef4   :  { %v4213_v58 = vadd.f32 %v4582_v55, %v4212_v57 }
0x1ef5   :  { %v4222_v23 = vmax.f32 %v4218_v56, 0.0 }
0x1ef6   :  { %v4221_v21 = vmax.f32 %v4213_v58, 0.0 }
0x1ef8   :  { %5059 = vmatprep.mubr.msk.f32.mxu1 %vm2230_vm5, %v4221_v21 }
0x1ef9   :  { %5060 = vmatmul.mubr.msk.f32.vlgmr.msra.gmra.mrb[40].mxu1 %vm2230_vm5, %v4222_v23 }
0x1fcc   :  { %v5061_v60 = vpop.f32.mrb[40].mxu1 }
0x1fcd   :  { %v4307_v62 = vadd.f32 %v5061_v60, %v4585_v24  ;;  %v4301_v63 = vpop.f32.mrb[41].mxu1 }
0x1fce   :  { %v4302_v0 = vadd.f32 %v4585_v24, %v4301_v63 }
0x1fcf   :  { %v4311_v59 = vadd.f32 %v4307_v62, %v4133_v51 }
0x1fd0   :  { %v4310_v1 = vadd.f32 %v4302_v0, %v4132_v46 }
0x1fd1   :  { %v4315_v2 = vsel %vm413_vm1, %v4311_v59, 0.0 }
0x1fd2   :  { %4316 = vadd.xlane.f32.xlu1 %v4315_v2  ;;  %v4312_v3 = vsel %vm413_vm1, %v4310_v1, 0.0 }
0x1fd3   :  { %4313 = vadd.xlane.f32.xlu0 %v4312_v3 }
0x205f   :  { %v4317_v4 = vpop.xlane.xlu1 %4316 }
0x2060   :  { %v4319_v5 = vmul.f32 0.03125, %v4317_v4  ;;  %v4314_v22 = vpop.xlane.xlu0 %4313 }
0x2061   :  { %v4318_v61 = vmul.f32 0.03125, %v4314_v22 }
0x2062   :  { %v4321_v6 = vsub.f32 %v4311_v59, %v4319_v5 }
0x2063   :  { %v4320_v49 = vsub.f32 %v4310_v1, %v4318_v61 }
0x2064   :  { %v4323_v7 = vmul.f32 %v4321_v6, %v4321_v6 }
0x2065   :  { %v4322_v10 = vmul.f32 %v4320_v49, %v4320_v49 }
0x2066   :  { %v4327_v11 = vsel %vm413_vm1, %v4323_v7, 0.0 }
0x2067   :  { %4328 = vadd.xlane.f32.xlu1 %v4327_v11  ;;  %v4324_v12 = vsel %vm413_vm1, %v4322_v10, 0.0 }
0x2068   :  { %4325 = vadd.xlane.f32.xlu0 %v4324_v12 }
0x20f4   :  { %v4329_v17 = vpop.xlane.xlu1 %4328 }
0x20f5   :  { %v4331_v18 = vmul.f32 0.03125, %v4329_v17  ;;  %v4326_v19 = vpop.xlane.xlu0 %4325 }
0x20f6   :  { %v4330_v31 = vmul.f32 0.03125, %v4326_v19 }
0x20f7   :  { %v4333_v20 = vadd.f32 1e-05, %v4331_v18 }
0x20f8   :  { %v4332_v14 = vadd.f32 1e-05, %v4330_v31 }
0x20f9   :  { %5299 = vrsqrt.f32 %v4333_v20 }
0x20fa   :  { %5301 = vrsqrt.f32 %v4332_v14 }
0x2103   :  { %v5300_v25 = vpop.eup %5299 }
0x2104   :  { %v5302_v26 = vpop.eup %5301  ;;  %v4337_v16 = vmul.f32 %v5300_v25, %v4321_v6 }
0x2105   :  { %v4336_v27 = vmul.f32 %v5302_v26, %v4320_v49 }
0x2106   :  { %v4345_v30 = vmul.f32 %v4588_v48, %v4337_v16 }
0x2107   :  { %v4344_v32 = vmul.f32 %v4588_v48, %v4336_v27 }
0x2108   :  { %v4353_v34 = vadd.f32 %v4589_v41, %v4345_v30 }
0x2109   :  { %v4352_v33 = vadd.f32 %v4589_v41, %v4344_v32 }
0x210b   :  { %5070 = vmatprep.mubr.msk.f32.mxu0 %vm413_vm1, %v4352_v33 }
0x210c   :  { %5071 = vmatmul.mubr.msk.f32.vlgmr.msra.gmra.mrb[48].mxu0 %vm413_vm1, %v4353_v34 }
0x21df   :  { %v5072_v37 = vpop.f32.mrb[48].mxu0 }
0x21e0   :  { %v4443_v38 = vadd.f32 %v5072_v37, %v4590_v35  ;;  %v4437_v39 = vpop.f32.mrb[49].mxu0 }
0x21e1   :  { %v4438_v29 = vadd.f32 %v4590_v35, %v4437_v39 }
0x21e2   :  { %4447 = vst [vmem:[#allocation26 + $0x8] sm:$0xff] %v4443_v38 }
0x21e3   :  { %4446 = vst [vmem:[#allocation26] sm:$0xff] %v4438_v29 }
0x21e4   :  { %5645 = shalt.err (!%p5642_p12)
}
0x21e5   :  { %s6670_s12 = sld [smem:[#allocation45_spill]] }
0x21eb   :  { %s5646_s8 = scalar_lea.hbm %s6670_s12, 256 }
0x21ec   :  { %p5647_p13 = scmp.ne.s32.totalorder %s6670_s12, %s5646_s8  ;;  %p5650_p0 = scmp.lt.u32.totalorder %s5646_s8, %s6670_s12 }
0x21ee   :  { %p5652_p1 = pnand %p5650_p0, %p5647_p13 }
0x21f0   :  { %5655 = shalt.err (!%p5652_p1)
}
0x21f1   :  { %4459 = dma.vmem_to_hbm [thread:$0]  %s4454_s3, 256, %s6670_s12, [#allocation4], %s6664_s29, %s6664_s29, %s6663_s25  }
0x21f2   :  { %5672 = dma.done.wait [#allocation4], 256  }
0x21f3   :  { %5673 = vsyncadd [#allocation4], 4294967040 }
0x21f4   :  { %4463 = vsyncpa [#allocation3], 1 }
0x21f5   :  { %4464 = vsyncpa [#allocation6], 1 }
0x21f6   :  { %4465 = vsyncpa [#allocation9], 1 }
0x21f7   :  { %4466 = vsyncpa [#allocation12], 1 }
0x21f8   :  { %4467 = vsyncpa [#allocation15], 1 }
0x21f9   :  { %4468 = vsyncpa [#allocation18], 1 }
0x21fa   :  { %4469 = vsyncpa [#allocation21], 1 }
0x21fb   :  { %4470 = vsyncpa [#allocation24], 1 }
0x21fc   :  { %4471 = vsyncpa [#allocation4], 1 }

</bundles_post_ra>
